<compile_context>
chip_gen: v5e
topology: v5e:2x2
jax: 0.10.0
libtpu: 0.0.40
codegen_flags: <defaults>
</compile_context>

<pallas_src>
import functools

import jax
import jax.numpy as jnp
from jax.experimental import pallas as pl
from jax.experimental.pallas import tpu as pltpu

_HI = jax.lax.Precision.HIGHEST
_WNAMES = ("mup", "bup", "w1t", "w1b", "b1", "w2t", "w2b", "b2")


# ============================================================================
# Host-side weight preparation (layout-only einsums, run ONCE per param set)
# ============================================================================
def _upconv_matrix(up_w, up_b, w_in, k):
    """ConvTranspose2d(k=2,s=2) as a (k*w_in*Cin, 2k*2w_in*Cout) matrix.

    Input layout : matrix row t = image rows [k*t, k*t+k), each (w_in, Cin).
    Output layout: matrix row t = image rows [2k*t, 2k*t+2k), each (2w_in, Cout).
    """
    cin, cout = up_w.shape[0], up_w.shape[1]
    w_out = 2 * w_in
    ri = jnp.arange(k)
    ro = jnp.arange(2 * k)
    a = jnp.arange(2)
    dh = (ro[None, :, None] == 2 * ri[:, None, None] + a[None, None, :]
          ).astype(up_w.dtype)                                   # (k, 2k, 2)
    w = jnp.arange(w_in)
    z = jnp.arange(w_out)
    b = jnp.arange(2)
    dw = (z[None, :, None] == 2 * w[:, None, None] + b[None, None, :]
          ).astype(up_w.dtype)                                   # (w_in, 2w_in, 2)
    m = jnp.einsum("rsa,wzb,ioab->rwiszo", dh, dw, up_w, precision=_HI)
    m = m.reshape(k * w_in * cin, 2 * k * w_out * cout)
    bias = jnp.tile(up_b, 2 * k * w_out).reshape(1, -1)
    return m, bias


def _conv3_toeplitz(wc, bc, w_in, g):
    """Conv2d(3x3, valid) as two (g*w_in*CI, g*WO*CO) block-Toeplitz matrices
    acting on a g-row layout; output row t reads input rows t (top) and t+1 (bot)."""
    co, ci = wc.shape[0], wc.shape[1]
    wo = w_in - 2
    ro = jnp.arange(g)
    kh = jnp.arange(3)
    s = jnp.arange(2)
    p = jnp.arange(g)
    rh = ro[None, None, :, None] + kh[None, None, None, :]       # (1,1,g,3)
    ind_h = ((rh // g == s[:, None, None, None]) &
             (rh % g == p[None, :, None, None])).astype(wc.dtype)  # (2,g,g,3)
    w = jnp.arange(w_in)
    v = jnp.arange(wo)
    kw = jnp.arange(3)
    ind_w = (w[:, None, None] == v[None, :, None] + kw[None, None, :]
             ).astype(wc.dtype)                                  # (w_in, wo, 3)
    m = jnp.einsum("sprh,wvk,mihk->spwirvm", ind_h, ind_w, wc, precision=_HI)
    m = m.reshape(2, g * w_in * ci, g * wo * co)
    bias = jnp.tile(bc, g * wo).reshape(1, -1)
    return m[0], m[1], bias


def prepare_decoder(params, x_shape):
    """Precompute (once) the matmul-form weights + static layout metadata."""
    _, c, h, w = x_shape
    g = 1
    meta, wts = [], []
    for p in params:
        cin, cup = p["up_w"].shape[0], p["up_w"].shape[1]
        cin1 = p["c1_w"].shape[1]
        cout = p["c2_w"].shape[0]
        # torch forward (cat along H) is only shape-valid when conv1 in_channels
        # equal the upconv out_channels (constant channel tuple).
        assert c == cin and cin1 == cup
        assert h % g == 0
        n_in = h // g
        g2 = 2 * g
        hup, wup = 2 * h, 2 * w
        h_out, w_out = 2 * hup - 4, wup - 4
        n_out = -(-h_out // g2)            # ceil; exact for all but the last stage
        t_c = 2 * n_in                     # valid concat rows (up + enc)
        t_pad = -(-t_c // 8) * 8           # pad rows to an 8-sublane multiple

        mup, bup = _upconv_matrix(p["up_w"], p["up_b"], w, g)
        w1t, w1b, b1 = _conv3_toeplitz(p["c1_w"], p["c1_b"], wup, g2)
        w2t, w2b, b2 = _conv3_toeplitz(p["c2_w"], p["c2_b"], wup - 2, g2)

        meta.append(dict(g_in=g, g_out=g2, n_in=n_in, n_out=n_out, t_c=t_c,
                         t_pad=t_pad, hup=hup, wup=wup, h_out=h_out,
                         w_out=w_out, c_out=cout, lup=int(mup.shape[1])))
        wts.append(dict(
            mup=mup.astype(jnp.bfloat16), bup=bup.astype(jnp.float32),
            w1t=w1t.astype(jnp.bfloat16), w1b=w1b.astype(jnp.bfloat16),
            b1=b1.astype(jnp.float32),
            w2t=w2t.astype(jnp.bfloat16), w2b=w2b.astype(jnp.bfloat16),
            b2=b2.astype(jnp.float32)))
        h, w, c, g = h_out, w_out, cout, g2
    return meta, wts


# ============================================================================
# Fused decoder kernel (all stages, one image per grid step)
# ============================================================================
def _build_kernel(meta):
    n_stage = len(meta)

    def kernel(*refs):
        x_ref = refs[0]
        enc_refs = refs[1:1 + n_stage]
        w_refs = [refs[1 + n_stage + 8 * s: 1 + n_stage + 8 * (s + 1)]
                  for s in range(n_stage)]
        out_ref = refs[1 + 9 * n_stage]
        xc_refs = refs[2 + 9 * n_stage: 2 + 10 * n_stage]

        f32, bf16 = jnp.float32, jnp.bfloat16
        cur = x_ref[...].astype(bf16)                 # stage input (rows, g*W*C)

        for s in range(n_stage):
            m = meta[s]
            n_in, n_out = m["n_in"], m["n_out"]
            t_c, t_pad = m["t_c"], m["t_pad"]
            mup, bup, w1t, w1b, b1, w2t, w2b, b2 = w_refs[s]
            xc = xc_refs[s]

            # --- ConvTranspose2d(2,2): one matmul; concat(enc) along height ---
            up = jnp.dot(cur, mup[...], preferred_element_type=f32) + bup[...]
            xc[0:n_in, :] = up
            xc[n_in:t_c, :] = enc_refs[s][...].astype(f32)
            if t_c < t_pad:                            # zero the padding rows
                xc[t_c:t_pad, :] = jnp.zeros((t_pad - t_c, xc.shape[1]), f32)

            # One-row down-shift operator (row t <- row t+1).  Applying it as a
            # tiny matmul keeps every MXU LHS 8-sublane aligned (no shifted
            # copies of xc / y1) and the bottom row is cleanly zeroed.
            i0 = jax.lax.broadcasted_iota(jnp.int32, (t_pad, t_pad), 0)
            i1 = jax.lax.broadcasted_iota(jnp.int32, (t_pad, t_pad), 1)
            shift = (i1 == i0 + 1).astype(f32)

            xcb = xc[...].astype(bf16)

            # --- Conv2d(3x3, valid) + ReLU: two block-Toeplitz matmuls ---
            top = jnp.dot(xcb, w1t[...], preferred_element_type=f32)
            bot = jnp.dot(xcb, w1b[...], preferred_element_type=f32)
            y1 = jnp.maximum(
                top + jnp.dot(shift, bot, preferred_element_type=f32) + b1[...],
                0.0)

            # --- Conv2d(3x3, valid) ---
            y1b = y1.astype(bf16)
            top = jnp.dot(y1b, w2t[...], preferred_element_type=f32)
            bot = jnp.dot(y1b, w2b[...], preferred_element_type=f32)
            y2 = top + jnp.dot(shift, bot, preferred_element_type=f32) + b2[...]

            if s + 1 < n_stage:
                cur = y2[0:n_out, :].astype(bf16)      # next stage input layout
            else:
                out_ref[...] = y2[0:n_out, :]

    return kernel


def decoder_apply(meta, wts, x_nchw, enc_features):
    n, c0, h0, w0 = x_nchw.shape
    # input image -> row layout (N, H, W*C), bf16
    x_rows = jnp.transpose(x_nchw, (0, 2, 3, 1)).reshape(n, h0, w0 * c0)
    x_rows = x_rows.astype(jnp.bfloat16)

    # encoder features: center-crop to the upconv output size and lay out in
    # the stage's 2k-row layout (layout-only work, fused by XLA on the host side)
    encs = []
    for m, enc in zip(meta, enc_features):
        e = jnp.transpose(enc, (0, 2, 3, 1))
        he, we = e.shape[1], e.shape[2]
        # TODO(synk): torchvision CenterCrop zero-pads when the encoder feature
        # is smaller than the upconv output; that path is not implemented here.
        top = int(round((he - m["hup"]) / 2.0))
        left = int(round((we - m["wup"]) / 2.0))
        e = e[:, top:top + m["hup"], left:left + m["wup"], :]
        cenc = e.shape[3]
        e = e.reshape(n, m["hup"] // m["g_out"], m["g_out"] * m["wup"] * cenc)
        encs.append(e.astype(jnp.bfloat16))

    last = meta[-1]
    out_rows = last["n_out"]
    out_lanes = last["g_out"] * last["w_out"] * last["c_out"]

    operands = [x_rows] + encs
    in_specs = [pl.BlockSpec((None, x_rows.shape[1], x_rows.shape[2]),
                             lambda i: (i, 0, 0))]
    for e in encs:
        in_specs.append(pl.BlockSpec((None, e.shape[1], e.shape[2]),
                                     lambda i: (i, 0, 0)))
    for w in wts:                       # grid-invariant weights: fetched once
        for name in _WNAMES:
            arr = w[name]
            operands.append(arr)
            in_specs.append(pl.BlockSpec(arr.shape, lambda i: (0, 0)))

    scratch = [pltpu.VMEM((m["t_pad"], m["lup"]), jnp.float32) for m in meta]

    # advisory cost estimate for XLA's scheduler
    flops = 0
    for m, w in zip(meta, wts):
        flops += 2 * m["n_in"] * w["mup"].shape[0] * w["mup"].shape[1]
        flops += 4 * m["t_pad"] * w["w1t"].shape[0] * w["w1t"].shape[1]
        flops += 4 * m["t_pad"] * w["w2t"].shape[0] * w["w2t"].shape[1]
        flops += 4 * m["t_pad"] * m["t_pad"] * (w["w1t"].shape[1]
                                                + w["w2t"].shape[1])
    flops *= n
    bytes_accessed = sum(int(op.size) * op.dtype.itemsize for op in operands)
    bytes_accessed += n * out_rows * out_lanes * 4

    out = pl.pallas_call(
        _build_kernel(meta),
        out_shape=jax.ShapeDtypeStruct((n, out_rows, out_lanes), jnp.float32),
        grid=(n,),
        in_specs=in_specs,
        out_specs=pl.BlockSpec((None, out_rows, out_lanes), lambda i: (i, 0, 0)),
        scratch_shapes=scratch,
        compiler_params=pltpu.CompilerParams(
            dimension_semantics=("parallel",)),
        cost_estimate=pl.CostEstimate(flops=int(flops), transcendentals=0,
                                      bytes_accessed=int(bytes_accessed)),
    )(*operands)

    # final 8-row layout -> NCHW, dropping the pad rows of the last row block
    out = out.reshape(n, out_rows * last["g_out"], last["w_out"], last["c_out"])
    out = out[:, :last["h_out"]]
    return jnp.transpose(out, (0, 3, 1, 2))


# ============================================================================
# Pure-JAX reference (f32, HIGHEST precision) and parameter init
# ============================================================================
def _ref_conv3(x_nhwc, w_torch, b):
    w_hwio = jnp.transpose(w_torch, (2, 3, 1, 0))
    y = jax.lax.conv_general_dilated(
        x_nhwc, w_hwio, (1, 1), "VALID",
        dimension_numbers=("NHWC", "HWIO", "NHWC"), precision=_HI)
    return y + b


def _reference_forward(params, x_nchw, enc_features_nchw):
    x = jnp.transpose(x_nchw, (0, 2, 3, 1))
    encs = [jnp.transpose(e, (0, 2, 3, 1)) for e in enc_features_nchw]
    for p, enc in zip(params, encs):
        n, h, w, _ = x.shape
        cout = p["up_w"].shape[1]
        y = jnp.einsum("nhwi,iokl->nhkwlo", x, p["up_w"], precision=_HI)
        y = y.reshape(n, 2 * h, 2 * w, cout) + p["up_b"]
        hup, wup = 2 * h, 2 * w
        he, we = enc.shape[1], enc.shape[2]
        top = int(round((he - hup) / 2.0))
        left = int(round((we - wup) / 2.0))
        e = enc[:, top:top + hup, left:left + wup, :]
        x = jnp.concatenate([y, e], axis=1)            # torch dim=2 (height)
        x = jnp.maximum(_ref_conv3(x, p["c1_w"], p["c1_b"]), 0.0)
        x = _ref_conv3(x, p["c2_w"], p["c2_b"])
    return jnp.transpose(x, (0, 3, 1, 2))


def init_decoder_params(key, channels):
    params = []
    for i in range(len(channels) - 1):
        cin, cout = channels[i], channels[i + 1]
        key, k0, k1, k2, k3, k4, k5 = jax.random.split(key, 7)
        params.append(dict(
            up_w=0.1 * jax.random.normal(k0, (cin, cout, 2, 2), jnp.float32),
            up_b=0.1 * jax.random.normal(k1, (cout,), jnp.float32),
            c1_w=0.1 * jax.random.normal(k2, (cout // 2, cin, 3, 3), jnp.float32),
            c1_b=0.1 * jax.random.normal(k3, (cout // 2,), jnp.float32),
            c2_w=0.1 * jax.random.normal(k4, (cout, cout // 2, 3, 3), jnp.float32),
            c2_b=0.1 * jax.random.normal(k5, (cout,), jnp.float32),
        ))
    return params


if __name__ == "__main__":
    # Constant channel tuple: required for the torch forward (cat on H) to be
    # shape-valid -- see note at the top of the file.
    channels = (8, 8, 8, 8)
    assert all(c == channels[0] for c in channels)

    key = jax.random.PRNGKey(0)
    keys = jax.random.split(key, 2 + len(channels) - 1)
    kp, kx, kencs = keys[0], keys[1], keys[2:]

    params = init_decoder_params(kp, channels)

    N, H0, W0 = 2, 4, 4
    x = jax.random.normal(kx, (N, channels[0], H0, W0), jnp.float32)

    # Encoder features: a bit larger than the upconv output so CenterCrop crops
    # (even size difference -> unambiguous center offsets).
    enc_features = []
    h, w = H0, W0
    for i in range(len(channels) - 1):
        h_up, w_up = 2 * h, 2 * w
        enc_features.append(jax.random.normal(
            kencs[i], (N, channels[i + 1], h_up + 4, w_up + 4), jnp.float32))
        h, w = 2 * h_up - 4, w_up - 4

    # Weight prep hoisted out of the jitted forward (runs once).
    meta, wts = prepare_decoder(params, x.shape)
    fwd = jax.jit(functools.partial(decoder_apply, meta))
    out = jax.block_until_ready(fwd(wts, x, enc_features))
    assert out.shape == (N, channels[-1], h, w), out.shape

    ref = jax.block_until_ready(jax.jit(_reference_forward)(params, x, enc_features))
    scale = float(jnp.max(jnp.abs(ref)))
    max_err = float(jnp.max(jnp.abs(out - ref)))
    # bf16 MXU operands (f32 accumulation) vs. an f32/HIGHEST reference.
    assert max_err < max(0.05, 0.08 * scale), (max_err, scale)

    print("KERNEL_OK")
</pallas_src>

<mosaic_0001>
module attributes {stable_mosaic.version = 11 : i64} {
  func.func @kernel(%arg0: i32, %arg1: memref<1x4x32xbf16, #tpu.memory_space<vmem>>, %arg2: memref<1x4x128xbf16, #tpu.memory_space<vmem>>, %arg3: memref<1x6x256xbf16, #tpu.memory_space<vmem>>, %arg4: memref<1x11x512xbf16, #tpu.memory_space<vmem>>, %arg5: memref<32x128xbf16, #tpu.memory_space<vmem>>, %arg6: memref<1x128xf32, #tpu.memory_space<vmem>>, %arg7: memref<128x48xbf16, #tpu.memory_space<vmem>>, %arg8: memref<128x48xbf16, #tpu.memory_space<vmem>>, %arg9: memref<1x48xf32, #tpu.memory_space<vmem>>, %arg10: memref<48x64xbf16, #tpu.memory_space<vmem>>, %arg11: memref<48x64xbf16, #tpu.memory_space<vmem>>, %arg12: memref<1x64xf32, #tpu.memory_space<vmem>>, %arg13: memref<64x256xbf16, #tpu.memory_space<vmem>>, %arg14: memref<1x256xf32, #tpu.memory_space<vmem>>, %arg15: memref<256x96xbf16, #tpu.memory_space<vmem>>, %arg16: memref<256x96xbf16, #tpu.memory_space<vmem>>, %arg17: memref<1x96xf32, #tpu.memory_space<vmem>>, %arg18: memref<96x128xbf16, #tpu.memory_space<vmem>>, %arg19: memref<96x128xbf16, #tpu.memory_space<vmem>>, %arg20: memref<1x128xf32, #tpu.memory_space<vmem>>, %arg21: memref<128x512xbf16, #tpu.memory_space<vmem>>, %arg22: memref<1x512xf32, #tpu.memory_space<vmem>>, %arg23: memref<512x192xbf16, #tpu.memory_space<vmem>>, %arg24: memref<512x192xbf16, #tpu.memory_space<vmem>>, %arg25: memref<1x192xf32, #tpu.memory_space<vmem>>, %arg26: memref<192x256xbf16, #tpu.memory_space<vmem>>, %arg27: memref<192x256xbf16, #tpu.memory_space<vmem>>, %arg28: memref<1x256xf32, #tpu.memory_space<vmem>>, %arg29: memref<1x22x256xf32, #tpu.memory_space<vmem>>, %arg30: memref<8x128xf32, #tpu.memory_space<vmem>>, %arg31: memref<16x256xf32, #tpu.memory_space<vmem>>, %arg32: memref<24x512xf32, #tpu.memory_space<vmem>>) attributes {dimension_semantics = [#tpu.dimension_semantics<parallel>], iteration_bounds = array<i64: 2>, scalar_prefetch = 0 : i64, scratch_operands = 3 : i64, tpu.core_type = #tpu.core_type<tc>, window_params = [{transform_indices = @transform_0, window_bounds = array<i64: 1, 4, 32>}, {transform_indices = @transform_1, window_bounds = array<i64: 1, 4, 128>}, {transform_indices = @transform_2, window_bounds = array<i64: 1, 6, 256>}, {transform_indices = @transform_3, window_bounds = array<i64: 1, 11, 512>}, {pipeline_mode = #tpu.pipeline_mode<synchronous>, transform_indices = @transform_4, window_bounds = array<i64: 32, 128>}, {pipeline_mode = #tpu.pipeline_mode<synchronous>, transform_indices = @transform_5, window_bounds = array<i64: 1, 128>}, {pipeline_mode = #tpu.pipeline_mode<synchronous>, transform_indices = @transform_6, window_bounds = array<i64: 128, 48>}, {pipeline_mode = #tpu.pipeline_mode<synchronous>, transform_indices = @transform_7, window_bounds = array<i64: 128, 48>}, {pipeline_mode = #tpu.pipeline_mode<synchronous>, transform_indices = @transform_8, window_bounds = array<i64: 1, 48>}, {pipeline_mode = #tpu.pipeline_mode<synchronous>, transform_indices = @transform_9, window_bounds = array<i64: 48, 64>}, {pipeline_mode = #tpu.pipeline_mode<synchronous>, transform_indices = @transform_10, window_bounds = array<i64: 48, 64>}, {pipeline_mode = #tpu.pipeline_mode<synchronous>, transform_indices = @transform_11, window_bounds = array<i64: 1, 64>}, {pipeline_mode = #tpu.pipeline_mode<synchronous>, transform_indices = @transform_12, window_bounds = array<i64: 64, 256>}, {pipeline_mode = #tpu.pipeline_mode<synchronous>, transform_indices = @transform_13, window_bounds = array<i64: 1, 256>}, {pipeline_mode = #tpu.pipeline_mode<synchronous>, transform_indices = @transform_14, window_bounds = array<i64: 256, 96>}, {pipeline_mode = #tpu.pipeline_mode<synchronous>, transform_indices = @transform_15, window_bounds = array<i64: 256, 96>}, {pipeline_mode = #tpu.pipeline_mode<synchronous>, transform_indices = @transform_16, window_bounds = array<i64: 1, 96>}, {pipeline_mode = #tpu.pipeline_mode<synchronous>, transform_indices = @transform_17, window_bounds = array<i64: 96, 128>}, {pipeline_mode = #tpu.pipeline_mode<synchronous>, transform_indices = @transform_18, window_bounds = array<i64: 96, 128>}, {pipeline_mode = #tpu.pipeline_mode<synchronous>, transform_indices = @transform_19, window_bounds = array<i64: 1, 128>}, {pipeline_mode = #tpu.pipeline_mode<synchronous>, transform_indices = @transform_20, window_bounds = array<i64: 128, 512>}, {pipeline_mode = #tpu.pipeline_mode<synchronous>, transform_indices = @transform_21, window_bounds = array<i64: 1, 512>}, {pipeline_mode = #tpu.pipeline_mode<synchronous>, transform_indices = @transform_22, window_bounds = array<i64: 512, 192>}, {pipeline_mode = #tpu.pipeline_mode<synchronous>, transform_indices = @transform_23, window_bounds = array<i64: 512, 192>}, {pipeline_mode = #tpu.pipeline_mode<synchronous>, transform_indices = @transform_24, window_bounds = array<i64: 1, 192>}, {pipeline_mode = #tpu.pipeline_mode<synchronous>, transform_indices = @transform_25, window_bounds = array<i64: 192, 256>}, {pipeline_mode = #tpu.pipeline_mode<synchronous>, transform_indices = @transform_26, window_bounds = array<i64: 192, 256>}, {pipeline_mode = #tpu.pipeline_mode<synchronous>, transform_indices = @transform_27, window_bounds = array<i64: 1, 256>}, {transform_indices = @transform_28, window_bounds = array<i64: 1, 22, 256>}]} {
    %c0 = arith.constant 0 : index
    %c0_0 = arith.constant 0 : index
    %c0_1 = arith.constant 0 : index
    %0 = vector.load %arg1[%c0, %c0_0, %c0_1] : memref<1x4x32xbf16, #tpu.memory_space<vmem>>, vector<1x4x32xbf16>
    %1 = vector.shape_cast %0 : vector<1x4x32xbf16> to vector<4x32xbf16>
    %c0_2 = arith.constant 0 : index
    %c0_3 = arith.constant 0 : index
    %2 = vector.load %arg5[%c0_2, %c0_3] : memref<32x128xbf16, #tpu.memory_space<vmem>>, vector<32x128xbf16>
    %cst = arith.constant dense<0.000000e+00> : vector<4x128xf32>
    %3 = tpu.matmul %1, %2, %cst {dimension_numbers = #tpu.dot_dimension_numbers<[1], [0], [0], [1], [0, 0, 1, 1], [], []>} : vector<4x32xbf16>, vector<32x128xbf16>, vector<4x128xf32> -> vector<4x128xf32>
    %c0_4 = arith.constant 0 : index
    %c0_5 = arith.constant 0 : index
    %4 = vector.load %arg6[%c0_4, %c0_5] : memref<1x128xf32, #tpu.memory_space<vmem>>, vector<1x128xf32>
    %5 = vector.broadcast %4 : vector<1x128xf32> to vector<4x128xf32>
    %6 = arith.addf %3, %5 : vector<4x128xf32>
    %c0_6 = arith.constant 0 : index
    %c0_7 = arith.constant 0 : index
    %7 = vector.load %arg30[%c0_6, %c0_7] : memref<8x128xf32, #tpu.memory_space<vmem>>, vector<4x128xf32>
    tpu.vector_store %arg30[%c0_6, %c0_7], %6 {strides = array<i32>} : memref<8x128xf32, #tpu.memory_space<vmem>>, vector<4x128xf32>,
    %c0_8 = arith.constant 0 : index
    %c0_9 = arith.constant 0 : index
    %c0_10 = arith.constant 0 : index
    %8 = vector.load %arg2[%c0_8, %c0_9, %c0_10] : memref<1x4x128xbf16, #tpu.memory_space<vmem>>, vector<1x4x128xbf16>
    %9 = vector.shape_cast %8 : vector<1x4x128xbf16> to vector<4x128xbf16>
    %10 = arith.extf %9 : vector<4x128xbf16> to vector<4x128xf32>
    %c4 = arith.constant 4 : index
    %c0_11 = arith.constant 0 : index
    %11 = vector.load %arg30[%c4, %c0_11] : memref<8x128xf32, #tpu.memory_space<vmem>>, vector<4x128xf32>
    tpu.vector_store %arg30[%c4, %c0_11], %10 {strides = array<i32>} : memref<8x128xf32, #tpu.memory_space<vmem>>, vector<4x128xf32>,
    %12 = tpu.iota {dimensions = array<i32: 0>} : vector<8x8xi32>
    %13 = tpu.iota {dimensions = array<i32: 1>} : vector<8x8xi32>
    %c1_i32 = arith.constant 1 : i32
    %14 = vector.broadcast %c1_i32 : i32 to vector<8x8xi32>
    %15 = arith.addi %12, %14 : vector<8x8xi32>
    %16 = arith.cmpi eq, %13, %15 : vector<8x8xi32>
    %17 = arith.extui %16 : vector<8x8xi1> to vector<8x8xi32>
    %18 = arith.sitofp %17 : vector<8x8xi32> to vector<8x8xf32>
    %c0_12 = arith.constant 0 : index
    %c0_13 = arith.constant 0 : index
    %19 = vector.load %arg30[%c0_12, %c0_13] : memref<8x128xf32, #tpu.memory_space<vmem>>, vector<8x128xf32>
    %20 = arith.truncf %19 : vector<8x128xf32> to vector<8x128xbf16>
    %c0_14 = arith.constant 0 : index
    %c0_15 = arith.constant 0 : index
    %21 = vector.load %arg7[%c0_14, %c0_15] : memref<128x48xbf16, #tpu.memory_space<vmem>>, vector<128x48xbf16>
    %cst_16 = arith.constant dense<0.000000e+00> : vector<8x48xf32>
    %22 = tpu.matmul %20, %21, %cst_16 {dimension_numbers = #tpu.dot_dimension_numbers<[1], [0], [0], [1], [0, 0, 1, 1], [], []>} : vector<8x128xbf16>, vector<128x48xbf16>, vector<8x48xf32> -> vector<8x48xf32>
    %c0_17 = arith.constant 0 : index
    %c0_18 = arith.constant 0 : index
    %23 = vector.load %arg8[%c0_17, %c0_18] : memref<128x48xbf16, #tpu.memory_space<vmem>>, vector<128x48xbf16>
    %cst_19 = arith.constant dense<0.000000e+00> : vector<8x48xf32>
    %24 = tpu.matmul %20, %23, %cst_19 {dimension_numbers = #tpu.dot_dimension_numbers<[1], [0], [0], [1], [0, 0, 1, 1], [], []>} : vector<8x128xbf16>, vector<128x48xbf16>, vector<8x48xf32> -> vector<8x48xf32>
    %cst_20 = arith.constant dense<0.000000e+00> : vector<8x48xf32>
    %25 = tpu.matmul %18, %24, %cst_20 {dimension_numbers = #tpu.dot_dimension_numbers<[1], [0], [0], [1], [0, 0, 1, 1], [], []>} : vector<8x8xf32>, vector<8x48xf32>, vector<8x48xf32> -> vector<8x48xf32>
    %26 = arith.addf %22, %25 : vector<8x48xf32>
    %c0_21 = arith.constant 0 : index
    %c0_22 = arith.constant 0 : index
    %27 = vector.load %arg9[%c0_21, %c0_22] : memref<1x48xf32, #tpu.memory_space<vmem>>, vector<1x48xf32>
    %28 = vector.broadcast %27 : vector<1x48xf32> to vector<8x48xf32>
    %29 = arith.addf %26, %28 : vector<8x48xf32>
    %cst_23 = arith.constant 0.000000e+00 : f32
    %30 = vector.broadcast %cst_23 : f32 to vector<8x48xf32>
    %31 = arith.maximumf %29, %30 : vector<8x48xf32>
    %32 = arith.truncf %31 : vector<8x48xf32> to vector<8x48xbf16>
    %c0_24 = arith.constant 0 : index
    %c0_25 = arith.constant 0 : index
    %33 = vector.load %arg10[%c0_24, %c0_25] : memref<48x64xbf16, #tpu.memory_space<vmem>>, vector<48x64xbf16>
    %cst_26 = arith.constant dense<0.000000e+00> : vector<8x64xf32>
    %34 = tpu.matmul %32, %33, %cst_26 {dimension_numbers = #tpu.dot_dimension_numbers<[1], [0], [0], [1], [0, 0, 1, 1], [], []>} : vector<8x48xbf16>, vector<48x64xbf16>, vector<8x64xf32> -> vector<8x64xf32>
    %c0_27 = arith.constant 0 : index
    %c0_28 = arith.constant 0 : index
    %35 = vector.load %arg11[%c0_27, %c0_28] : memref<48x64xbf16, #tpu.memory_space<vmem>>, vector<48x64xbf16>
    %cst_29 = arith.constant dense<0.000000e+00> : vector<8x64xf32>
    %36 = tpu.matmul %32, %35, %cst_29 {dimension_numbers = #tpu.dot_dimension_numbers<[1], [0], [0], [1], [0, 0, 1, 1], [], []>} : vector<8x48xbf16>, vector<48x64xbf16>, vector<8x64xf32> -> vector<8x64xf32>
    %cst_30 = arith.constant dense<0.000000e+00> : vector<8x64xf32>
    %37 = tpu.matmul %18, %36, %cst_30 {dimension_numbers = #tpu.dot_dimension_numbers<[1], [0], [0], [1], [0, 0, 1, 1], [], []>} : vector<8x8xf32>, vector<8x64xf32>, vector<8x64xf32> -> vector<8x64xf32>
    %38 = arith.addf %34, %37 : vector<8x64xf32>
    %c0_31 = arith.constant 0 : index
    %c0_32 = arith.constant 0 : index
    %39 = vector.load %arg12[%c0_31, %c0_32] : memref<1x64xf32, #tpu.memory_space<vmem>>, vector<1x64xf32>
    %40 = vector.broadcast %39 : vector<1x64xf32> to vector<8x64xf32>
    %41 = arith.addf %38, %40 : vector<8x64xf32>
    %42 = vector.extract_strided_slice %41 {offsets = [0, 0], sizes = [6, 64], strides = [1, 1]} : vector<8x64xf32> to vector<6x64xf32>
    %43 = arith.truncf %42 : vector<6x64xf32> to vector<6x64xbf16>
    %c0_33 = arith.constant 0 : index
    %c0_34 = arith.constant 0 : index
    %44 = vector.load %arg13[%c0_33, %c0_34] : memref<64x256xbf16, #tpu.memory_space<vmem>>, vector<64x256xbf16>
    %cst_35 = arith.constant dense<0.000000e+00> : vector<6x256xf32>
    %45 = tpu.matmul %43, %44, %cst_35 {dimension_numbers = #tpu.dot_dimension_numbers<[1], [0], [0], [1], [0, 0, 1, 1], [], []>} : vector<6x64xbf16>, vector<64x256xbf16>, vector<6x256xf32> -> vector<6x256xf32>
    %c0_36 = arith.constant 0 : index
    %c0_37 = arith.constant 0 : index
    %46 = vector.load %arg14[%c0_36, %c0_37] : memref<1x256xf32, #tpu.memory_space<vmem>>, vector<1x256xf32>
    %47 = vector.broadcast %46 : vector<1x256xf32> to vector<6x256xf32>
    %48 = arith.addf %45, %47 : vector<6x256xf32>
    %c0_38 = arith.constant 0 : index
    %c0_39 = arith.constant 0 : index
    %49 = vector.load %arg31[%c0_38, %c0_39] : memref<16x256xf32, #tpu.memory_space<vmem>>, vector<6x256xf32>
    tpu.vector_store %arg31[%c0_38, %c0_39], %48 {strides = array<i32>} : memref<16x256xf32, #tpu.memory_space<vmem>>, vector<6x256xf32>,
    %c0_40 = arith.constant 0 : index
    %c0_41 = arith.constant 0 : index
    %c0_42 = arith.constant 0 : index
    %50 = vector.load %arg3[%c0_40, %c0_41, %c0_42] : memref<1x6x256xbf16, #tpu.memory_space<vmem>>, vector<1x6x256xbf16>
    %51 = vector.shape_cast %50 : vector<1x6x256xbf16> to vector<6x256xbf16>
    %52 = arith.extf %51 : vector<6x256xbf16> to vector<6x256xf32>
    %c6 = arith.constant 6 : index
    %c0_43 = arith.constant 0 : index
    %53 = vector.load %arg31[%c6, %c0_43] : memref<16x256xf32, #tpu.memory_space<vmem>>, vector<6x256xf32>
    tpu.vector_store %arg31[%c6, %c0_43], %52 {strides = array<i32>} : memref<16x256xf32, #tpu.memory_space<vmem>>, vector<6x256xf32>,
    %cst_44 = arith.constant 0.000000e+00 : f32
    %54 = vector.broadcast %cst_44 : f32 to vector<4x256xf32>
    %c12 = arith.constant 12 : index
    %c0_45 = arith.constant 0 : index
    %55 = vector.load %arg31[%c12, %c0_45] : memref<16x256xf32, #tpu.memory_space<vmem>>, vector<4x256xf32>
    tpu.vector_store %arg31[%c12, %c0_45], %54 {strides = array<i32>} : memref<16x256xf32, #tpu.memory_space<vmem>>, vector<4x256xf32>,
    %56 = tpu.iota {dimensions = array<i32: 0>} : vector<16x16xi32>
    %57 = tpu.iota {dimensions = array<i32: 1>} : vector<16x16xi32>
    %c1_i32_46 = arith.constant 1 : i32
    %58 = vector.broadcast %c1_i32_46 : i32 to vector<16x16xi32>
    %59 = arith.addi %56, %58 : vector<16x16xi32>
    %60 = arith.cmpi eq, %57, %59 : vector<16x16xi32>
    %61 = arith.extui %60 : vector<16x16xi1> to vector<16x16xi32>
    %62 = arith.sitofp %61 : vector<16x16xi32> to vector<16x16xf32>
    %c0_47 = arith.constant 0 : index
    %c0_48 = arith.constant 0 : index
    %63 = vector.load %arg31[%c0_47, %c0_48] : memref<16x256xf32, #tpu.memory_space<vmem>>, vector<16x256xf32>
    %64 = arith.truncf %63 : vector<16x256xf32> to vector<16x256xbf16>
    %c0_49 = arith.constant 0 : index
    %c0_50 = arith.constant 0 : index
    %65 = vector.load %arg15[%c0_49, %c0_50] : memref<256x96xbf16, #tpu.memory_space<vmem>>, vector<256x96xbf16>
    %cst_51 = arith.constant dense<0.000000e+00> : vector<16x96xf32>
    %66 = tpu.matmul %64, %65, %cst_51 {dimension_numbers = #tpu.dot_dimension_numbers<[1], [0], [0], [1], [0, 0, 1, 1], [], []>} : vector<16x256xbf16>, vector<256x96xbf16>, vector<16x96xf32> -> vector<16x96xf32>
    %c0_52 = arith.constant 0 : index
    %c0_53 = arith.constant 0 : index
    %67 = vector.load %arg16[%c0_52, %c0_53] : memref<256x96xbf16, #tpu.memory_space<vmem>>, vector<256x96xbf16>
    %cst_54 = arith.constant dense<0.000000e+00> : vector<16x96xf32>
    %68 = tpu.matmul %64, %67, %cst_54 {dimension_numbers = #tpu.dot_dimension_numbers<[1], [0], [0], [1], [0, 0, 1, 1], [], []>} : vector<16x256xbf16>, vector<256x96xbf16>, vector<16x96xf32> -> vector<16x96xf32>
    %cst_55 = arith.constant dense<0.000000e+00> : vector<16x96xf32>
    %69 = tpu.matmul %62, %68, %cst_55 {dimension_numbers = #tpu.dot_dimension_numbers<[1], [0], [0], [1], [0, 0, 1, 1], [], []>} : vector<16x16xf32>, vector<16x96xf32>, vector<16x96xf32> -> vector<16x96xf32>
    %70 = arith.addf %66, %69 : vector<16x96xf32>
    %c0_56 = arith.constant 0 : index
    %c0_57 = arith.constant 0 : index
    %71 = vector.load %arg17[%c0_56, %c0_57] : memref<1x96xf32, #tpu.memory_space<vmem>>, vector<1x96xf32>
    %72 = vector.broadcast %71 : vector<1x96xf32> to vector<16x96xf32>
    %73 = arith.addf %70, %72 : vector<16x96xf32>
    %cst_58 = arith.constant 0.000000e+00 : f32
    %74 = vector.broadcast %cst_58 : f32 to vector<16x96xf32>
    %75 = arith.maximumf %73, %74 : vector<16x96xf32>
    %76 = arith.truncf %75 : vector<16x96xf32> to vector<16x96xbf16>
    %c0_59 = arith.constant 0 : index
    %c0_60 = arith.constant 0 : index
    %77 = vector.load %arg18[%c0_59, %c0_60] : memref<96x128xbf16, #tpu.memory_space<vmem>>, vector<96x128xbf16>
    %cst_61 = arith.constant dense<0.000000e+00> : vector<16x128xf32>
    %78 = tpu.matmul %76, %77, %cst_61 {dimension_numbers = #tpu.dot_dimension_numbers<[1], [0], [0], [1], [0, 0, 1, 1], [], []>} : vector<16x96xbf16>, vector<96x128xbf16>, vector<16x128xf32> -> vector<16x128xf32>
    %c0_62 = arith.constant 0 : index
    %c0_63 = arith.constant 0 : index
    %79 = vector.load %arg19[%c0_62, %c0_63] : memref<96x128xbf16, #tpu.memory_space<vmem>>, vector<96x128xbf16>
    %cst_64 = arith.constant dense<0.000000e+00> : vector<16x128xf32>
    %80 = tpu.matmul %76, %79, %cst_64 {dimension_numbers = #tpu.dot_dimension_numbers<[1], [0], [0], [1], [0, 0, 1, 1], [], []>} : vector<16x96xbf16>, vector<96x128xbf16>, vector<16x128xf32> -> vector<16x128xf32>
    %cst_65 = arith.constant dense<0.000000e+00> : vector<16x128xf32>
    %81 = tpu.matmul %62, %80, %cst_65 {dimension_numbers = #tpu.dot_dimension_numbers<[1], [0], [0], [1], [0, 0, 1, 1], [], []>} : vector<16x16xf32>, vector<16x128xf32>, vector<16x128xf32> -> vector<16x128xf32>
    %82 = arith.addf %78, %81 : vector<16x128xf32>
    %c0_66 = arith.constant 0 : index
    %c0_67 = arith.constant 0 : index
    %83 = vector.load %arg20[%c0_66, %c0_67] : memref<1x128xf32, #tpu.memory_space<vmem>>, vector<1x128xf32>
    %84 = vector.broadcast %83 : vector<1x128xf32> to vector<16x128xf32>
    %85 = arith.addf %82, %84 : vector<16x128xf32>
    %86 = vector.extract_strided_slice %85 {offsets = [0, 0], sizes = [11, 128], strides = [1, 1]} : vector<16x128xf32> to vector<11x128xf32>
    %87 = arith.truncf %86 : vector<11x128xf32> to vector<11x128xbf16>
    %c0_68 = arith.constant 0 : index
    %c0_69 = arith.constant 0 : index
    %88 = vector.load %arg21[%c0_68, %c0_69] : memref<128x512xbf16, #tpu.memory_space<vmem>>, vector<128x512xbf16>
    %cst_70 = arith.constant dense<0.000000e+00> : vector<11x512xf32>
    %89 = tpu.matmul %87, %88, %cst_70 {dimension_numbers = #tpu.dot_dimension_numbers<[1], [0], [0], [1], [0, 0, 1, 1], [], []>} : vector<11x128xbf16>, vector<128x512xbf16>, vector<11x512xf32> -> vector<11x512xf32>
    %c0_71 = arith.constant 0 : index
    %c0_72 = arith.constant 0 : index
    %90 = vector.load %arg22[%c0_71, %c0_72] : memref<1x512xf32, #tpu.memory_space<vmem>>, vector<1x512xf32>
    %91 = vector.broadcast %90 : vector<1x512xf32> to vector<11x512xf32>
    %92 = arith.addf %89, %91 : vector<11x512xf32>
    %c0_73 = arith.constant 0 : index
    %c0_74 = arith.constant 0 : index
    %93 = vector.load %arg32[%c0_73, %c0_74] : memref<24x512xf32, #tpu.memory_space<vmem>>, vector<11x512xf32>
    tpu.vector_store %arg32[%c0_73, %c0_74], %92 {strides = array<i32>} : memref<24x512xf32, #tpu.memory_space<vmem>>, vector<11x512xf32>,
    %c0_75 = arith.constant 0 : index
    %c0_76 = arith.constant 0 : index
    %c0_77 = arith.constant 0 : index
    %94 = vector.load %arg4[%c0_75, %c0_76, %c0_77] : memref<1x11x512xbf16, #tpu.memory_space<vmem>>, vector<1x11x512xbf16>
    %95 = vector.shape_cast %94 : vector<1x11x512xbf16> to vector<11x512xbf16>
    %96 = arith.extf %95 : vector<11x512xbf16> to vector<11x512xf32>
    %c11 = arith.constant 11 : index
    %c0_78 = arith.constant 0 : index
    %97 = vector.load %arg32[%c11, %c0_78] : memref<24x512xf32, #tpu.memory_space<vmem>>, vector<11x512xf32>
    tpu.vector_store %arg32[%c11, %c0_78], %96 {strides = array<i32>} : memref<24x512xf32, #tpu.memory_space<vmem>>, vector<11x512xf32>,
    %cst_79 = arith.constant 0.000000e+00 : f32
    %98 = vector.broadcast %cst_79 : f32 to vector<2x512xf32>
    %c22 = arith.constant 22 : index
    %c0_80 = arith.constant 0 : index
    %99 = vector.load %arg32[%c22, %c0_80] : memref<24x512xf32, #tpu.memory_space<vmem>>, vector<2x512xf32>
    tpu.vector_store %arg32[%c22, %c0_80], %98 {strides = array<i32>} : memref<24x512xf32, #tpu.memory_space<vmem>>, vector<2x512xf32>,
    %100 = tpu.iota {dimensions = array<i32: 0>} : vector<24x24xi32>
    %101 = tpu.iota {dimensions = array<i32: 1>} : vector<24x24xi32>
    %c1_i32_81 = arith.constant 1 : i32
    %102 = vector.broadcast %c1_i32_81 : i32 to vector<24x24xi32>
    %103 = arith.addi %100, %102 : vector<24x24xi32>
    %104 = arith.cmpi eq, %101, %103 : vector<24x24xi32>
    %105 = arith.extui %104 : vector<24x24xi1> to vector<24x24xi32>
    %106 = arith.sitofp %105 : vector<24x24xi32> to vector<24x24xf32>
    %c0_82 = arith.constant 0 : index
    %c0_83 = arith.constant 0 : index
    %107 = vector.load %arg32[%c0_82, %c0_83] : memref<24x512xf32, #tpu.memory_space<vmem>>, vector<24x512xf32>
    %108 = arith.truncf %107 : vector<24x512xf32> to vector<24x512xbf16>
    %c0_84 = arith.constant 0 : index
    %c0_85 = arith.constant 0 : index
    %109 = vector.load %arg23[%c0_84, %c0_85] : memref<512x192xbf16, #tpu.memory_space<vmem>>, vector<512x192xbf16>
    %cst_86 = arith.constant dense<0.000000e+00> : vector<24x192xf32>
    %110 = tpu.matmul %108, %109, %cst_86 {dimension_numbers = #tpu.dot_dimension_numbers<[1], [0], [0], [1], [0, 0, 1, 1], [], []>} : vector<24x512xbf16>, vector<512x192xbf16>, vector<24x192xf32> -> vector<24x192xf32>
    %c0_87 = arith.constant 0 : index
    %c0_88 = arith.constant 0 : index
    %111 = vector.load %arg24[%c0_87, %c0_88] : memref<512x192xbf16, #tpu.memory_space<vmem>>, vector<512x192xbf16>
    %cst_89 = arith.constant dense<0.000000e+00> : vector<24x192xf32>
    %112 = tpu.matmul %108, %111, %cst_89 {dimension_numbers = #tpu.dot_dimension_numbers<[1], [0], [0], [1], [0, 0, 1, 1], [], []>} : vector<24x512xbf16>, vector<512x192xbf16>, vector<24x192xf32> -> vector<24x192xf32>
    %cst_90 = arith.constant dense<0.000000e+00> : vector<24x192xf32>
    %113 = tpu.matmul %106, %112, %cst_90 {dimension_numbers = #tpu.dot_dimension_numbers<[1], [0], [0], [1], [0, 0, 1, 1], [], []>} : vector<24x24xf32>, vector<24x192xf32>, vector<24x192xf32> -> vector<24x192xf32>
    %114 = arith.addf %110, %113 : vector<24x192xf32>
    %c0_91 = arith.constant 0 : index
    %c0_92 = arith.constant 0 : index
    %115 = vector.load %arg25[%c0_91, %c0_92] : memref<1x192xf32, #tpu.memory_space<vmem>>, vector<1x192xf32>
    %116 = vector.broadcast %115 : vector<1x192xf32> to vector<24x192xf32>
    %117 = arith.addf %114, %116 : vector<24x192xf32>
    %cst_93 = arith.constant 0.000000e+00 : f32
    %118 = vector.broadcast %cst_93 : f32 to vector<24x192xf32>
    %119 = arith.maximumf %117, %118 : vector<24x192xf32>
    %120 = arith.truncf %119 : vector<24x192xf32> to vector<24x192xbf16>
    %c0_94 = arith.constant 0 : index
    %c0_95 = arith.constant 0 : index
    %121 = vector.load %arg26[%c0_94, %c0_95] : memref<192x256xbf16, #tpu.memory_space<vmem>>, vector<192x256xbf16>
    %cst_96 = arith.constant dense<0.000000e+00> : vector<24x256xf32>
    %122 = tpu.matmul %120, %121, %cst_96 {dimension_numbers = #tpu.dot_dimension_numbers<[1], [0], [0], [1], [0, 0, 1, 1], [], []>} : vector<24x192xbf16>, vector<192x256xbf16>, vector<24x256xf32> -> vector<24x256xf32>
    %c0_97 = arith.constant 0 : index
    %c0_98 = arith.constant 0 : index
    %123 = vector.load %arg27[%c0_97, %c0_98] : memref<192x256xbf16, #tpu.memory_space<vmem>>, vector<192x256xbf16>
    %cst_99 = arith.constant dense<0.000000e+00> : vector<24x256xf32>
    %124 = tpu.matmul %120, %123, %cst_99 {dimension_numbers = #tpu.dot_dimension_numbers<[1], [0], [0], [1], [0, 0, 1, 1], [], []>} : vector<24x192xbf16>, vector<192x256xbf16>, vector<24x256xf32> -> vector<24x256xf32>
    %cst_100 = arith.constant dense<0.000000e+00> : vector<24x256xf32>
    %125 = tpu.matmul %106, %124, %cst_100 {dimension_numbers = #tpu.dot_dimension_numbers<[1], [0], [0], [1], [0, 0, 1, 1], [], []>} : vector<24x24xf32>, vector<24x256xf32>, vector<24x256xf32> -> vector<24x256xf32>
    %126 = arith.addf %122, %125 : vector<24x256xf32>
    %c0_101 = arith.constant 0 : index
    %c0_102 = arith.constant 0 : index
    %127 = vector.load %arg28[%c0_101, %c0_102] : memref<1x256xf32, #tpu.memory_space<vmem>>, vector<1x256xf32>
    %128 = vector.broadcast %127 : vector<1x256xf32> to vector<24x256xf32>
    %129 = arith.addf %126, %128 : vector<24x256xf32>
    %130 = vector.extract_strided_slice %129 {offsets = [0, 0], sizes = [22, 256], strides = [1, 1]} : vector<24x256xf32> to vector<22x256xf32>
    %c0_103 = arith.constant 0 : index
    %c0_104 = arith.constant 0 : index
    %c0_105 = arith.constant 0 : index
    %131 = vector.load %arg29[%c0_103, %c0_104, %c0_105] : memref<1x22x256xf32, #tpu.memory_space<vmem>>, vector<1x22x256xf32>
    %132 = vector.shape_cast %131 : vector<1x22x256xf32> to vector<22x256xf32>
    %133 = vector.shape_cast %130 : vector<22x256xf32> to vector<1x22x256xf32>
    tpu.vector_store %arg29[%c0_103, %c0_104, %c0_105], %133 {strides = array<i32>} : memref<1x22x256xf32, #tpu.memory_space<vmem>>, vector<1x22x256xf32>,
    return
  }
  func.func @transform_0(%arg0: i32) -> (i32, i32, i32) {
    %c0_i32 = arith.constant 0 : i32
    %c0_i32_0 = arith.constant 0 : i32
    %c0_i32_1 = arith.constant 0 : i32
    return %arg0, %c0_i32, %c0_i32_0 : i32, i32, i32
  }
  func.func @transform_1(%arg0: i32) -> (i32, i32, i32) {
    %c0_i32 = arith.constant 0 : i32
    %c0_i32_0 = arith.constant 0 : i32
    %c0_i32_1 = arith.constant 0 : i32
    return %arg0, %c0_i32, %c0_i32_0 : i32, i32, i32
  }
  func.func @transform_2(%arg0: i32) -> (i32, i32, i32) {
    %c0_i32 = arith.constant 0 : i32
    %c0_i32_0 = arith.constant 0 : i32
    %c0_i32_1 = arith.constant 0 : i32
    return %arg0, %c0_i32, %c0_i32_0 : i32, i32, i32
  }
  func.func @transform_3(%arg0: i32) -> (i32, i32, i32) {
    %c0_i32 = arith.constant 0 : i32
    %c0_i32_0 = arith.constant 0 : i32
    %c0_i32_1 = arith.constant 0 : i32
    return %arg0, %c0_i32, %c0_i32_0 : i32, i32, i32
  }
  func.func @transform_4(%arg0: i32) -> (i32, i32) {
    %c0_i32 = arith.constant 0 : i32
    %c0_i32_0 = arith.constant 0 : i32
    %c0_i32_1 = arith.constant 0 : i32
    return %c0_i32, %c0_i32_0 : i32, i32
  }
  func.func @transform_5(%arg0: i32) -> (i32, i32) {
    %c0_i32 = arith.constant 0 : i32
    %c0_i32_0 = arith.constant 0 : i32
    %c0_i32_1 = arith.constant 0 : i32
    return %c0_i32, %c0_i32_0 : i32, i32
  }
  func.func @transform_6(%arg0: i32) -> (i32, i32) {
    %c0_i32 = arith.constant 0 : i32
    %c0_i32_0 = arith.constant 0 : i32
    %c0_i32_1 = arith.constant 0 : i32
    return %c0_i32, %c0_i32_0 : i32, i32
  }
  func.func @transform_7(%arg0: i32) -> (i32, i32) {
    %c0_i32 = arith.constant 0 : i32
    %c0_i32_0 = arith.constant 0 : i32
    %c0_i32_1 = arith.constant 0 : i32
    return %c0_i32, %c0_i32_0 : i32, i32
  }
  func.func @transform_8(%arg0: i32) -> (i32, i32) {
    %c0_i32 = arith.constant 0 : i32
    %c0_i32_0 = arith.constant 0 : i32
    %c0_i32_1 = arith.constant 0 : i32
    return %c0_i32, %c0_i32_0 : i32, i32
  }
  func.func @transform_9(%arg0: i32) -> (i32, i32) {
    %c0_i32 = arith.constant 0 : i32
    %c0_i32_0 = arith.constant 0 : i32
    %c0_i32_1 = arith.constant 0 : i32
    return %c0_i32, %c0_i32_0 : i32, i32
  }
  func.func @transform_10(%arg0: i32) -> (i32, i32) {
    %c0_i32 = arith.constant 0 : i32
    %c0_i32_0 = arith.constant 0 : i32
    %c0_i32_1 = arith.constant 0 : i32
    return %c0_i32, %c0_i32_0 : i32, i32
  }
  func.func @transform_11(%arg0: i32) -> (i32, i32) {
    %c0_i32 = arith.constant 0 : i32
    %c0_i32_0 = arith.constant 0 : i32
    %c0_i32_1 = arith.constant 0 : i32
    return %c0_i32, %c0_i32_0 : i32, i32
  }
  func.func @transform_12(%arg0: i32) -> (i32, i32) {
    %c0_i32 = arith.constant 0 : i32
    %c0_i32_0 = arith.constant 0 : i32
    %c0_i32_1 = arith.constant 0 : i32
    return %c0_i32, %c0_i32_0 : i32, i32
  }
  func.func @transform_13(%arg0: i32) -> (i32, i32) {
    %c0_i32 = arith.constant 0 : i32
    %c0_i32_0 = arith.constant 0 : i32
    %c0_i32_1 = arith.constant 0 : i32
    return %c0_i32, %c0_i32_0 : i32, i32
  }
  func.func @transform_14(%arg0: i32) -> (i32, i32) {
    %c0_i32 = arith.constant 0 : i32
    %c0_i32_0 = arith.constant 0 : i32
    %c0_i32_1 = arith.constant 0 : i32
    return %c0_i32, %c0_i32_0 : i32, i32
  }
  func.func @transform_15(%arg0: i32) -> (i32, i32) {
    %c0_i32 = arith.constant 0 : i32
    %c0_i32_0 = arith.constant 0 : i32
    %c0_i32_1 = arith.constant 0 : i32
    return %c0_i32, %c0_i32_0 : i32, i32
  }
  func.func @transform_16(%arg0: i32) -> (i32, i32) {
    %c0_i32 = arith.constant 0 : i32
    %c0_i32_0 = arith.constant 0 : i32
    %c0_i32_1 = arith.constant 0 : i32
    return %c0_i32, %c0_i32_0 : i32, i32
  }
  func.func @transform_17(%arg0: i32) -> (i32, i32) {
    %c0_i32 = arith.constant 0 : i32
    %c0_i32_0 = arith.constant 0 : i32
    %c0_i32_1 = arith.constant 0 : i32
    return %c0_i32, %c0_i32_0 : i32, i32
  }
  func.func @transform_18(%arg0: i32) -> (i32, i32) {
    %c0_i32 = arith.constant 0 : i32
    %c0_i32_0 = arith.constant 0 : i32
    %c0_i32_1 = arith.constant 0 : i32
    return %c0_i32, %c0_i32_0 : i32, i32
  }
  func.func @transform_19(%arg0: i32) -> (i32, i32) {
    %c0_i32 = arith.constant 0 : i32
    %c0_i32_0 = arith.constant 0 : i32
    %c0_i32_1 = arith.constant 0 : i32
    return %c0_i32, %c0_i32_0 : i32, i32
  }
  func.func @transform_20(%arg0: i32) -> (i32, i32) {
    %c0_i32 = arith.constant 0 : i32
    %c0_i32_0 = arith.constant 0 : i32
    %c0_i32_1 = arith.constant 0 : i32
    return %c0_i32, %c0_i32_0 : i32, i32
  }
  func.func @transform_21(%arg0: i32) -> (i32, i32) {
    %c0_i32 = arith.constant 0 : i32
    %c0_i32_0 = arith.constant 0 : i32
    %c0_i32_1 = arith.constant 0 : i32
    return %c0_i32, %c0_i32_0 : i32, i32
  }
  func.func @transform_22(%arg0: i32) -> (i32, i32) {
    %c0_i32 = arith.constant 0 : i32
    %c0_i32_0 = arith.constant 0 : i32
    %c0_i32_1 = arith.constant 0 : i32
    return %c0_i32, %c0_i32_0 : i32, i32
  }
  func.func @transform_23(%arg0: i32) -> (i32, i32) {
    %c0_i32 = arith.constant 0 : i32
    %c0_i32_0 = arith.constant 0 : i32
    %c0_i32_1 = arith.constant 0 : i32
    return %c0_i32, %c0_i32_0 : i32, i32
  }
  func.func @transform_24(%arg0: i32) -> (i32, i32) {
    %c0_i32 = arith.constant 0 : i32
    %c0_i32_0 = arith.constant 0 : i32
    %c0_i32_1 = arith.constant 0 : i32
    return %c0_i32, %c0_i32_0 : i32, i32
  }
  func.func @transform_25(%arg0: i32) -> (i32, i32) {
    %c0_i32 = arith.constant 0 : i32
    %c0_i32_0 = arith.constant 0 : i32
    %c0_i32_1 = arith.constant 0 : i32
    return %c0_i32, %c0_i32_0 : i32, i32
  }
  func.func @transform_26(%arg0: i32) -> (i32, i32) {
    %c0_i32 = arith.constant 0 : i32
    %c0_i32_0 = arith.constant 0 : i32
    %c0_i32_1 = arith.constant 0 : i32
    return %c0_i32, %c0_i32_0 : i32, i32
  }
  func.func @transform_27(%arg0: i32) -> (i32, i32) {
    %c0_i32 = arith.constant 0 : i32
    %c0_i32_0 = arith.constant 0 : i32
    %c0_i32_1 = arith.constant 0 : i32
    return %c0_i32, %c0_i32_0 : i32, i32
  }
  func.func @transform_28(%arg0: i32) -> (i32, i32, i32) {
    %c0_i32 = arith.constant 0 : i32
    %c0_i32_0 = arith.constant 0 : i32
    %c0_i32_1 = arith.constant 0 : i32
    return %arg0, %c0_i32, %c0_i32_0 : i32, i32, i32
  }
}

</mosaic_0001>

<bundles_post_ra>
// kernel: decoder_apply.1
= control target key start
LH: loop header
LB: loop body
LE: loop exit
PB: predicated region body
PF: predicated region fallthrough
CT: control target
= control target key end

     0   :  { %s7387_s0 = inlined_call_operand.vmem [shape: bf16[2,4,32], index: 0, kind: input, shape index: {}]   ;;  %s7388_s1 = inlined_call_operand.vmem [shape: bf16[2,4,128], index: 1, kind: input, shape index: {}]   ;;  %s7389_s2 = inlined_call_operand.vmem [shape: bf16[2,6,256], index: 2, kind: input, shape index: {}]   ;;  %s7390_s3 = inlined_call_operand.vmem [shape: bf16[2,11,512], index: 3, kind: input, shape index: {}]   ;;  %s7391_s4 = inlined_call_operand.vmem [shape: bf16[32,128], index: 4, kind: input, shape index: {}]   ;;  %s7392_s5 = inlined_call_operand.vmem [shape: f32[1,128], index: 5, kind: input, shape index: {}]   ;;  %s7393_s6 = inlined_call_operand.vmem [shape: bf16[128,48], index: 6, kind: input, shape index: {}]   ;;  %s7394_s7 = inlined_call_operand.vmem [shape: bf16[128,48], index: 7, kind: input, shape index: {}]   ;;  %s7395_s8 = inlined_call_operand.vmem [shape: f32[1,48], index: 8, kind: input, shape index: {}]   ;;  %s7396_s9 = inlined_call_operand.vmem [shape: bf16[48,64], index: 9, kind: input, shape index: {}]   ;;  %s7397_s10 = inlined_call_operand.vmem [shape: bf16[48,64], index: 10, kind: input, shape index: {}]   ;;  %s7398_s11 = inlined_call_operand.vmem [shape: f32[1,64], index: 11, kind: input, shape index: {}]   ;;  %s7399_s12 = inlined_call_operand.vmem [shape: bf16[64,256], index: 12, kind: input, shape index: {}]   ;;  %s7400_s13 = inlined_call_operand.vmem [shape: f32[1,256], index: 13, kind: input, shape index: {}]   ;;  %s7401_s14 = inlined_call_operand.vmem [shape: bf16[256,96], index: 14, kind: input, shape index: {}]   ;;  %s7402_s15 = inlined_call_operand.vmem [shape: bf16[256,96], index: 15, kind: input, shape index: {}]   ;;  %s7403_s16 = inlined_call_operand.vmem [shape: f32[1,96], index: 16, kind: input, shape index: {}]   ;;  %s7404_s17 = inlined_call_operand.vmem [shape: bf16[96,128], index: 17, kind: input, shape index: {}]   ;;  %s7405_s18 = inlined_call_operand.vmem [shape: bf16[96,128], index: 18, kind: input, shape index: {}]   ;;  %s7406_s19 = inlined_call_operand.vmem [shape: f32[1,128], index: 19, kind: input, shape index: {}]   ;;  %s7407_s20 = inlined_call_operand.vmem [shape: bf16[128,512], index: 20, kind: input, shape index: {}]   ;;  %s7408_s21 = inlined_call_operand.vmem [shape: f32[1,512], index: 21, kind: input, shape index: {}]   ;;  %s7409_s22 = inlined_call_operand.vmem [shape: bf16[512,192], index: 22, kind: input, shape index: {}]   ;;  %s7410_s23 = inlined_call_operand.vmem [shape: bf16[512,192], index: 23, kind: input, shape index: {}]   ;;  %s7411_s24 = inlined_call_operand.vmem [shape: f32[1,192], index: 24, kind: input, shape index: {}]   ;;  %s7412_s25 = inlined_call_operand.vmem [shape: bf16[192,256], index: 25, kind: input, shape index: {}]   ;;  %s7413_s26 = inlined_call_operand.vmem [shape: bf16[192,256], index: 26, kind: input, shape index: {}]   ;;  %s7414_s27 = inlined_call_operand.vmem [shape: f32[1,256], index: 27, kind: input, shape index: {}]   ;;  %s7415_s28 = inlined_call_operand.vmem [shape: f32[2,22,256], index: 28, kind: output, shape index: {}]  }
   0x1   :  { %7427 = sst [smem:[#allocation6_spill]] %s7387_s0 }
   0x2   :  { %7428 = sst [smem:[#allocation7_spill]] %s7388_s1 }
   0x3   :  { %7429 = sst [smem:[#allocation8_spill]] %s7389_s2 }
   0x4   :  { %7430 = sst [smem:[#allocation9_spill]] %s7390_s3 }
   0x5   :  { %7431 = sst [smem:[#allocation10_spill]] %s7391_s4 }
   0x6   :  { %7432 = sst [smem:[#allocation11_spill]] %s7392_s5 }
   0x7   :  { %7433 = sst [smem:[#allocation12_spill]] %s7393_s6 }
   0x8   :  { %7434 = sst [smem:[#allocation13_spill]] %s7394_s7 }
   0x9   :  { %7435 = sst [smem:[#allocation14_spill]] %s7395_s8  ;;  %s5584_s8 = smov 0  }
   0xa   :  { %7436 = sst [smem:[#allocation15_spill]] %s7396_s9 }
   0xb   :  { %7437 = sst [smem:[#allocation16_spill]] %s7397_s10 }
   0xc   :  { %7438 = sst [smem:[#allocation17_spill]] %s7398_s11 }
   0xd   :  { %7439 = sst [smem:[#allocation18_spill]] %s7399_s12 }
   0xe   :  { %7440 = sst [smem:[#allocation19_spill]] %s7409_s22 }
   0xf   :  { %7441 = sst [smem:[#allocation20_spill]] %s7411_s24 }
  0x10   :  { %7442 = sst [smem:[#allocation21_spill]] %s7412_s25 }
  0x11   :  { %7443 = sst [smem:[#allocation22_spill]] %s7413_s26 }
  0x12   :  { %7444 = sst [smem:[#allocation23_spill]] %s7414_s27 }
  0x13   :  { %7445 = sst [smem:[#allocation24_spill]] %s7415_s28 }
  0x14 LB: > { %7446 = sst [smem:[#allocation5_spill]] %s5436_s8  ;;  %s3943_s5 = sadd.s32 4294967295, %s5436_s8   ;;  %s5436_s8 = sphi %s5584_s8, %s38_s8  }
  0x15   : > { %p3947_p0 = scmp.ge.s32.totalorder %s5436_s8, 1  ;;  %p790_p1 = scmp.lt.s32.totalorder %s5436_s8, 3 }
  0x17   : > { %p791_p2 = pnand %p3947_p0, %p790_p1 }
  0x18   : > { %s7447_s3 = sld [smem:[#allocation10_spill]] (!%p791_p2)  ;;  %p877_p3 = scmp.lt.s32.totalorder (!%p791_p2), %s3943_s5, 1 }
  0x19   : > { %794 = sbr.rel (%p791_p2) target bundleno = 2332 (0x91c), region = 132  ;;  %s7448_s0 = sld [smem:[#allocation13_spill]] (!%p791_p2) }
  0x1a   : > { %s7449_s2 = sld [smem:[#allocation12_spill]] (!%p791_p2) }
  0x1b   : > { %s7450_s7 = sld [smem:[#allocation6_spill]] (!%p791_p2) }
  0x1c   : > { %s7451_s28 = sld [smem:[#allocation7_spill]] (!%p791_p2) }
  0x1d   : > { %s7452_s4 = sld [smem:[#allocation8_spill]] (!%p791_p2) }
  0x1e   : > { %v5132_v0 = vld [vmem:[%s7447_s3 + $0x8] sm:$0xff]  ;;  %v5131_v3 = vld [vmem:[%s7447_s3] sm:$0xff]  ;;  %s7468_s5 = smov (!%p877_p3, %s3943_s5), 1  ;;  %vm922_vm0 = vcmask 261120   ;;  %s7453_s29 = sld [smem:[#allocation9_spill]]  ;;  %vm2148_vm1 = vcmask 1042432   ;;  %v943_v57 = vlaneseq }
  0x1f   : > { %v5148_v1 = vld [vmem:[%s7448_s0 + $0x38] sm:$0xff]  ;;  %932 = vmatpush.bf16.msra.mxu0 %v5132_v0  ;;  %v5147_v4 = vld [vmem:[%s7448_s0 + $0x30] sm:$0xff]  ;;  %s3948_s6 = sshll.u32 %s7468_s5, 1  ;;  %s5129_s10 = sshll.u32 %s7468_s5, 3  ;;  %v5146_v8 = vld [vmem:[%s7448_s0 + $0x28] sm:$0xff]  ;;  %v5438_v56 = vmov 0.0  }
  0x20   : > { %v5140_v2 = vld [vmem:[%s7449_s2 + $0x38] sm:$0xff]  ;;  %1033 = vmatpush.bf16.msra.mxu1 %v5148_v1  ;;  %v5139_v5 = vld [vmem:[%s7449_s2 + $0x30] sm:$0xff]  ;;  %s5130_s26 = sshll.u32 %s7468_s5, 5  ;;  %v5138_v11 = vld [vmem:[%s7449_s2 + $0x28] sm:$0xff]  ;;  %1341 = vst [vmem:[#allocation3 + $0x18] sm:$0xf0] %v5438_v56 }
  0x21   : > { %1118 = vmatpush.bf16.msra.mxu3 %v5140_v2  ;;  %s880_s12 = scalar_lea.vmem %s7450_s7, %s3948_s6  ;;  %v5145_v25 = vld [vmem:[%s7448_s0 + $0x20] sm:$0xff]  ;;  %v5144_v35 = vld [vmem:[%s7448_s0 + $0x18] sm:$0xff]  ;;  %v5143_v44 = vld [vmem:[%s7448_s0 + $0x10] sm:$0xff]  ;;  %1342 = vst [vmem:[#allocation3 + $0x8] sm:$0xf0] %v5438_v56  ;;  %v5673_v58 = vshrl.u32 %v943_v57, 7 }
  0x22   : > { %s884_s27 = scalar_lea.vmem %s7451_s28, %s3948_s6  ;;  %v901_v6 = vld [vmem:[%s880_s12] sm:$0x3]  ;;  %v5136_v38 = vld [vmem:[%s7449_s2 + $0x18] sm:$0xff]  ;;  %v5135_v45 = vld [vmem:[%s7449_s2 + $0x10] sm:$0xff]  ;;  %2177 = vst [vmem:[#allocation4 + $0x20] sm:$0xc0] %v5438_v56 }
  0x23   : > { %933 = vmatpush.bf16.msra.mxu0 %v5131_v3  ;;  %s889_s25 = scalar_lea.vmem %s7452_s4, %s5129_s10  ;;  %v940_v7 = vld [vmem:[%s884_s27] sm:$0x3]  ;;  %v5142_v46 = vld [vmem:[%s7448_s0 + $0x8] sm:$0xff]  ;;  %s7454_s27 = sld [smem:[#allocation11_spill]]  ;;  %2178 = vst [vmem:[#allocation4 + $0x48] sm:$0xc0] %v5438_v56 }
  0x24   : > { %1034 = vmatpush.bf16.msra.mxu1 %v5147_v4  ;;  %s894_s7 = scalar_lea.vmem %s7453_s29, %s5130_s26  ;;  %v941_v9 = vunpack.c.l.bf16 %v940_v7  ;;  %v1328_v10 = vld [vmem:[%s889_s25] sm:$0x77]  ;;  %v5134_v47 = vld [vmem:[%s7449_s2 + $0x8] sm:$0xff]  ;;  %2179 = vst [vmem:[#allocation4 + $0x58] sm:$0xc0] %v5438_v56  ;;  %v5675_v59 = vand.u32 127, %v943_v57 }
  0x25   : > { %1119 = vmatpush.bf16.msra.mxu3 %v5139_v5  ;;  %v1329_v12 = vunpack.c.l.bf16 %v1328_v10  ;;  %v1330_v13 = vunpack.c.h.bf16 %v1328_v10  ;;  %v2128_v14 = vld [vmem:[%s894_s7] sm:$0xff]  ;;  %v2129_v15 = vld [vmem:[%s894_s7 + $0x8] sm:$0xff]  ;;  %v2130_v16 = vld [vmem:[%s894_s7 + $0x10] sm:$0x33]  ;;  %2180 = vst [vmem:[#allocation4 + $0x10] sm:$0xc0] %v5438_v56 }
  0x26   : > { %3963 = vmatmul.msk.bf16.vlgmr.msra.gmra.mxu0 %vm922_vm0, %v901_v6  ;;  %942 = vst [vmem:[#allocation2 + $0x4] sm:$0xf] %v941_v9  ;;  %v2131_v17 = vld [vmem:[%s894_s7 + $0x18] sm:$0x33]  ;;  %v2132_v18 = vunpack.c.l.bf16 %v2128_v14  ;;  %v2133_v19 = vunpack.c.h.bf16 %v2128_v14  ;;  %v2134_v20 = vunpack.c.l.bf16 %v2129_v15  ;;  %v2136_v23 = vunpack.c.l.bf16 %v2130_v16  ;;  %v5137_v28 = vld [vmem:[%s7449_s2 + $0x20] sm:$0xff]  ;;  %s7455_s10 = sld [smem:[#allocation16_spill]] }
  0x27   : > { %v1333_v21 = vrot.slane %v1329_v12, 2  ;;  %v1334_v22 = vrot.slane %v1330_v13, 2  ;;  %v2137_v24 = vunpack.c.h.bf16 %v2130_v16  ;;  %v2135_v26 = vunpack.c.h.bf16 %v2129_v15  ;;  %v5141_v48 = vld [vmem:[%s7448_s0] sm:$0xff]  ;;  %s7456_s29 = sld [smem:[#allocation15_spill]]  ;;  %s5415_s25 = smul.u32 48, %s7468_s5 }
  0x28   : > { %1035 = vmatpush.bf16.msra.mxu1 %v5146_v8  ;;  %v2138_v27 = vunpack.c.l.bf16 %v2131_v17  ;;  %v2139_v29 = vunpack.c.h.bf16 %v2131_v17  ;;  %v2149_v30 = vrot.slane %v2132_v18, 5  ;;  %v2150_v31 = vrot.slane %v2133_v19, 5  ;;  %v5133_v49 = vld [vmem:[%s7449_s2] sm:$0xff]  ;;  %s7457_s26 = sld [smem:[#allocation14_spill]] }
  0x29   : > { %1120 = vmatpush.bf16.msra.mxu3 %v5138_v11  ;;  %1337 = vst [vmem:[#allocation3 + $0x10] sm:$0xc0] %v1333_v21  ;;  %v2153_v32 = vrot.slane %v2136_v23, 5  ;;  %v2151_v33 = vrot.slane %v2134_v20, 5  ;;  %v2155_v34 = vrot.slane %v2137_v24, 5  ;;  %v2152_v36 = vrot.slane %v2135_v26, 5 }
  0x2a   : > { %1338 = vst [vmem:[#allocation3] sm:$0xc0] %v1334_v22  ;;  %v2157_v37 = vrot.slane %v2138_v27, 5  ;;  %v2159_v39 = vrot.slane %v2139_v29, 5  ;;  %v5425_v50 = vld [vmem:[%s7454_s27] ss:$0 sm:$0xff] }
  0x2b   : > { %1339 = vst [vmem:[#allocation3 + $0x18] sm:$0xf] %v1333_v21  ;;  %v2154_v40 = vsel %vm2148_vm1, %v2149_v30, %v2153_v32  ;;  %v2156_v41 = vsel %vm2148_vm1, %v2150_v31, %v2155_v34  ;;  %v947_v60 = vadd.s32 1, %v5673_v58  ;;  %vm1046_vm3 = vcmask 64512   ;;  %s7458_s6 = sld [smem:[#allocation18_spill]] }
  0x2c   : > { %1036 = vmatpush.bf16.msra.mxu1 %v5145_v25  ;;  %1340 = vst [vmem:[#allocation3 + $0x8] sm:$0xf] %v1334_v22  ;;  %v2158_v42 = vsel %vm2148_vm1, %v2151_v33, %v2157_v37  ;;  %v2160_v43 = vsel %vm2148_vm1, %v2152_v36, %v2159_v39  ;;  %v5154_v62 = vld [vmem:[%s7455_s10 + $0x10] sm:$0xff]  ;;  %v5153_v3 = vld [vmem:[%s7455_s10 + $0x8] sm:$0xff]  ;;  %v5152_v4 = vld [vmem:[%s7455_s10] sm:$0xff]  ;;  %vm1168_vm4 = vcmask 392192  }
  0x2d   : > { %1121 = vmatpush.bf16.msra.mxu3 %v5137_v28  ;;  %2169 = vst [vmem:[#allocation4 + $0x30] sm:$0xf8] %v2149_v30  ;;  %vm948_vm2 = vcmp.eq.s32.totalorder %v5675_v59, %v947_v60  ;;  %v5151_v5 = vld [vmem:[%s7456_s29 + $0x10] sm:$0xff]  ;;  %v5150_v6 = vld [vmem:[%s7456_s29 + $0x8] sm:$0xff]  ;;  %v5149_v7 = vld [vmem:[%s7456_s29] sm:$0xff]  ;;  %s7459_s27 = sld [smem:[#allocation17_spill]] }
  0x2e   : > { %2170 = vst [vmem:[#allocation4 + $0x28] sm:$0xf8] %v2150_v31  ;;  %v5680_v61 = vsel %vm948_vm2, 1.0, %v5438_v56  ;;  %v5426_v8 = vld [vmem:[%s7457_s26] ss:$0 sm:$0xff]  ;;  %vm1296_vm5 = vcmask 523264  }
  0x2f   : > { %2171 = vst [vmem:[#allocation4 + $0x8] sm:$0xf8] %v2151_v33  ;;  %vm1542_vm6 = vcmask 130048   ;;  %vm1764_vm8 = vcmask 785408   ;;  %s7460_s26 = sld [smem:[#allocation19_spill]]  ;;  %vm2798_vm9 = vcmask 195584  }
  0x30   : > { %1037 = vmatpush.bf16.msra.mxu1 %v5144_v35  ;;  %2172 = vst [vmem:[#allocation4 + $0x40] sm:$0xf8] %v2152_v36  ;;  %s7461_s24 = sld [smem:[#allocation22_spill]] }
  0x31   : > { %1122 = vmatpush.bf16.msra.mxu3 %v5136_v38  ;;  %2173 = vst [vmem:[#allocation4 + $0x20] sm:$0x3f] %v2154_v40  ;;  %v5161_v14 = vld [vmem:[%s7458_s6 + $0x34] sm:$0xf]  ;;  %v4085_v15 = vld [vmem:[%s7458_s6 + $0x38] sm:$0xf0] }
  0x32   : > { %2174 = vst [vmem:[#allocation4 + $0x48] sm:$0x3f] %v2156_v41  ;;  %v4088_v16 = vor.u32 %v5161_v14, %v4085_v15  ;;  %v5159_v17 = vld [vmem:[%s7458_s6 + $0x24] sm:$0xf]  ;;  %v4077_v18 = vld [vmem:[%s7458_s6 + $0x28] sm:$0xf0] }
  0x33   : > { %2175 = vst [vmem:[#allocation4 + $0x58] sm:$0x3f] %v2158_v42  ;;  %v4083_v19 = vld [vmem:[%s7458_s6 + $0x30] sm:$0xf]  ;;  %v5162_v20 = vld [vmem:[%s7458_s6 + $0x34] sm:$0xf0]  ;;  %v4080_v21 = vor.u32 %v5159_v17, %v4077_v18 }
  0x34   : > { %2176 = vst [vmem:[#allocation4 + $0x10] sm:$0x3f] %v2160_v43  ;;  %1038 = vmatpush.bf16.msra.mxu1 %v5143_v44  ;;  %v4084_v22 = vor.u32 %v5162_v20, %v4083_v19  ;;  %v4075_v24 = vld [vmem:[%s7458_s6 + $0x20] sm:$0xf]  ;;  %v5160_v25 = vld [vmem:[%s7458_s6 + $0x24] sm:$0xf0] }
  0x35   : > { %1123 = vmatpush.bf16.msra.mxu3 %v5135_v45  ;;  %v4076_v26 = vor.u32 %v5160_v25, %v4075_v24  ;;  %v4067_v30 = vld [vmem:[%s7458_s6 + $0x10] sm:$0xf]  ;;  %v5158_v31 = vld [vmem:[%s7458_s6 + $0x14] sm:$0xf0]  ;;  %v5157_v32 = vld [vmem:[%s7458_s6 + $0x14] sm:$0xf] }
  0x36   : > { %v4068_v33 = vor.u32 %v5158_v31, %v4067_v30  ;;  %v4069_v34 = vld [vmem:[%s7458_s6 + $0x18] sm:$0xf0]  ;;  %v4059_v36 = vld [vmem:[%s7458_s6] sm:$0xf]  ;;  %v5156_v37 = vld [vmem:[%s7458_s6 + $0x4] sm:$0xf0] }
  0x37   : > { %v4072_v35 = vor.u32 %v5157_v32, %v4069_v34  ;;  %v4060_v38 = vor.u32 %v5156_v37, %v4059_v36  ;;  %v5155_v39 = vld [vmem:[%s7458_s6 + $0x4] sm:$0xf]  ;;  %v4061_v40 = vld [vmem:[%s7458_s6 + $0x8] sm:$0xf0]  ;;  %v5186_v42 = vld [vmem:[%s7402_s15 + $0x38] sm:$0xff]  ;;  %v1343_v30 = vadd.s32 8, %v5673_v58 }
  0x38   : > { %1039 = vmatpush.bf16.msra.mxu1 %v5142_v46  ;;  %v4064_v41 = vor.u32 %v5155_v39, %v4061_v40  ;;  %v5170_v43 = vld [vmem:[%s7401_s14 + $0x38] sm:$0xff]  ;;  %v5185_v45 = vld [vmem:[%s7402_s15 + $0x30] sm:$0xff]  ;;  %v1350_v19 = vld [vmem:[#allocation3 + $0x18] sm:$0xff]  ;;  %s7462_s22 = sld [smem:[#allocation21_spill]] }
  0x39   : > { %1124 = vmatpush.bf16.msra.mxu3 %v5134_v47  ;;  %v5194_v44 = vld [vmem:[%s7402_s15 + $0x78] sm:$0xff]  ;;  %v5169_v46 = vld [vmem:[%s7401_s14 + $0x30] sm:$0xff]  ;;  %v1344_v34 = vadd.s32 1, %v1343_v30  ;;  %v5176_v37 = vld [vmem:[%s7401_s14 + $0x68] sm:$0xff]  ;;  %s7463_s1 = sld [smem:[#allocation20_spill]] }
  0x3a   : > { %v5193_v47 = vld [vmem:[%s7402_s15 + $0x70] sm:$0xff]  ;;  %v5174_v39 = vld [vmem:[%s7401_s14 + $0x58] sm:$0xff]  ;;  %s7464_s8 = sld [smem:[#allocation23_spill]] }
  0x3b   : > { %vm1345_vm7 = vcmp.eq.s32.totalorder %v5675_v59, %v1344_v34  ;;  %v5173_v40 = vld [vmem:[%s7401_s14 + $0x50] sm:$0xff]  ;;  %v4366_v34 = vld [vmem:[%s7407_s20 + $0xb8] sm:$0xf0]  ;;  %s7465_s12 = sld [smem:[#allocation24_spill]] }
  0x3c   : > { %1040 = vmatpush.bf16.msra.mxu1 %v5141_v48  ;;  %v5184_v48 = vld [vmem:[%s7402_s15 + $0x28] sm:$0xff]  ;;  %v5846_v36 = vsel %vm1345_vm7, 1.0, %v5438_v56  ;;  %v4358_v30 = vld [vmem:[%s7407_s20 + $0xb0] sm:$0xf0] }
  0x3d   : > { %1125 = vmatpush.bf16.msra.mxu3 %v5133_v49  ;;  %v5168_v49 = vld [vmem:[%s7401_s14 + $0x28] sm:$0xff] }
  0x40   : > { %1514 = vmatpush.bf16.msrb.mxu1 %v5186_v42  ;;  %v5171_v42 = vld [vmem:[%s7401_s14 + $0x40] sm:$0xff] }
  0x41   : > { %1528 = vmatpush.bf16.msrb.mxu3 %v5194_v44  ;;  %v5200_v44 = vld [vmem:[%s7404_s17 + $0x28] sm:$0xff] }
  0x44   : > { %1515 = vmatpush.bf16.msrb.mxu1 %v5185_v45  ;;  %v5205_v45 = vld [vmem:[%s7405_s18 + $0x20] sm:$0xff] }
  0x45   : > { %1529 = vmatpush.bf16.msrb.mxu3 %v5193_v47  ;;  %v5204_v47 = vld [vmem:[%s7405_s18 + $0x18] sm:$0xff] }
  0x48   : > { %1516 = vmatpush.bf16.msrb.mxu1 %v5184_v48  ;;  %v5198_v48 = vld [vmem:[%s7404_s17 + $0x18] sm:$0xff] }
  0xa3   : > { %v935_v51 = vpop.f32.mrf.mxu0 }
  0xa4   : > { %v936_v52 = vadd.f32 %v5425_v50, %v935_v51  ;;  %v5192_v50 = vld [vmem:[%s7402_s15 + $0x68] sm:$0xff]  ;;  %v5183_v51 = vld [vmem:[%s7402_s15 + $0x20] sm:$0xff] }
  0xa5   : > { %1530 = vmatpush.bf16.msrb.mxu3 %v5192_v50  ;;  %1517 = vmatpush.bf16.msrb.mxu1 %v5183_v51  ;;  %v5197_v50 = vld [vmem:[%s7404_s17 + $0x10] sm:$0xff]  ;;  %v5202_v51 = vld [vmem:[%s7405_s18 + $0x8] sm:$0xff] }
  0xa6   : > { %939 = vst [vmem:[#allocation2] sm:$0xf] %v936_v52  ;;  %v5167_v52 = vld [vmem:[%s7401_s14 + $0x20] sm:$0xff] }
  0xab   : > { %v937_v53 = vpop.f32.mrf.mxu0 }
  0xac   : > { %v5182_v53 = vld [vmem:[%s7402_s15 + $0x18] sm:$0xff] }
  0xad   : > { %v951_v54 = vld [vmem:[#allocation2] sm:$0xff]  ;;  %1518 = vmatpush.bf16.msrb.mxu1 %v5182_v53 }
  0xae   : > { %v952_v55 = vpack.c.bf16 %v951_v54, %v951_v54  ;;  %v5166_v54 = vld [vmem:[%s7401_s14 + $0x18] sm:$0xff]  ;;  %v5201_v53 = vld [vmem:[%s7405_s18] sm:$0xff] }
  0xb0   : > { %1041 = vmatmul.bf16.vlgmr.msra.gmra.mxu1 %v952_v55  ;;  %1126 = vmatmul.bf16.vlgmr.msra.gmra.mxu3 %v952_v55  ;;  %v5427_v55 = vld [vmem:[%s7459_s27] ss:$0 sm:$0xff] }
 0x12d   : > { %v1042_v63 = vpop.f32.mrf.mxu1 }
 0x12e   : > { %1065 = vmatpush.msra.mxu2 %v1042_v63 }
 0x12f   : > { %3997 = vmatmul.msk.f32.vlgmr.msra.gmra.mxu2 %vm1046_vm3, %v5680_v61 }
 0x130   : > { %1177 = vmatpush.bf16.msrb.mxu2 %v5154_v62 }
 0x133   : > { %v1127_v0 = vpop.f32.mrf.mxu3 }
 0x134   : > { %1178 = vmatpush.bf16.msrb.mxu2 %v5153_v3  ;;  %v5190_v3 = vld [vmem:[%s7402_s15 + $0x58] sm:$0xff] }
 0x135   : > { %v1044_v1 = vpop.f32.mrf.mxu1 }
 0x136   : > { %v5181_v1 = vld [vmem:[%s7402_s15 + $0x10] sm:$0xff] }
 0x137   : > { %1519 = vmatpush.bf16.msrb.mxu1 %v5181_v1  ;;  %v5428_v1 = vld [vmem:[%s7403_s16] ss:$0 sm:$0xff] }
 0x138   : > { %1179 = vmatpush.bf16.msrb.mxu2 %v5152_v4  ;;  %v5180_v4 = vld [vmem:[%s7402_s15 + $0x8] sm:$0xff] }
 0x13b   : > { %v1129_v2 = vpop.f32.mrf.mxu3  ;;  %1520 = vmatpush.bf16.msrb.mxu1 %v5180_v4 }
 0x13c   : > { %1228 = vmatpush.bf16.msra.mxu2 %v5151_v5  ;;  %v5165_v2 = vld [vmem:[%s7401_s14 + $0x10] sm:$0xff]  ;;  %v5164_v5 = vld [vmem:[%s7401_s14 + $0x8] sm:$0xff] }
 0x140   : > { %1229 = vmatpush.bf16.msra.mxu2 %v5150_v6  ;;  %v5189_v6 = vld [vmem:[%s7402_s15 + $0x50] sm:$0xff] }
 0x144   : > { %1230 = vmatpush.bf16.msra.mxu2 %v5149_v7  ;;  %v5179_v7 = vld [vmem:[%s7402_s15] sm:$0xff] }
 0x145   : > { %1521 = vmatpush.bf16.msrb.mxu1 %v5179_v7 }
 0x1b2   : > { %v1067_v9 = vpop.f32.mrf.mxu2 }
 0x1b3   : > { %v1128_v10 = vadd.f32 %v1127_v0, %v1067_v9  ;;  %v5191_v0 = vld [vmem:[%s7402_s15 + $0x60] sm:$0xff]  ;;  %v5188_v9 = vld [vmem:[%s7402_s15 + $0x48] sm:$0xff] }
 0x1b4   : > { %1531 = vmatpush.bf16.msrb.mxu3 %v5191_v0 }
 0x1b5   : > { %v1135_v11 = vadd.f32 %v5426_v8, %v1128_v10  ;;  %v5163_v8 = vld [vmem:[%s7401_s14] sm:$0xff] }
 0x1b6   : > { %v5187_v10 = vld [vmem:[%s7402_s15 + $0x40] sm:$0xff] }
 0x1b7   : > { %v1136_v12 = vmax.f32 %v1135_v11, 0.0  ;;  %v1250_v11 = vld [vmem:[%s7400_s13] sm:$0x3] }
 0x1b8   : > { %1532 = vmatpush.bf16.msrb.mxu3 %v5190_v3  ;;  %v1253_v15 = vperm.slane %v1250_v11, 1 }
 0x1b9   : > { %v1137_v13 = vpack.c.bf16 %v1136_v12, %v1136_v12  ;;  %v1252_v12 = vperm.slane %v1250_v11, 0  ;;  %v5235_v11 = vld [vmem:[%s7407_s20 + $0xe4] sm:$0xf] }
 0x1bb   : > { %4042 = vmatmul.msk.bf16.vlgmr.msrb.gmra.mxu2 %vm1168_vm4, %v1137_v13 }
 0x1bc   : > { %1317 = vmatpush.bf16.msrb.mxu2 %v4088_v16  ;;  %1533 = vmatpush.bf16.msrb.mxu3 %v5189_v6 }
 0x1c0   : > { %1318 = vmatpush.bf16.msrb.mxu2 %v4080_v21  ;;  %1534 = vmatpush.bf16.msrb.mxu3 %v5188_v9 }
 0x1c4   : > { %1319 = vmatpush.bf16.msrb.mxu2 %v4072_v35  ;;  %1535 = vmatpush.bf16.msrb.mxu3 %v5187_v10  ;;  %v5177_v35 = vld [vmem:[%s7401_s14 + $0x70] sm:$0xff] }
 0x1c8   : > { %1320 = vmatpush.bf16.msrb.mxu2 %v4064_v41  ;;  %v5172_v41 = vld [vmem:[%s7401_s14 + $0x48] sm:$0xff] }
 0x1cb   : > { %4056 = vmatmul.msk.bf16.vlgmr.msra.gmra.mxu2 %vm1168_vm4, %v1137_v13 }
 0x1cc   : > { %1667 = vmatpush.bf16.msra.mxu2 %v5170_v43  ;;  %v5206_v43 = vld [vmem:[%s7405_s18 + $0x28] sm:$0xff] }
 0x1cd   : > { %1770 = vmatpush.bf16.msra.mxu1 %v5206_v43  ;;  %v5224_v43 = vld [vmem:[%s7407_s20 + $0x8c] sm:$0xf] }
 0x1d0   : > { %1668 = vmatpush.bf16.msra.mxu2 %v5169_v46  ;;  %v5199_v46 = vld [vmem:[%s7404_s17 + $0x20] sm:$0xff] }
 0x1d1   : > { %1771 = vmatpush.bf16.msra.mxu1 %v5205_v45 }
 0x1d4   : > { %1669 = vmatpush.bf16.msra.mxu2 %v5168_v49  ;;  %v5203_v49 = vld [vmem:[%s7405_s18 + $0x10] sm:$0xff] }
 0x1d5   : > { %1772 = vmatpush.bf16.msra.mxu1 %v5204_v47 }
 0x1d8   : > { %1670 = vmatpush.bf16.msra.mxu2 %v5167_v52  ;;  %v5196_v52 = vld [vmem:[%s7404_s17 + $0x8] sm:$0xff] }
 0x1d9   : > { %1773 = vmatpush.bf16.msra.mxu1 %v5203_v49  ;;  %v4388_v49 = vld [vmem:[%s7407_s20 + $0xe0] sm:$0xf] }
 0x1dc   : > { %1671 = vmatpush.bf16.msra.mxu2 %v5166_v54  ;;  %v5195_v54 = vld [vmem:[%s7404_s17] sm:$0xff] }
 0x1dd   : > { %1774 = vmatpush.bf16.msra.mxu1 %v5202_v51 }
 0x1e0   : > { %1672 = vmatpush.bf16.msra.mxu2 %v5165_v2 }
 0x1e1   : > { %1775 = vmatpush.bf16.msra.mxu1 %v5201_v53  ;;  %v4372_v53 = vld [vmem:[%s7407_s20 + $0xc0] sm:$0xf] }
 0x1e4   : > { %1673 = vmatpush.bf16.msra.mxu2 %v5164_v5 }
 0x1e8   : > { %1674 = vmatpush.bf16.msra.mxu2 %v5163_v8 }
 0x23e   : > { %v1181_v23 = vpop.f32.mrf.mxu2 }
 0x23f   : > { %1200 = vmatpush.msrb.mxu0 %v1181_v23  ;;  %v1351_v23 = vld [vmem:[#allocation3 + $0x8] sm:$0xff] }
 0x240   : > { %4043 = vmatmul.msk.f32.vlgmr.msrb.gmra.mxu0 %vm1046_vm3, %v5680_v61 }
 0x241   : > { %1304 = vmatpush.bf16.msra.mxu0 %v4084_v22 }
 0x245   : > { %1305 = vmatpush.bf16.msra.mxu0 %v4076_v26 }
 0x246   : > { %v1183_v27 = vpop.f32.mrf.mxu2 }
 0x249   : > { %1306 = vmatpush.bf16.msra.mxu0 %v4068_v33  ;;  %v5178_v33 = vld [vmem:[%s7401_s14 + $0x78] sm:$0xff] }
 0x24d   : > { %1307 = vmatpush.bf16.msra.mxu0 %v4060_v38  ;;  %v5175_v38 = vld [vmem:[%s7401_s14 + $0x60] sm:$0xff] }
 0x24e   : > { %v1232_v28 = vpop.f32.mrf.mxu2 }
 0x256   : > { %v1234_v29 = vpop.f32.mrf.mxu2 }
 0x2bd   : > { %v1202_v57 = vpop.f32.mrf.mxu0 }
 0x2be   : > { %v1233_v60 = vadd.f32 %v1232_v28, %v1202_v57 }
 0x2c0   : > { %v1240_v62 = vadd.f32 %v5427_v55, %v1233_v60 }
 0x2c2   : > { %v1241_v63 = vpack.c.bf16 %v1240_v62, %v1240_v62 }
 0x2c4   : > { %4089 = vmatmul.msk.bf16.vlgmr.msra.gmra.mxu0 %vm1296_vm5, %v1241_v63  ;;  %4090 = vmatmul.msk.bf16.vlgmr.msrb.gmra.mxu2 %vm1296_vm5, %v1241_v63 }
 0x2c5   : > { %1843 = vmatpush.bf16.msrb.mxu2 %v5200_v44  ;;  %v4350_v44 = vld [vmem:[%s7407_s20 + $0x98] sm:$0xf0] }
 0x2c9   : > { %1844 = vmatpush.bf16.msrb.mxu2 %v5199_v46 }
 0x2cd   : > { %1845 = vmatpush.bf16.msrb.mxu2 %v5198_v48  ;;  %v4353_v48 = vor.u32 %v5224_v43, %v4350_v44  ;;  %v4278_v43 = vld [vmem:[%s7407_s20 + $0x10] sm:$0xf0]  ;;  %v4284_v44 = vld [vmem:[%s7407_s20 + $0x8] sm:$0xf] }
 0x2d1   : > { %1846 = vmatpush.bf16.msrb.mxu2 %v5197_v50  ;;  %v5237_v50 = vld [vmem:[%s7407_s20 + $0xec] sm:$0xf0] }
 0x2d5   : > { %1847 = vmatpush.bf16.msrb.mxu2 %v5196_v52  ;;  %v4389_v52 = vor.u32 %v5237_v50, %v4388_v49  ;;  %v4286_v49 = vld [vmem:[%s7407_s20 + $0x18] sm:$0xf0] }
 0x2d9   : > { %1848 = vmatpush.bf16.msrb.mxu2 %v5195_v54  ;;  %v5233_v54 = vld [vmem:[%s7407_s20 + $0xcc] sm:$0xf0] }
 0x341   : > { %v1309_v13 = vpop.f32.mrf.mxu0 }
 0x342   : > { %v1310_v14 = vadd.f32 %v1309_v13, %v1252_v12  ;;  %v4390_v12 = vld [vmem:[%s7407_s20 + $0xf0] sm:$0xf0]  ;;  %v4396_v13 = vld [vmem:[%s7407_s20 + $0xe8] sm:$0xf] }
 0x344   : > { %1326 = vst [vmem:[#allocation3 + $0x10] sm:$0x3f] %v1310_v14  ;;  %v5238_v14 = vld [vmem:[%s7407_s20 + $0xf4] sm:$0xf0] }
 0x347   : > { %v1322_v16 = vpop.f32.mrf.mxu2 }
 0x348   : > { %v1323_v17 = vadd.f32 %v1322_v16, %v1253_v15  ;;  %v4393_v15 = vor.u32 %v5235_v11, %v4390_v12  ;;  %v4397_v16 = vor.u32 %v5238_v14, %v4396_v13  ;;  %v5220_v11 = vld [vmem:[%s7407_s20 + $0x6c] sm:$0xf]  ;;  %v4334_v12 = vld [vmem:[%s7407_s20 + $0x78] sm:$0xf0]  ;;  %v4308_v14 = vld [vmem:[%s7407_s20 + $0x40] sm:$0xf] }
 0x349   : > { %v1311_v18 = vpop.f32.mrf.mxu0  ;;  %v4337_v13 = vor.u32 %v5220_v11, %v4334_v12  ;;  %v4573_v11 = vld [vmem:[%s7410_s23 + $0x150] sm:$0xf]  ;;  %v5346_v12 = vld [vmem:[%s7410_s23 + $0x154] sm:$0xf0] }
 0x34a   : > { %1327 = vst [vmem:[#allocation3] sm:$0x3f] %v1323_v17  ;;  %v5236_v17 = vld [vmem:[%s7407_s20 + $0xec] sm:$0xf]  ;;  %v4398_v18 = vld [vmem:[%s7407_s20 + $0xf8] sm:$0xf0] }
 0x34b   : > { %v1348_v20 = vld [vmem:[#allocation3 + $0x10] sm:$0xff] }
 0x34c   : > { %v1352_v21 = vpack.c.bf16 %v1350_v19, %v1348_v20  ;;  %v4401_v19 = vor.u32 %v5236_v17, %v4398_v18  ;;  %v5231_v20 = vld [vmem:[%s7407_s20 + $0xc4] sm:$0xf]  ;;  %v4310_v18 = vld [vmem:[%s7407_s20 + $0x50] sm:$0xf0] }
 0x34d   : > { %v5215_v17 = vld [vmem:[%s7407_s20 + $0x44] sm:$0xf] }
 0x34e   : > { %1522 = vmatmul.bf16.vlgmr.msrb.gmra.mxu1 %v1352_v21  ;;  %1675 = vmatmul.bf16.vlgmr.msra.gmra.mxu2 %v1352_v21  ;;  %v4374_v21 = vld [vmem:[%s7407_s20 + $0xd0] sm:$0xf0] }
 0x34f   : > { %v1324_v22 = vpop.f32.mrf.mxu2  ;;  %2092 = vmatpush.bf16.msrb.mxu1 %v4397_v16  ;;  %2106 = vmatpush.bf16.msra.mxu2 %v4401_v19  ;;  %v4316_v19 = vld [vmem:[%s7407_s20 + $0x48] sm:$0xf] }
 0x350   : > { %v4377_v22 = vor.u32 %v5231_v20, %v4374_v21  ;;  %v4313_v20 = vor.u32 %v5215_v17, %v4310_v18  ;;  %v5218_v21 = vld [vmem:[%s7407_s20 + $0x54] sm:$0xf0]  ;;  %v5429_v18 = vld [vmem:[%s7406_s19] ss:$0 sm:$0xff] }
 0x351   : > { %v1349_v24 = vld [vmem:[#allocation3] sm:$0xff] }
 0x352   : > { %v1353_v25 = vpack.c.bf16 %v1351_v23, %v1349_v24  ;;  %v4380_v23 = vld [vmem:[%s7407_s20 + $0xc8] sm:$0xf]  ;;  %v5234_v24 = vld [vmem:[%s7407_s20 + $0xd4] sm:$0xf0] }
 0x354   : > { %1536 = vmatmul.bf16.vlgmr.msrb.gmra.mxu3 %v1353_v25 }
 0x3cb   : > { %v1523_v26 = vpop.f32.mrf.mxu1 }
 0x3d1   : > { %v1676_v60 = vpop.f32.mrf.mxu2 }
 0x3d3   : > { %v1525_v28 = vpop.f32.mrf.mxu1 }
 0x3d7   : > { %v1537_v27 = vpop.f32.mrf.mxu3 }
 0x3d8   : > { %v1538_v32 = vadd.f32 %v1537_v27, %v1523_v26  ;;  %v4381_v26 = vor.u32 %v5234_v24, %v4380_v23  ;;  %v4382_v27 = vld [vmem:[%s7407_s20 + $0xd8] sm:$0xf0]  ;;  %v4317_v24 = vor.u32 %v5218_v21, %v4316_v19 }
 0x3d9   : > { %v1678_v2 = vpop.f32.mrf.mxu2  ;;  %v4318_v23 = vld [vmem:[%s7407_s20 + $0x58] sm:$0xf0] }
 0x3da   : > { %2093 = vmatpush.bf16.msrb.mxu1 %v4381_v26  ;;  %v4292_v26 = vld [vmem:[%s7407_s20 + $0x20] sm:$0xf] }
 0x3df   : > { %v1539_v29 = vpop.f32.mrf.mxu3 }
 0x3e0   : > { %v1540_v31 = vadd.f32 %v1539_v29, %v1525_v28  ;;  %v5227_v29 = vld [vmem:[%s7407_s20 + $0xa4] sm:$0xf] }
 0x3e2   : > { %1562 = vmatpush.msrb.mxu0 %v1540_v31  ;;  %v4364_v31 = vld [vmem:[%s7407_s20 + $0xa8] sm:$0xf] }
 0x3e4   : > { %1563 = vmatpush.msrb.mxu0 %v1538_v32  ;;  %v5230_v32 = vld [vmem:[%s7407_s20 + $0xb4] sm:$0xf0] }
 0x3e5   : > { %4156 = vmatmul.msk.f32.vlgmr.msrb.gmra.mxu0 %vm1542_vm6, %v5680_v61 }
 0x3e6   : > { %1681 = vmatpush.bf16.msra.mxu0 %v5178_v33  ;;  %v5228_v33 = vld [vmem:[%s7407_s20 + $0xac] sm:$0xf] }
 0x3ea   : > { %1682 = vmatpush.bf16.msra.mxu0 %v5177_v35  ;;  %v4361_v35 = vor.u32 %v5227_v29, %v4358_v30  ;;  %v4294_v30 = vld [vmem:[%s7407_s20 + $0x30] sm:$0xf0] }
 0x3ed   : > { %4157 = vmatmul.msk.f32.gmra.mxu0 %vm1542_vm6, %v5846_v36 }
 0x3ee   : > { %1683 = vmatpush.bf16.msra.mxu0 %v5176_v37  ;;  %v4365_v37 = vor.u32 %v5230_v32, %v4364_v31  ;;  %v4300_v31 = vld [vmem:[%s7407_s20 + $0x28] sm:$0xf]  ;;  %v5214_v32 = vld [vmem:[%s7407_s20 + $0x34] sm:$0xf0] }
 0x3f0   : > { %2094 = vmatpush.bf16.msrb.mxu1 %v4365_v37  ;;  %v4302_v37 = vld [vmem:[%s7407_s20 + $0x38] sm:$0xf0] }
 0x3f2   : > { %1684 = vmatpush.bf16.msra.mxu0 %v5175_v38  ;;  %v5223_v38 = vld [vmem:[%s7407_s20 + $0x84] sm:$0xf] }
 0x3f6   : > { %1685 = vmatpush.bf16.msra.mxu0 %v5174_v39  ;;  %v4369_v39 = vor.u32 %v5228_v33, %v4366_v34  ;;  %v4301_v34 = vor.u32 %v5214_v32, %v4300_v31  ;;  %v4501_v31 = vld [vmem:[%s7410_s23 + $0xc0] sm:$0xf]  ;;  %v5328_v32 = vld [vmem:[%s7410_s23 + $0xc4] sm:$0xf0] }
 0x3fa   : > { %1686 = vmatpush.bf16.msra.mxu0 %v5173_v40  ;;  %v4342_v40 = vld [vmem:[%s7407_s20 + $0x90] sm:$0xf0] }
 0x3fb   : > { %v4345_v46 = vor.u32 %v5223_v38, %v4342_v40  ;;  %v5209_v40 = vld [vmem:[%s7407_s20 + $0xc] sm:$0xf0] }
 0x3fe   : > { %1687 = vmatpush.bf16.msra.mxu0 %v5172_v41  ;;  %v4348_v41 = vld [vmem:[%s7407_s20 + $0x88] sm:$0xf] }
 0x402   : > { %1688 = vmatpush.bf16.msra.mxu0 %v5171_v42  ;;  %v5226_v42 = vld [vmem:[%s7407_s20 + $0x94] sm:$0xf0] }
 0x403   : > { %v4349_v47 = vor.u32 %v5226_v42, %v4348_v41  ;;  %v5207_v41 = vld [vmem:[%s7407_s20 + $0x4] sm:$0xf] }
 0x405   : > { %1689 = vmatmul.bf16.vlgmr.msra.gmra.mxu0 %v1353_v25  ;;  %v5232_v25 = vld [vmem:[%s7407_s20 + $0xcc] sm:$0xf]  ;;  %2095 = vmatpush.bf16.msrb.mxu1 %v4349_v47 }
 0x406   : > { %2078 = vmatpush.bf16.msrb.mxu0 %v4393_v15  ;;  %v4385_v28 = vor.u32 %v5232_v25, %v4382_v27  ;;  %v5217_v15 = vld [vmem:[%s7407_s20 + $0x4c] sm:$0xf0] }
 0x407   : > { %v4309_v16 = vor.u32 %v5217_v15, %v4308_v14  ;;  %v5213_v27 = vld [vmem:[%s7407_s20 + $0x2c] sm:$0xf0]  ;;  %v4574_v14 = vor.u32 %v5346_v12, %v4573_v11  ;;  %v5338_v12 = vld [vmem:[%s7410_s23 + $0x114] sm:$0xf0] }
 0x408   : > { %2107 = vmatpush.bf16.msra.mxu2 %v4385_v28  ;;  %v5211_v28 = vld [vmem:[%s7407_s20 + $0x24] sm:$0xf]  ;;  %v4293_v29 = vor.u32 %v5213_v27, %v4292_v26  ;;  %v5316_v26 = vld [vmem:[%s7410_s23 + $0x64] sm:$0xf0]  ;;  %v4645_v27 = vld [vmem:[%s7410_s23 + $0x1e0] sm:$0xf] }
 0x409   : > { %v4297_v33 = vor.u32 %v5211_v28, %v4294_v30 }
 0x40a   : > { %2079 = vmatpush.bf16.msrb.mxu0 %v4377_v22  ;;  %v5216_v22 = vld [vmem:[%s7407_s20 + $0x4c] sm:$0xf] }
 0x40b   : > { %v4321_v25 = vor.u32 %v5216_v22, %v4318_v23 }
 0x40c   : > { %2108 = vmatpush.bf16.msra.mxu2 %v4369_v39  ;;  %v4276_v39 = vld [vmem:[%s7407_s20] sm:$0xf] }
 0x40d   : > { %v4277_v42 = vor.u32 %v5209_v40, %v4276_v39  ;;  %v5314_v39 = vld [vmem:[%s7410_s23 + $0x54] sm:$0xf0]  ;;  %v4637_v40 = vld [vmem:[%s7410_s23 + $0x1d0] sm:$0xf] }
 0x40e   : > { %2080 = vmatpush.bf16.msrb.mxu0 %v4361_v35  ;;  %v5212_v35 = vld [vmem:[%s7407_s20 + $0x2c] sm:$0xf] }
 0x40f   : > { %v4305_v38 = vor.u32 %v5212_v35, %v4302_v37  ;;  %v5344_v35 = vld [vmem:[%s7410_s23 + $0x144] sm:$0xf0] }
 0x410   : > { %2109 = vmatpush.bf16.msra.mxu2 %v4353_v48  ;;  %v5208_v48 = vld [vmem:[%s7407_s20 + $0xc] sm:$0xf] }
 0x411   : > { %v4289_v50 = vor.u32 %v5208_v48, %v4286_v49  ;;  %v5342_v48 = vld [vmem:[%s7410_s23 + $0x134] sm:$0xf0] }
 0x412   : > { %2081 = vmatpush.bf16.msrb.mxu0 %v4345_v46  ;;  %v4281_v46 = vor.u32 %v5207_v41, %v4278_v43 }
 0x414   : > { %2110 = vmatpush.bf16.msra.mxu2 %v4337_v13 }
 0x418   : > { %2111 = vmatpush.bf16.msra.mxu2 %v4321_v25  ;;  %v4453_v25 = vld [vmem:[%s7410_s23 + $0x60] sm:$0xf] }
 0x419   : > { %v4454_v28 = vor.u32 %v5316_v26, %v4453_v25  ;;  %v4413_v26 = vld [vmem:[%s7410_s23 + $0x10] sm:$0xf] }
 0x41c   : > { %2112 = vmatpush.bf16.msra.mxu2 %v4305_v38  ;;  %v4445_v38 = vld [vmem:[%s7410_s23 + $0x50] sm:$0xf] }
 0x41d   : > { %v4446_v41 = vor.u32 %v5314_v39, %v4445_v38  ;;  %v4405_v39 = vld [vmem:[%s7410_s23] sm:$0xf] }
 0x420   : > { %2113 = vmatpush.bf16.msra.mxu2 %v4289_v50  ;;  %v4437_v50 = vld [vmem:[%s7410_s23 + $0x40] sm:$0xf] }
 0x462   : > { %v1565_v55 = vpop.f32.mrf.mxu0 }
 0x463   : > { %v1677_v63 = vadd.f32 %v1676_v60, %v1565_v55  ;;  %v4373_v55 = vor.u32 %v5233_v54, %v4372_v53  ;;  %v5229_v60 = vld [vmem:[%s7407_s20 + $0xac] sm:$0xf0] }
 0x464   : > { %v4589_v53 = vld [vmem:[%s7410_s23 + $0x170] sm:$0xf] }
 0x46a   : > { %v1568_v57 = vpop.f32.mrf.mxu0 }
 0x46b   : > { %v1679_v3 = vadd.f32 %v1678_v2, %v1568_v57  ;;  %v4356_v57 = vld [vmem:[%s7407_s20 + $0xa0] sm:$0xf] }
 0x46c   : > { %v4324_v2 = vld [vmem:[%s7407_s20 + $0x60] sm:$0xf] }
 0x482   : > { %v1690_v62 = vpop.f32.mrf.mxu0 }
 0x483   : > { %v1691_v0 = vadd.f32 %v1690_v62, %v1677_v63  ;;  %v4357_v62 = vor.u32 %v5229_v60, %v4356_v57  ;;  %v4340_v63 = vld [vmem:[%s7407_s20 + $0x80] sm:$0xf]  ;;  %v5332_v60 = vld [vmem:[%s7410_s23 + $0xe4] sm:$0xf0] }
 0x484   : > { %v4517_v57 = vld [vmem:[%s7410_s23 + $0xe0] sm:$0xf] }
 0x485   : > { %v1699_v5 = vadd.f32 %v5428_v1, %v1691_v0  ;;  %v5225_v0 = vld [vmem:[%s7407_s20 + $0x8c] sm:$0xf0] }
 0x487   : > { %v1701_v8 = vmax.f32 %v1699_v5, 0.0 }
 0x48a   : > { %v1692_v4 = vpop.f32.mrf.mxu0 }
 0x48b   : > { %v1693_v6 = vadd.f32 %v1692_v4, %v1679_v3  ;;  %v5221_v3 = vld [vmem:[%s7407_s20 + $0x6c] sm:$0xf0]  ;;  %v5219_v4 = vld [vmem:[%s7407_s20 + $0x64] sm:$0xf] }
 0x48c   : > { %v4325_v5 = vor.u32 %v5221_v3, %v4324_v2  ;;  %v4518_v2 = vor.u32 %v5332_v60, %v4517_v57  ;;  %v5318_v3 = vld [vmem:[%s7410_s23 + $0x74] sm:$0xf0]  ;;  %v4485_v57 = vld [vmem:[%s7410_s23 + $0xa0] sm:$0xf]  ;;  %v5324_v60 = vld [vmem:[%s7410_s23 + $0xa4] sm:$0xf0] }
 0x48d   : > { %v1700_v7 = vadd.f32 %v5428_v1, %v1693_v6  ;;  %v4341_v1 = vor.u32 %v5225_v0, %v4340_v63  ;;  %v4326_v6 = vld [vmem:[%s7407_s20 + $0x70] sm:$0xf0]  ;;  %v4581_v63 = vld [vmem:[%s7410_s23 + $0x160] sm:$0xf]  ;;  %v5348_v0 = vld [vmem:[%s7410_s23 + $0x164] sm:$0xf0] }
 0x48f   : > { %v1702_v9 = vmax.f32 %v1700_v7, 0.0  ;;  %v4332_v7 = vld [vmem:[%s7407_s20 + $0x68] sm:$0xf] }
 0x491   : > { %v1703_v10 = vpack.c.bf16 %v1702_v9, %v1701_v8  ;;  %v5222_v8 = vld [vmem:[%s7407_s20 + $0x74] sm:$0xf0]  ;;  %v4329_v9 = vor.u32 %v5219_v4, %v4326_v6  ;;  %v4653_v4 = vld [vmem:[%s7410_s23 + $0x1f0] sm:$0xf]  ;;  %v4582_v6 = vor.u32 %v5348_v0, %v4581_v63  ;;  %v4486_v63 = vor.u32 %v5324_v60, %v4485_v57  ;;  %v5340_v0 = vld [vmem:[%s7410_s23 + $0x124] sm:$0xf0] }
 0x493   : > { %4246 = vmatmul.msk.bf16.vlgmr.msra.gmra.mxu1 %vm1764_vm8, %v1703_v10  ;;  %4273 = vmatmul.msk.bf16.vlgmr.msrb.gmra.mxu2 %vm1764_vm8, %v1703_v10  ;;  %v4333_v10 = vor.u32 %v5222_v8, %v4332_v7 }
 0x494   : > { %2082 = vmatpush.bf16.msrb.mxu0 %v4329_v9  ;;  %v4509_v9 = vld [vmem:[%s7410_s23 + $0xd0] sm:$0xf] }
 0x495   : > { %2096 = vmatpush.bf16.msrb.mxu1 %v4333_v10  ;;  %v5330_v10 = vld [vmem:[%s7410_s23 + $0xd4] sm:$0xf0] }
 0x496   : > { %v4510_v13 = vor.u32 %v5330_v10, %v4509_v9  ;;  %v5322_v9 = vld [vmem:[%s7410_s23 + $0x94] sm:$0xf0]  ;;  %v4541_v10 = vld [vmem:[%s7410_s23 + $0x110] sm:$0xf] }
 0x498   : > { %2083 = vmatpush.bf16.msrb.mxu0 %v4313_v20 }
 0x499   : > { %2097 = vmatpush.bf16.msrb.mxu1 %v4317_v24 }
 0x49c   : > { %2084 = vmatpush.bf16.msrb.mxu0 %v4297_v33  ;;  %v4502_v33 = vor.u32 %v5328_v32, %v4501_v31  ;;  %v5333_v32 = vld [vmem:[%s7410_s23 + $0xf4] sm:$0xf] }
 0x49d   : > { %2098 = vmatpush.bf16.msrb.mxu1 %v4301_v34  ;;  %v4565_v34 = vld [vmem:[%s7410_s23 + $0x140] sm:$0xf] }
 0x49e   : > { %v4566_v37 = vor.u32 %v5344_v35, %v4565_v34  ;;  %v5349_v34 = vld [vmem:[%s7410_s23 + $0x174] sm:$0xf] }
 0x4a0   : > { %2085 = vmatpush.bf16.msrb.mxu0 %v4281_v46 }
 0x510   : > { %v1777_v45 = vpop.f32.mrf.mxu1 }
 0x516   : > { %v1850_v15 = vpop.f32.mrf.mxu2 }
 0x518   : > { %v1779_v51 = vpop.f32.mrf.mxu1 }
 0x519   : > { %1796 = vmatpush.msra.mxu3 %v1779_v51  ;;  %v4525_v51 = vld [vmem:[%s7410_s23 + $0xf0] sm:$0xf] }
 0x51b   : > { %1797 = vmatpush.msra.mxu3 %v1777_v45  ;;  %v5210_v45 = vld [vmem:[%s7407_s20 + $0x14] sm:$0xf0] }
 0x51c   : > { %4247 = vmatmul.msk.f32.vlgmr.msra.gmra.mxu3 %vm1542_vm6, %v5680_v61  ;;  %v4285_v47 = vor.u32 %v5210_v45, %v4284_v44  ;;  %v4493_v44 = vld [vmem:[%s7410_s23 + $0xb0] sm:$0xf]  ;;  %v5326_v45 = vld [vmem:[%s7410_s23 + $0xb4] sm:$0xf0] }
 0x51d   : > { %2064 = vmatpush.bf16.msrb.mxu3 %v4389_v52  ;;  %v5334_v52 = vld [vmem:[%s7410_s23 + $0xf4] sm:$0xf0]  ;;  %v4494_v46 = vor.u32 %v5326_v45, %v4493_v44  ;;  %v5331_v44 = vld [vmem:[%s7410_s23 + $0xe4] sm:$0xf]  ;;  %v4519_v45 = vld [vmem:[%s7410_s23 + $0xe8] sm:$0xf0] }
 0x51e   : > { %2099 = vmatpush.bf16.msrb.mxu1 %v4285_v47  ;;  %v4526_v54 = vor.u32 %v5334_v52, %v4525_v51  ;;  %v1852_v19 = vpop.f32.mrf.mxu2  ;;  %v4557_v47 = vld [vmem:[%s7410_s23 + $0x130] sm:$0xf]  ;;  %v5312_v51 = vld [vmem:[%s7410_s23 + $0x44] sm:$0xf0] }
 0x51f   : > { %v4558_v49 = vor.u32 %v5342_v48, %v4557_v47  ;;  %v4438_v52 = vor.u32 %v5312_v51, %v4437_v50  ;;  %v4522_v48 = vor.u32 %v5331_v44, %v4519_v45  ;;  %v4583_v50 = vld [vmem:[%s7410_s23 + $0x168] sm:$0xf0]  ;;  %v5323_v45 = vld [vmem:[%s7410_s23 + $0xa4] sm:$0xf] }
 0x520   : > { %2672 = vmatpush.bf16.msra.mxu0 %v4526_v54  ;;  %v5360_v54 = vld [vmem:[%s7410_s23 + $0x1c4] sm:$0xf0]  ;;  %v4631_v44 = vld [vmem:[%s7410_s23 + $0x1c8] sm:$0xf0] }
 0x521   : > { %2065 = vmatpush.bf16.msrb.mxu3 %v4373_v55  ;;  %v5350_v55 = vld [vmem:[%s7410_s23 + $0x174] sm:$0xf0] }
 0x524   : > { %4248 = vmatmul.msk.f32.gmra.mxu3 %vm1542_vm6, %v5846_v36  ;;  %2673 = vmatpush.bf16.msra.mxu0 %v4518_v2  ;;  %v4429_v2 = vld [vmem:[%s7410_s23 + $0x30] sm:$0xf] }
 0x525   : > { %2066 = vmatpush.bf16.msrb.mxu3 %v4357_v62  ;;  %v4590_v62 = vor.u32 %v5350_v55, %v4589_v53  ;;  %v4629_v53 = vld [vmem:[%s7410_s23 + $0x1c0] sm:$0xf] }
 0x526   : > { %v4630_v55 = vor.u32 %v5360_v54, %v4629_v53  ;;  %v4463_v53 = vld [vmem:[%s7410_s23 + $0x78] sm:$0xf0]  ;;  %v5365_v54 = vld [vmem:[%s7410_s23 + $0x1f4] sm:$0xf] }
 0x527   : > { %2690 = vmatpush.bf16.msra.mxu1 %v4590_v62  ;;  %v4549_v62 = vld [vmem:[%s7410_s23 + $0x120] sm:$0xf] }
 0x528   : > { %2674 = vmatpush.bf16.msra.mxu0 %v4510_v13  ;;  %v4542_v13 = vor.u32 %v5338_v12, %v4541_v10  ;;  %v4647_v10 = vld [vmem:[%s7410_s23 + $0x1e8] sm:$0xf0] }
 0x529   : > { %2067 = vmatpush.bf16.msrb.mxu3 %v4341_v1  ;;  %v4461_v1 = vld [vmem:[%s7410_s23 + $0x70] sm:$0xf] }
 0x52a   : > { %v4462_v7 = vor.u32 %v5318_v3, %v4461_v1  ;;  %v4550_v1 = vor.u32 %v5340_v0, %v4549_v62  ;;  %v5310_v3 = vld [vmem:[%s7410_s23 + $0x34] sm:$0xf0]  ;;  %v4655_v62 = vld [vmem:[%s7410_s23 + $0x1f8] sm:$0xf0]  ;;  %v5329_v0 = vld [vmem:[%s7410_s23 + $0xd4] sm:$0xf] }
 0x52b   : > { %2691 = vmatpush.bf16.msra.mxu1 %v4582_v6  ;;  %v5358_v6 = vld [vmem:[%s7410_s23 + $0x1b4] sm:$0xf0] }
 0x52c   : > { %2675 = vmatpush.bf16.msra.mxu0 %v4502_v33  ;;  %v4527_v33 = vld [vmem:[%s7410_s23 + $0xf8] sm:$0xf0] }
 0x52d   : > { %2068 = vmatpush.bf16.msrb.mxu3 %v4325_v5  ;;  %v5366_v5 = vld [vmem:[%s7410_s23 + $0x1f4] sm:$0xf0]  ;;  %v4530_v35 = vor.u32 %v5333_v32, %v4527_v33  ;;  %v5341_v33 = vld [vmem:[%s7410_s23 + $0x134] sm:$0xf] }
 0x52e   : > { %v4654_v8 = vor.u32 %v5366_v5, %v4653_v4  ;;  %v4621_v4 = vld [vmem:[%s7410_s23 + $0x1b0] sm:$0xf]  ;;  %v4430_v5 = vor.u32 %v5310_v3, %v4429_v2  ;;  %v5345_v2 = vld [vmem:[%s7410_s23 + $0x154] sm:$0xf] }
 0x52f   : > { %2692 = vmatpush.bf16.msra.mxu1 %v4574_v14  ;;  %v4421_v14 = vld [vmem:[%s7410_s23 + $0x20] sm:$0xf] }
 0x530   : > { %2708 = vmatpush.bf16.msrb.mxu2 %v4654_v8  ;;  %2676 = vmatpush.bf16.msra.mxu0 %v4494_v46  ;;  %v4477_v8 = vld [vmem:[%s7410_s23 + $0x90] sm:$0xf]  ;;  %v6319_v46 = vld [vmem:[%s7408_s21] sm:$0xf] }
 0x531   : > { %2069 = vmatpush.bf16.msrb.mxu3 %v4309_v16  ;;  %v4478_v11 = vor.u32 %v5322_v9, %v4477_v8  ;;  %v1898_v57 = vperm.slane %v6319_v46, 2  ;;  %v5363_v9 = vld [vmem:[%s7410_s23 + $0x1e4] sm:$0xf] }
 0x532   : > { %v4650_v12 = vor.u32 %v5363_v9, %v4647_v10  ;;  %v5307_v9 = vld [vmem:[%s7410_s23 + $0x24] sm:$0xf] }
 0x533   : > { %2693 = vmatpush.bf16.msra.mxu1 %v4566_v37  ;;  %v4591_v37 = vld [vmem:[%s7410_s23 + $0x178] sm:$0xf0] }
 0x534   : > { %2677 = vmatpush.bf16.msra.mxu0 %v4486_v63  ;;  %v4594_v38 = vor.u32 %v5349_v34, %v4591_v37  ;;  %v4658_v63 = vor.u32 %v5365_v54, %v4655_v62  ;;  %v4559_v34 = vld [vmem:[%s7410_s23 + $0x138] sm:$0xf0] }
 0x535   : > { %2070 = vmatpush.bf16.msrb.mxu3 %v4293_v29  ;;  %v5364_v29 = vld [vmem:[%s7410_s23 + $0x1e4] sm:$0xf0]  ;;  %v4562_v37 = vor.u32 %v5341_v33, %v4559_v34 }
 0x536   : > { %v4646_v30 = vor.u32 %v5364_v29, %v4645_v27  ;;  %v5306_v27 = vld [vmem:[%s7410_s23 + $0x14] sm:$0xf0] }
 0x537   : > { %2694 = vmatpush.bf16.msra.mxu1 %v4558_v49  ;;  %v4414_v29 = vor.u32 %v5306_v27, %v4413_v26  ;;  %v5347_v49 = vld [vmem:[%s7410_s23 + $0x164] sm:$0xf] }
 0x538   : > { %2709 = vmatpush.bf16.msrb.mxu2 %v4646_v30  ;;  %2678 = vmatpush.bf16.msra.mxu0 %v4478_v11  ;;  %v5354_v30 = vld [vmem:[%s7410_s23 + $0x194] sm:$0xf0]  ;;  %v4586_v51 = vor.u32 %v5347_v49, %v4583_v50  ;;  %v5327_v11 = vld [vmem:[%s7410_s23 + $0xc4] sm:$0xf] }
 0x539   : > { %2071 = vmatpush.bf16.msrb.mxu3 %v4277_v42  ;;  %v5362_v42 = vld [vmem:[%s7410_s23 + $0x1d4] sm:$0xf0] }
 0x53a   : > { %v4638_v43 = vor.u32 %v5362_v42, %v4637_v40  ;;  %v5304_v40 = vld [vmem:[%s7410_s23 + $0x4] sm:$0xf0] }
 0x53b   : > { %2695 = vmatpush.bf16.msra.mxu1 %v4550_v1  ;;  %v4406_v42 = vor.u32 %v5304_v40, %v4405_v39  ;;  %v4511_v1 = vld [vmem:[%s7410_s23 + $0xd8] sm:$0xf0]  ;;  %v4439_v39 = vld [vmem:[%s7410_s23 + $0x48] sm:$0xf0]  ;;  %v5359_v40 = vld [vmem:[%s7410_s23 + $0x1c4] sm:$0xf] }
 0x53c   : > { %2710 = vmatpush.bf16.msrb.mxu2 %v4638_v43  ;;  %v5352_v43 = vld [vmem:[%s7410_s23 + $0x184] sm:$0xf0]  ;;  %v4514_v3 = vor.u32 %v5329_v0, %v4511_v1  ;;  %v4634_v50 = vor.u32 %v5359_v40, %v4631_v44  ;;  %v5309_v0 = vld [vmem:[%s7410_s23 + $0x34] sm:$0xf]  ;;  %v4431_v1 = vld [vmem:[%s7410_s23 + $0x38] sm:$0xf0] }
 0x53d   : > { %2654 = vmatpush.bf16.msra.mxu3 %v4462_v7  ;;  %v4622_v7 = vor.u32 %v5358_v6, %v4621_v4  ;;  %v4575_v4 = vld [vmem:[%s7410_s23 + $0x158] sm:$0xf0]  ;;  %v4455_v6 = vld [vmem:[%s7410_s23 + $0x68] sm:$0xf0] }
 0x53e   : > { %v4599_v44 = vld [vmem:[%s7410_s23 + $0x188] sm:$0xf0] }
 0x53f   : > { %2696 = vmatpush.bf16.msra.mxu1 %v4542_v13  ;;  %v4503_v13 = vld [vmem:[%s7410_s23 + $0xc8] sm:$0xf0] }
 0x540   : > { %2711 = vmatpush.bf16.msrb.mxu2 %v4630_v55  ;;  %v1897_v55 = vperm.slane %v6319_v46, 1 }
 0x541   : > { %2655 = vmatpush.bf16.msra.mxu3 %v4454_v28  ;;  %v4605_v28 = vld [vmem:[%s7410_s23 + $0x190] sm:$0xf] }
 0x542   : > { %v4606_v31 = vor.u32 %v5354_v30, %v4605_v28  ;;  %v1896_v28 = vperm.slane %v6319_v46, 0  ;;  %v5325_v30 = vld [vmem:[%s7410_s23 + $0xb4] sm:$0xf] }
 0x544   : > { %2712 = vmatpush.bf16.msrb.mxu2 %v4622_v7  ;;  %v4578_v7 = vor.u32 %v5345_v2, %v4575_v4  ;;  %v4434_v2 = vor.u32 %v5309_v0, %v4431_v1  ;;  %v5321_v4 = vld [vmem:[%s7410_s23 + $0x94] sm:$0xf]  ;;  %v4779_v0 = vld [vmem:[%s7460_s26 + $0xe0] sm:$0xf] }
 0x545   : > { %2656 = vmatpush.bf16.msra.mxu3 %v4446_v41  ;;  %v4597_v41 = vld [vmem:[%s7410_s23 + $0x180] sm:$0xf] }
 0x546   : > { %v4598_v47 = vor.u32 %v5352_v43, %v4597_v41 }
 0x549   : > { %2657 = vmatpush.bf16.msra.mxu3 %v4438_v52  ;;  %v5317_v52 = vld [vmem:[%s7410_s23 + $0x74] sm:$0xf] }
 0x54a   : > { %v4466_v60 = vor.u32 %v5317_v52, %v4463_v53  ;;  %v5339_v52 = vld [vmem:[%s7410_s23 + $0x124] sm:$0xf]  ;;  %v4551_v53 = vld [vmem:[%s7410_s23 + $0x128] sm:$0xf0] }
 0x54b   : > { %v4554_v62 = vor.u32 %v5339_v52, %v4551_v53 }
 0x54d   : > { %2658 = vmatpush.bf16.msra.mxu3 %v4430_v5  ;;  %v5315_v5 = vld [vmem:[%s7410_s23 + $0x64] sm:$0xf] }
 0x54e   : > { %v4458_v8 = vor.u32 %v5315_v5, %v4455_v6  ;;  %v4479_v5 = vld [vmem:[%s7410_s23 + $0x98] sm:$0xf0] }
 0x54f   : > { %v4482_v6 = vor.u32 %v5321_v4, %v4479_v5  ;;  %v4771_v5 = vld [vmem:[%s7460_s26 + $0xd0] sm:$0xf] }
 0x59f   : > { %v1799_v16 = vpop.f32.mrf.mxu3 }
 0x5a0   : > { %v1851_v17 = vadd.f32 %v1850_v15, %v1799_v16  ;;  %v5308_v15 = vld [vmem:[%s7410_s23 + $0x24] sm:$0xf0]  ;;  %v4613_v16 = vld [vmem:[%s7410_s23 + $0x1a0] sm:$0xf] }
 0x5a2   : > { %v1859_v22 = vadd.f32 %v5429_v18, %v1851_v17  ;;  %v4422_v17 = vor.u32 %v5308_v15, %v4421_v14  ;;  %v5343_v14 = vld [vmem:[%s7410_s23 + $0x144] sm:$0xf]  ;;  %v4567_v15 = vld [vmem:[%s7410_s23 + $0x148] sm:$0xf0] }
 0x5a4   : > { %2659 = vmatpush.bf16.msra.mxu3 %v4422_v17  ;;  %v4506_v17 = vor.u32 %v5327_v11, %v4503_v13  ;;  %v5355_v13 = vld [vmem:[%s7410_s23 + $0x1a4] sm:$0xf] }
 0x5a7   : > { %v1802_v20 = vpop.f32.mrf.mxu3 }
 0x5a8   : > { %v1853_v21 = vadd.f32 %v1852_v19, %v1802_v20  ;;  %v4469_v20 = vld [vmem:[%s7410_s23 + $0x80] sm:$0xf]  ;;  %2660 = vmatpush.bf16.msra.mxu3 %v4414_v29  ;;  %v1899_v29 = vperm.slane %v6319_v46, 3  ;;  %v5353_v46 = vld [vmem:[%s7410_s23 + $0x194] sm:$0xf] }
 0x5aa   : > { %v1860_v23 = vadd.f32 %v5429_v18, %v1853_v21  ;;  %v5356_v18 = vld [vmem:[%s7410_s23 + $0x1a4] sm:$0xf0] }
 0x5ab   : > { %v4614_v19 = vor.u32 %v5356_v18, %v4613_v16  ;;  %v5320_v21 = vld [vmem:[%s7410_s23 + $0x84] sm:$0xf0]  ;;  %v4570_v18 = vor.u32 %v5343_v14, %v4567_v15  ;;  %v4615_v14 = vld [vmem:[%s7410_s23 + $0x1a8] sm:$0xf0] }
 0x5ac   : > { %v1861_v24 = vpack.c.bf16 %v1860_v23, %v1859_v22  ;;  %v4533_v22 = vld [vmem:[%s7410_s23 + $0x100] sm:$0xf]  ;;  %v4470_v23 = vor.u32 %v5320_v21, %v4469_v20  ;;  %2661 = vmatpush.bf16.msra.mxu3 %v4406_v42  ;;  %v4447_v20 = vld [vmem:[%s7410_s23 + $0x58] sm:$0xf0]  ;;  %v5361_v21 = vld [vmem:[%s7410_s23 + $0x1d4] sm:$0xf] }
 0x5ad   : > { %2713 = vmatpush.bf16.msrb.mxu2 %v4614_v19  ;;  %v5313_v19 = vld [vmem:[%s7410_s23 + $0x54] sm:$0xf] }
 0x5ae   : > { %2072 = vmatmul.bf16.vlgmr.msrb.gmra.mxu3 %v1861_v24  ;;  %2086 = vmatmul.bf16.vlgmr.msrb.gmra.mxu0 %v1861_v24 }
 0x5af   : > { %2100 = vmatmul.bf16.vlgmr.msrb.gmra.mxu1 %v1861_v24  ;;  %2114 = vmatmul.bf16.vlgmr.msra.gmra.mxu2 %v1861_v24  ;;  %v5336_v24 = vld [vmem:[%s7410_s23 + $0x104] sm:$0xf0] }
 0x5b0   : > { %v4534_v25 = vor.u32 %v5336_v24, %v4533_v22  ;;  %2679 = vmatpush.bf16.msra.mxu0 %v4470_v23  ;;  %2726 = vmatpush.bf16.msrb.mxu3 %v4466_v60  ;;  %v4450_v24 = vor.u32 %v5313_v19, %v4447_v20  ;;  %v5319_v19 = vld [vmem:[%s7410_s23 + $0x84] sm:$0xf]  ;;  %v4471_v20 = vld [vmem:[%s7410_s23 + $0x88] sm:$0xf0] }
 0x5b1   : > { %2714 = vmatpush.bf16.msrb.mxu2 %v4606_v31  ;;  %v4495_v31 = vld [vmem:[%s7410_s23 + $0xb8] sm:$0xf0] }
 0x5b2   : > { %2697 = vmatpush.bf16.msra.mxu1 %v4534_v25  ;;  %v4639_v25 = vld [vmem:[%s7410_s23 + $0x1d8] sm:$0xf0]  ;;  %v4498_v32 = vor.u32 %v5325_v30, %v4495_v31 }
 0x5b3   : > { %v4642_v27 = vor.u32 %v5361_v21, %v4639_v25  ;;  %v5335_v21 = vld [vmem:[%s7410_s23 + $0x104] sm:$0xf]  ;;  %v4535_v25 = vld [vmem:[%s7410_s23 + $0x108] sm:$0xf0] }
 0x5b4   : > { %2744 = vmatpush.bf16.msrb.mxu0 %v4530_v35  ;;  %2727 = vmatpush.bf16.msrb.mxu3 %v4458_v8  ;;  %v4543_v8 = vld [vmem:[%s7410_s23 + $0x118] sm:$0xf0]  ;;  %v4538_v30 = vor.u32 %v5335_v21, %v4535_v25 }
 0x5b5   : > { %2715 = vmatpush.bf16.msrb.mxu2 %v4598_v47  ;;  %v4487_v47 = vld [vmem:[%s7410_s23 + $0xa8] sm:$0xf0] }
 0x5b6   : > { %2762 = vmatpush.bf16.msrb.mxu1 %v4594_v38  ;;  %v5311_v38 = vld [vmem:[%s7410_s23 + $0x44] sm:$0xf] }
 0x5b7   : > { %v4442_v43 = vor.u32 %v5311_v38, %v4439_v39  ;;  %v4723_v38 = vld [vmem:[%s7460_s26 + $0x70] sm:$0xf]  ;;  %v5254_v39 = vld [vmem:[%s7460_s26 + $0x74] sm:$0xf0] }
 0x5b8   : > { %2745 = vmatpush.bf16.msrb.mxu0 %v4522_v48  ;;  %2728 = vmatpush.bf16.msrb.mxu3 %v4450_v24  ;;  %v4474_v24 = vor.u32 %v5319_v19, %v4471_v20  ;;  %v4724_v40 = vor.u32 %v5254_v39, %v4723_v38  ;;  %v4683_v19 = vld [vmem:[%s7460_s26 + $0x20] sm:$0xf]  ;;  %v5240_v38 = vld [vmem:[%s7460_s26 + $0x4] sm:$0xf0] }
 0x5b9   : > { %2780 = vmatpush.bf16.msra.mxu2 %v4658_v63 }
 0x5ba   : > { %2763 = vmatpush.bf16.msrb.mxu1 %v4586_v51  ;;  %v4490_v51 = vor.u32 %v5323_v45, %v4487_v47  ;;  %v4715_v45 = vld [vmem:[%s7460_s26 + $0x60] sm:$0xf]  ;;  %v5252_v47 = vld [vmem:[%s7460_s26 + $0x64] sm:$0xf0] }
 0x5bc   : > { %2746 = vmatpush.bf16.msrb.mxu0 %v4514_v3  ;;  %2729 = vmatpush.bf16.msrb.mxu3 %v4442_v43 }
 0x5bd   : > { %2781 = vmatpush.bf16.msra.mxu2 %v4650_v12  ;;  %v4423_v12 = vld [vmem:[%s7410_s23 + $0x28] sm:$0xf0] }
 0x5be   : > { %2764 = vmatpush.bf16.msrb.mxu1 %v4578_v7  ;;  %v5337_v7 = vld [vmem:[%s7410_s23 + $0x114] sm:$0xf] }
 0x5bf   : > { %v4546_v11 = vor.u32 %v5337_v7, %v4543_v8  ;;  %v2196_v7 = vld [vmem:[#allocation4 + $0x58] sm:$0xff] }
 0x5c0   : > { %2747 = vmatpush.bf16.msrb.mxu0 %v4506_v17  ;;  %2730 = vmatpush.bf16.msrb.mxu3 %v4434_v2  ;;  %v4426_v17 = vor.u32 %v5307_v9, %v4423_v12  ;;  %v5268_v2 = vld [vmem:[%s7460_s26 + $0xe4] sm:$0xf0] }
 0x5c1   : > { %2782 = vmatpush.bf16.msra.mxu2 %v4642_v27  ;;  %v5305_v27 = vld [vmem:[%s7410_s23 + $0x14] sm:$0xf]  ;;  %v4780_v4 = vor.u32 %v5268_v2, %v4779_v0  ;;  %v2194_v12 = vld [vmem:[#allocation4 + $0x20] sm:$0xff]  ;;  %v4709_v0 = vld [vmem:[%s7460_s26 + $0x58] sm:$0xf0] }
 0x5c2   : > { %2765 = vmatpush.bf16.msrb.mxu1 %v4570_v18  ;;  %v4618_v18 = vor.u32 %v5355_v13, %v4615_v14  ;;  %v4691_v13 = vld [vmem:[%s7460_s26 + $0x30] sm:$0xf]  ;;  %v5246_v14 = vld [vmem:[%s7460_s26 + $0x34] sm:$0xf0]  ;;  %v6598_v20 = vpack.c.bf16 %v2194_v12, %v2194_v12  ;;  %v4693_v12 = vld [vmem:[%s7460_s26 + $0x38] sm:$0xf0] }
 0x5c4   : > { %2748 = vmatpush.bf16.msrb.mxu0 %v4498_v32  ;;  %2731 = vmatpush.bf16.msrb.mxu3 %v4426_v17  ;;  %v4763_v17 = vld [vmem:[%s7460_s26 + $0xc0] sm:$0xf] }
 0x5c5   : > { %2783 = vmatpush.bf16.msra.mxu2 %v4634_v50 }
 0x5c6   : > { %2766 = vmatpush.bf16.msrb.mxu1 %v4562_v37 }
 0x5c8   : > { %2749 = vmatpush.bf16.msrb.mxu0 %v4490_v51  ;;  %v4716_v51 = vor.u32 %v5252_v47, %v4715_v45  ;;  %v4731_v47 = vld [vmem:[%s7460_s26 + $0x80] sm:$0xf] }
 0x5ca   : > { %2767 = vmatpush.bf16.msrb.mxu1 %v4554_v62  ;;  %v5270_v62 = vld [vmem:[%s7460_s26 + $0xf4] sm:$0xf0] }
 0x5cc   : > { %2750 = vmatpush.bf16.msrb.mxu0 %v4482_v6  ;;  %v5266_v6 = vld [vmem:[%s7460_s26 + $0xd4] sm:$0xf0] }
 0x5ce   : > { %2768 = vmatpush.bf16.msrb.mxu1 %v4546_v11  ;;  %v6579_v11 = vpack.c.bf16 %v2196_v7, %v2196_v7 }
 0x5d0   : > { %2751 = vmatpush.bf16.msrb.mxu0 %v4474_v24 }
 0x5d2   : > { %2769 = vmatpush.bf16.msrb.mxu1 %v4538_v30 }
 0x62b   : > { %v2087_v16 = vpop.f32.mrf.mxu0 }
 0x62c   : > { %v6388_v22 = vadd.f32 %v2087_v16, %v1897_v55  ;;  %v2101_v23 = vpop.f32.mrf.mxu1 }
 0x62d   : > { %v6395_v26 = vadd.f32 %v2101_v23, %v1898_v57 }
 0x631   : > { %v2073_v35 = vpop.f32.mrf.mxu3 }
 0x632   : > { %v6420_v41 = vadd.f32 %v2073_v35, %v1896_v28  ;;  %v2115_v42 = vpop.f32.mrf.mxu2 }
 0x633   : > { %v6433_v48 = vadd.f32 %v2115_v42, %v1899_v29  ;;  %v2089_v49 = vpop.f32.mrf.mxu0  ;;  %v5351_v42 = vld [vmem:[%s7410_s23 + $0x184] sm:$0xf] }
 0x634   : > { %v2090_v54 = vadd.f32 %v2089_v49, %v1897_v55  ;;  %v2103_v60 = vpop.f32.mrf.mxu1  ;;  %v5357_v55 = vld [vmem:[%s7410_s23 + $0x1b4] sm:$0xf]  ;;  %v4602_v50 = vor.u32 %v5351_v42, %v4599_v44  ;;  %v4725_v44 = vld [vmem:[%s7460_s26 + $0x78] sm:$0xf0] }
 0x635   : > { %v2104_v63 = vadd.f32 %v2103_v60, %v1898_v57  ;;  %v4623_v57 = vld [vmem:[%s7410_s23 + $0x1b8] sm:$0xf0]  ;;  %v4787_v60 = vld [vmem:[%s7460_s26 + $0xf0] sm:$0xf] }
 0x636   : > { %2125 = vst [vmem:[#allocation4 + $0x28] sm:$0x7] %v2090_v54  ;;  %v4626_v3 = vor.u32 %v5357_v55, %v4623_v57  ;;  %v4699_v55 = vld [vmem:[%s7460_s26 + $0x40] sm:$0xf]  ;;  %v5248_v57 = vld [vmem:[%s7460_s26 + $0x44] sm:$0xf0] }
 0x637   : > { %2126 = vst [vmem:[#allocation4 + $0x8] sm:$0x7] %v2104_v63  ;;  %v4788_v63 = vor.u32 %v5270_v62, %v4787_v60  ;;  %v4700_v8 = vor.u32 %v5248_v57, %v4699_v55  ;;  %v5269_v62 = vld [vmem:[%s7460_s26 + $0xf4] sm:$0xf]  ;;  %v4781_v55 = vld [vmem:[%s7460_s26 + $0xe8] sm:$0xf0] }
 0x638   : > { %2784 = vmatpush.bf16.msra.mxu2 %v4626_v3  ;;  %v2195_v3 = vld [vmem:[#allocation4 + $0x48] sm:$0xff]  ;;  %v5247_v57 = vld [vmem:[%s7460_s26 + $0x44] sm:$0xf] }
 0x639   : > { %v2075_v10 = vpop.f32.mrf.mxu3  ;;  %v6577_v9 = vpack.c.bf16 %v2195_v3, %v2195_v3  ;;  %v4701_v3 = vld [vmem:[%s7460_s26 + $0x48] sm:$0xf0] }
 0x63a   : > { %v2076_v15 = vadd.f32 %v2075_v10, %v1896_v28  ;;  %v2117_v16 = vpop.f32.mrf.mxu2  ;;  %v4415_v28 = vld [vmem:[%s7410_s23 + $0x18] sm:$0xf0]  ;;  %v4772_v10 = vor.u32 %v5266_v6, %v4771_v5  ;;  %v5265_v5 = vld [vmem:[%s7460_s26 + $0xd4] sm:$0xf]  ;;  %v4704_v7 = vor.u32 %v5247_v57, %v4701_v3 }
 0x63b   : > { %v2118_v23 = vadd.f32 %v2117_v16, %v1899_v29  ;;  %v4418_v31 = vor.u32 %v5305_v27, %v4415_v28  ;;  %v4607_v29 = vld [vmem:[%s7410_s23 + $0x198] sm:$0xf0]  ;;  %v4692_v16 = vor.u32 %v5246_v14, %v4691_v13  ;;  %v4755_v27 = vld [vmem:[%s7460_s26 + $0xb0] sm:$0xf]  ;;  %v5262_v28 = vld [vmem:[%s7460_s26 + $0xb4] sm:$0xf0] }
 0x63c   : > { %2124 = vst [vmem:[#allocation4 + $0x30] sm:$0x7] %v2076_v15  ;;  %2785 = vmatpush.bf16.msra.mxu2 %v4618_v18  ;;  %v4610_v33 = vor.u32 %v5353_v46, %v4607_v29  ;;  %v2197_v15 = vld [vmem:[#allocation4 + $0x10] sm:$0xff]  ;;  %v5264_v18 = vld [vmem:[%s7460_s26 + $0xc4] sm:$0xf0]  ;;  %v4756_v30 = vor.u32 %v5262_v28, %v4755_v27 }
 0x63d   : > { %2127 = vst [vmem:[#allocation4 + $0x40] sm:$0x7] %v2118_v23  ;;  %v2191_v32 = vld [vmem:[#allocation4 + $0x28] sm:$0xff]  ;;  %2732 = vmatpush.bf16.msrb.mxu3 %v4418_v31  ;;  %v4764_v21 = vor.u32 %v5264_v18, %v4763_v17  ;;  %v5244_v23 = vld [vmem:[%s7460_s26 + $0x24] sm:$0xf0]  ;;  %v6603_v24 = vpack.c.bf16 %v2197_v15, %v2197_v15 }
 0x63e   : > { %v6508_v34 = vpack.c.bf16 %v2191_v32, %v6388_v22  ;;  %v2192_v35 = vld [vmem:[#allocation4 + $0x8] sm:$0xff]  ;;  %v5303_v22 = vld [vmem:[%s7410_s23 + $0x4] sm:$0xf]  ;;  %v4684_v25 = vor.u32 %v5244_v23, %v4683_v19  ;;  %v5242_v46 = vld [vmem:[%s7460_s26 + $0x14] sm:$0xf0] }
 0x63f   : > { %v6511_v37 = vpack.c.bf16 %v2192_v35, %v6395_v26  ;;  %v4407_v26 = vld [vmem:[%s7410_s23 + $0x8] sm:$0xf0]  ;;  %v4675_v31 = vld [vmem:[%s7460_s26 + $0x10] sm:$0xf]  ;;  %v4747_v29 = vld [vmem:[%s7460_s26 + $0xa0] sm:$0xf] }
 0x640   : > { %2680 = vmatmul.bf16.vlgmr.msra.gmra.mxu0 %v6508_v34  ;;  %2786 = vmatpush.bf16.msra.mxu2 %v4610_v33  ;;  %v4410_v43 = vor.u32 %v5303_v22, %v4407_v26  ;;  %v4676_v32 = vor.u32 %v5242_v46, %v4675_v31  ;;  %v5260_v33 = vld [vmem:[%s7460_s26 + $0xa4] sm:$0xf0]  ;;  %v4667_v35 = vld [vmem:[%s7460_s26] sm:$0xf]  ;;  %v5258_v22 = vld [vmem:[%s7460_s26 + $0x94] sm:$0xf0] }
 0x641   : > { %2698 = vmatmul.bf16.vlgmr.msra.gmra.mxu1 %v6511_v37  ;;  %v4748_v39 = vor.u32 %v5260_v33, %v4747_v29  ;;  %v4668_v26 = vor.u32 %v5240_v38, %v4667_v35  ;;  %v4773_v6 = vld [vmem:[%s7460_s26 + $0xd8] sm:$0xf0]  ;;  %v5263_v14 = vld [vmem:[%s7460_s26 + $0xc4] sm:$0xf]  ;;  %v4765_v15 = vld [vmem:[%s7460_s26 + $0xc8] sm:$0xf0] }
 0x642   : > { %3178 = vmatpush.bf16.msra.mxu1 %v4724_v40  ;;  %2733 = vmatpush.bf16.msrb.mxu3 %v4410_v43  ;;  %v4739_v40 = vld [vmem:[%s7460_s26 + $0x90] sm:$0xf]  ;;  %v5253_v43 = vld [vmem:[%s7460_s26 + $0x74] sm:$0xf]  ;;  %v4768_v17 = vor.u32 %v5263_v14, %v4765_v15  ;;  %v4685_v18 = vld [vmem:[%s7460_s26 + $0x28] sm:$0xf0] }
 0x643   : > { %v2190_v49 = vld [vmem:[#allocation4 + $0x30] sm:$0xff]  ;;  %v4740_v42 = vor.u32 %v5258_v22, %v4739_v40  ;;  %v4728_v45 = vor.u32 %v5253_v43, %v4725_v44  ;;  %v5241_v27 = vld [vmem:[%s7460_s26 + $0x14] sm:$0xf]  ;;  %v4749_v46 = vld [vmem:[%s7460_s26 + $0xa8] sm:$0xf0] }
 0x644   : > { %v6540_v52 = vpack.c.bf16 %v2190_v49, %v6420_v41  ;;  %v2193_v53 = vld [vmem:[#allocation4 + $0x40] sm:$0xff]  ;;  %2787 = vmatpush.bf16.msra.mxu2 %v4602_v50  ;;  %v4707_v41 = vld [vmem:[%s7460_s26 + $0x50] sm:$0xf]  ;;  %v5251_v50 = vld [vmem:[%s7460_s26 + $0x64] sm:$0xf] }
 0x645   : > { %v6543_v54 = vpack.c.bf16 %v2193_v53, %v6433_v48  ;;  %v5250_v48 = vld [vmem:[%s7460_s26 + $0x54] sm:$0xf0]  ;;  %v5256_v49 = vld [vmem:[%s7460_s26 + $0x84] sm:$0xf0]  ;;  %v4717_v53 = vld [vmem:[%s7460_s26 + $0x68] sm:$0xf0] }
 0x646   : > { %2662 = vmatmul.bf16.vlgmr.msra.gmra.mxu3 %v6540_v52  ;;  %3179 = vmatpush.bf16.msra.mxu1 %v4716_v51  ;;  %v4708_v1 = vor.u32 %v5250_v48, %v4707_v41  ;;  %v4732_v51 = vor.u32 %v5256_v49, %v4731_v47  ;;  %v4720_v60 = vor.u32 %v5251_v50, %v4717_v53  ;;  %v5249_v48 = vld [vmem:[%s7460_s26 + $0x54] sm:$0xf]  ;;  %v4757_v23 = vld [vmem:[%s7460_s26 + $0xb8] sm:$0xf0]  ;;  %v5239_v29 = vld [vmem:[%s7460_s26 + $0x4] sm:$0xf] }
 0x647   : > { %2716 = vmatmul.bf16.vlgmr.msrb.gmra.mxu2 %v6543_v54  ;;  %v4712_v2 = vor.u32 %v5249_v48, %v4709_v0  ;;  %v4677_v28 = vld [vmem:[%s7460_s26 + $0x18] sm:$0xf0]  ;;  %v5257_v35 = vld [vmem:[%s7460_s26 + $0x94] sm:$0xf]  ;;  %v5255_v22 = vld [vmem:[%s7460_s26 + $0x84] sm:$0xf] }
 0x648   : > { %3196 = vmatpush.bf16.msrb.mxu2 %v4788_v63  ;;  %v4789_v63 = vld [vmem:[%s7460_s26 + $0xf8] sm:$0xf0]  ;;  %v4680_v31 = vor.u32 %v5241_v27, %v4677_v28  ;;  %v5284_v14 = vld [vmem:[%s7460_s26 + $0x164] sm:$0xf0]  ;;  %v4827_v28 = vld [vmem:[%s7460_s26 + $0x140] sm:$0xf] }
 0x649   : > { %v4792_v41 = vor.u32 %v5269_v62, %v4789_v63  ;;  %v4741_v38 = vld [vmem:[%s7460_s26 + $0x98] sm:$0xf0] }
 0x64a   : > { %3180 = vmatpush.bf16.msra.mxu1 %v4708_v1  ;;  %v5267_v1 = vld [vmem:[%s7460_s26 + $0xe4] sm:$0xf]  ;;  %v4744_v40 = vor.u32 %v5257_v35, %v4741_v38 }
 0x64c   : > { %3197 = vmatpush.bf16.msrb.mxu2 %v4780_v4  ;;  %v4784_v4 = vor.u32 %v5267_v1, %v4781_v55 }
 0x64e   : > { %3181 = vmatpush.bf16.msra.mxu1 %v4700_v8  ;;  %v4776_v8 = vor.u32 %v5265_v5, %v4773_v6  ;;  %v5286_v5 = vld [vmem:[%s7460_s26 + $0x174] sm:$0xf0] }
 0x650   : > { %2685 = vmatmul.bf16.gmra.mxu0 %v6577_v9  ;;  %3198 = vmatpush.bf16.msrb.mxu2 %v4772_v10  ;;  %v5245_v10 = vld [vmem:[%s7460_s26 + $0x34] sm:$0xf] }
 0x651   : > { %2703 = vmatmul.bf16.gmra.mxu1 %v6579_v11  ;;  %v4696_v13 = vor.u32 %v5245_v10, %v4693_v12 }
 0x652   : > { %3182 = vmatpush.bf16.msra.mxu1 %v4692_v16  ;;  %v5243_v16 = vld [vmem:[%s7460_s26 + $0x24] sm:$0xf] }
 0x653   : > { %v4688_v19 = vor.u32 %v5243_v16, %v4685_v18  ;;  %v4835_v18 = vld [vmem:[%s7460_s26 + $0x150] sm:$0xf] }
 0x654   : > { %3199 = vmatpush.bf16.msrb.mxu2 %v4764_v21  ;;  %v5261_v21 = vld [vmem:[%s7460_s26 + $0xb4] sm:$0xf] }
 0x656   : > { %2667 = vmatmul.bf16.gmra.mxu3 %v6598_v20  ;;  %3183 = vmatpush.bf16.msra.mxu1 %v4684_v25  ;;  %v4760_v25 = vor.u32 %v5261_v21, %v4757_v23  ;;  %v2181_v21 = vadd.s32 16, %v5673_v58 }
 0x657   : > { %2721 = vmatmul.bf16.gmra.mxu2 %v6603_v24 }
 0x658   : > { %3200 = vmatpush.bf16.msrb.mxu2 %v4756_v30  ;;  %v5259_v30 = vld [vmem:[%s7460_s26 + $0xa4] sm:$0xf] }
 0x659   : > { %v4752_v33 = vor.u32 %v5259_v30, %v4749_v46  ;;  %v5280_v30 = vld [vmem:[%s7460_s26 + $0x144] sm:$0xf0] }
 0x65a   : > { %3184 = vmatpush.bf16.msra.mxu1 %v4676_v32  ;;  %v4669_v32 = vld [vmem:[%s7460_s26 + $0x8] sm:$0xf0]  ;;  %v4828_v58 = vor.u32 %v5280_v30, %v4827_v28  ;;  %v4891_v30 = vld [vmem:[%s7460_s26 + $0x1c0] sm:$0xf] }
 0x65c   : > { %3201 = vmatpush.bf16.msrb.mxu2 %v4748_v39  ;;  %v4672_v39 = vor.u32 %v5239_v29, %v4669_v32  ;;  %v4819_v32 = vld [vmem:[%s7460_s26 + $0x130] sm:$0xf] }
 0x65e   : > { %3185 = vmatpush.bf16.msra.mxu1 %v4668_v26  ;;  %v4733_v26 = vld [vmem:[%s7460_s26 + $0x88] sm:$0xf0] }
 0x660   : > { %2752 = vmatmul.bf16.vlgmr.msrb.gmra.mxu0 %v6508_v34  ;;  %3202 = vmatpush.bf16.msrb.mxu2 %v4740_v42  ;;  %v4736_v42 = vor.u32 %v5255_v22, %v4733_v26  ;;  %v4811_v22 = vld [vmem:[%s7460_s26 + $0x120] sm:$0xf]  ;;  %v5276_v26 = vld [vmem:[%s7460_s26 + $0x124] sm:$0xf0] }
 0x661   : > { %2770 = vmatmul.bf16.vlgmr.msrb.gmra.mxu1 %v6511_v37 }
 0x662   : > { %3250 = vmatpush.bf16.msrb.mxu1 %v4728_v45 }
 0x664   : > { %3203 = vmatpush.bf16.msrb.mxu2 %v4732_v51 }
 0x666   : > { %2734 = vmatmul.bf16.vlgmr.msrb.gmra.mxu3 %v6540_v52  ;;  %3251 = vmatpush.bf16.msrb.mxu1 %v4720_v60 }
 0x667   : > { %2788 = vmatmul.bf16.vlgmr.msra.gmra.mxu2 %v6543_v54 }
 0x668   : > { %3268 = vmatpush.bf16.msra.mxu2 %v4792_v41 }
 0x66a   : > { %3252 = vmatpush.bf16.msrb.mxu1 %v4712_v2 }
 0x66c   : > { %3269 = vmatpush.bf16.msra.mxu2 %v4784_v4  ;;  %v4851_v4 = vld [vmem:[%s7460_s26 + $0x170] sm:$0xf] }
 0x66d   : > { %v4852_v12 = vor.u32 %v5286_v5, %v4851_v4  ;;  %v4845_v4 = vld [vmem:[%s7460_s26 + $0x168] sm:$0xf0] }
 0x66e   : > { %3253 = vmatpush.bf16.msrb.mxu1 %v4704_v7 }
 0x670   : > { %2757 = vmatmul.bf16.gmra.mxu0 %v6577_v9  ;;  %3270 = vmatpush.bf16.msra.mxu2 %v4776_v8 }
 0x671   : > { %2775 = vmatmul.bf16.gmra.mxu1 %v6579_v11 }
 0x672   : > { %3254 = vmatpush.bf16.msrb.mxu1 %v4696_v13  ;;  %v4843_v13 = vld [vmem:[%s7460_s26 + $0x160] sm:$0xf] }
 0x674   : > { %3271 = vmatpush.bf16.msra.mxu2 %v4768_v17  ;;  %v4844_v17 = vor.u32 %v5284_v14, %v4843_v13  ;;  %v5281_v14 = vld [vmem:[%s7460_s26 + $0x154] sm:$0xf] }
 0x676   : > { %2739 = vmatmul.bf16.gmra.mxu3 %v6598_v20  ;;  %3255 = vmatpush.bf16.msrb.mxu1 %v4688_v19  ;;  %v5282_v19 = vld [vmem:[%s7460_s26 + $0x154] sm:$0xf0] }
 0x677   : > { %2793 = vmatmul.bf16.gmra.mxu2 %v6603_v24  ;;  %v4836_v27 = vor.u32 %v5282_v19, %v4835_v18  ;;  %v4899_v18 = vld [vmem:[%s7460_s26 + $0x1d0] sm:$0xf]  ;;  %v5298_v19 = vld [vmem:[%s7460_s26 + $0x1d4] sm:$0xf0] }
 0x678   : > { %3272 = vmatpush.bf16.msra.mxu2 %v4760_v25  ;;  %v4900_v28 = vor.u32 %v5298_v19, %v4899_v18  ;;  %v4877_v18 = vld [vmem:[%s7460_s26 + $0x1a8] sm:$0xf0] }
 0x67a   : > { %3256 = vmatpush.bf16.msrb.mxu1 %v4680_v31  ;;  %v2182_v31 = vadd.s32 1, %v2181_v21 }
 0x67c   : > { %3273 = vmatpush.bf16.msra.mxu2 %v4752_v33  ;;  %v5278_v33 = vld [vmem:[%s7460_s26 + $0x134] sm:$0xf0]  ;;  %vm2183_vm10 = vcmp.eq.s32.totalorder %v5675_v59, %v2182_v31  ;;  %v5296_v31 = vld [vmem:[%s7460_s26 + $0x1c4] sm:$0xf0] }
 0x67e   : > { %3257 = vmatpush.bf16.msrb.mxu1 %v4672_v39  ;;  %v4820_v39 = vor.u32 %v5278_v33, %v4819_v32  ;;  %v4892_v33 = vor.u32 %v5296_v31, %v4891_v30  ;;  %v4861_v30 = vld [vmem:[%s7460_s26 + $0x188] sm:$0xf0] }
 0x680   : > { %3274 = vmatpush.bf16.msra.mxu2 %v4744_v40  ;;  %v6794_v40 = vsel %vm2183_vm10, 1.0, %v5438_v56  ;;  %v4803_v56 = vld [vmem:[%s7460_s26 + $0x110] sm:$0xf] }
 0x681   : > { %3186 = vmatmul.bf16.vlgmr.msra.gmra.mxu1 %v6540_v52 }
 0x684   : > { %3275 = vmatpush.bf16.msra.mxu2 %v4736_v42 }
 0x687   : > { %3204 = vmatmul.bf16.vlgmr.msrb.gmra.mxu2 %v6508_v34 }
 0x691   : > { %3191 = vmatmul.bf16.gmra.mxu1 %v6598_v20 }
 0x697   : > { %3209 = vmatmul.bf16.gmra.mxu2 %v6577_v9 }
 0x6a1   : > { %3258 = vmatmul.bf16.vlgmr.msrb.gmra.mxu1 %v6540_v52 }
 0x6a7   : > { %3276 = vmatmul.bf16.vlgmr.msra.gmra.mxu2 %v6508_v34 }
 0x6b1   : > { %3263 = vmatmul.bf16.gmra.mxu1 %v6598_v20 }
 0x6b7   : > { %3281 = vmatmul.bf16.gmra.mxu2 %v6577_v9 }
 0x6bd   : > { %v2681_v43 = vpop.f32.mrf.mxu0 }
 0x6be   : > { %v2699_v44 = vpop.f32.mrf.mxu1 }
 0x6c5   : > { %v2683_v45 = vpop.f32.mrf.mxu0 }
 0x6c6   : > { %v2701_v47 = vpop.f32.mrf.mxu1 }
 0x6c9   : > { %v2663_v49 = vpop.f32.mrf.mxu3 }
 0x6ca   : > { %v2717_v50 = vpop.f32.mrf.mxu2  ;;  %v2682_v0 = vadd.f32 %v2681_v43, %v2663_v49  ;;  %v4812_v43 = vor.u32 %v5276_v26, %v4811_v22  ;;  %v5275_v22 = vld [vmem:[%s7460_s26 + $0x124] sm:$0xf]  ;;  %v4813_v26 = vld [vmem:[%s7460_s26 + $0x128] sm:$0xf0] }
 0x6cc   : > { %v2700_v55 = vadd.f32 %v2699_v44, %v2682_v0  ;;  %v5274_v44 = vld [vmem:[%s7460_s26 + $0x114] sm:$0xf0] }
 0x6cd   : > { %v2686_v51 = vpop.f32.mrf.mxu0 }
 0x6ce   : > { %v2704_v53 = vpop.f32.mrf.mxu1  ;;  %v2718_v8 = vadd.f32 %v2717_v50, %v2700_v55 }
 0x6d1   : > { %v2665_v60 = vpop.f32.mrf.mxu3 }
 0x6d2   : > { %v2719_v62 = vpop.f32.mrf.mxu2  ;;  %v2684_v48 = vadd.f32 %v2683_v45, %v2665_v60  ;;  %v4795_v60 = vld [vmem:[%s7460_s26 + $0x100] sm:$0xf] }
 0x6d4   : > { %v2702_v20 = vadd.f32 %v2701_v47, %v2684_v48  ;;  %v5285_v48 = vld [vmem:[%s7460_s26 + $0x174] sm:$0xf] }
 0x6d5   : > { %v2688_v63 = vpop.f32.mrf.mxu0 }
 0x6d6   : > { %v2706_v41 = vpop.f32.mrf.mxu1  ;;  %v2720_v6 = vadd.f32 %v2719_v62, %v2702_v20  ;;  %v5272_v62 = vld [vmem:[%s7460_s26 + $0x104] sm:$0xf0] }
 0x6d7   : > { %v4796_v20 = vor.u32 %v5272_v62, %v4795_v60  ;;  %v5271_v62 = vld [vmem:[%s7460_s26 + $0x104] sm:$0xf] }
 0x6d9   : > { %v2668_v52 = vpop.f32.mrf.mxu3 }
 0x6da   : > { %v2687_v34 = vadd.f32 %v2686_v51, %v2668_v52  ;;  %v2722_v1 = vpop.f32.mrf.mxu2  ;;  %v4853_v52 = vld [vmem:[%s7460_s26 + $0x178] sm:$0xf0] }
 0x6db   : > { %v4856_v55 = vor.u32 %v5285_v48, %v4853_v52  ;;  %v4859_v52 = vld [vmem:[%s7460_s26 + $0x180] sm:$0xf] }
 0x6dc   : > { %v2705_v2 = vadd.f32 %v2704_v53, %v2687_v34  ;;  %v4804_v53 = vor.u32 %v5274_v44, %v4803_v56  ;;  %v5292_v56 = vld [vmem:[%s7460_s26 + $0x1a4] sm:$0xf0]  ;;  %v4816_v44 = vor.u32 %v5275_v22, %v4813_v26  ;;  %v4971_v26 = vld [vmem:[%s7461_s24 + $0x60] sm:$0xf] }
 0x6dd   : > { %v2753_v9 = vpop.f32.mrf.mxu0 }
 0x6de   : > { %v2723_v57 = vadd.f32 %v2722_v1, %v2705_v2  ;;  %v6755_v3 = vpop.f32.mrf.mxu1  ;;  %v4915_v2 = vld [vmem:[%s7460_s26 + $0x1f0] sm:$0xf] }
 0x6e0   : > { %2819 = vmatpush.msra.mxu3 %v2723_v57 }
 0x6e1   : > { %v2670_v7 = vpop.f32.mrf.mxu3 }
 0x6e2   : > { %v2724_v10 = vpop.f32.mrf.mxu2  ;;  %2820 = vmatpush.msra.mxu3 %v2720_v6 }
 0x6e3   : > { %v4907_v10 = vld [vmem:[%s7460_s26 + $0x1e0] sm:$0xf] }
 0x6e4   : > { %2821 = vmatpush.msra.mxu3 %v2718_v8 }
 0x6e5   : > { %v2755_v15 = vpop.f32.mrf.mxu0  ;;  %4659 = vmatmul.msk.f32.vlgmr.msra.gmra.mxu3 %vm2798_vm9, %v5680_v61 }
 0x6e6   : > { %v2773_v16 = vpop.f32.mrf.mxu1  ;;  %3214 = vmatpush.bf16.msrb.mxu3 %v4852_v12  ;;  %v5300_v12 = vld [vmem:[%s7460_s26 + $0x1e4] sm:$0xf0] }
 0x6e9   : > { %v2735_v23 = vpop.f32.mrf.mxu3 }
 0x6ea   : > { %v2789_v25 = vpop.f32.mrf.mxu2  ;;  %3215 = vmatpush.bf16.msrb.mxu3 %v4844_v17  ;;  %v2754_v49 = vadd.f32 %v2753_v9, %v2735_v23  ;;  %v5302_v9 = vld [vmem:[%s7460_s26 + $0x1f4] sm:$0xf0]  ;;  %v4908_v17 = vor.u32 %v5300_v12, %v4907_v10  ;;  %v5279_v23 = vld [vmem:[%s7460_s26 + $0x144] sm:$0xf]  ;;  %v4893_v12 = vld [vmem:[%s7460_s26 + $0x1c8] sm:$0xf0] }
 0x6eb   : > { %v4916_v8 = vor.u32 %v5302_v9, %v4915_v2  ;;  %v4917_v2 = vld [vmem:[%s7460_s26 + $0x1f8] sm:$0xf0]  ;;  %v5295_v10 = vld [vmem:[%s7460_s26 + $0x1c4] sm:$0xf] }
 0x6ec   : > { %v2772_v0 = vadd.f32 %v6755_v3, %v2754_v49  ;;  %v5283_v3 = vld [vmem:[%s7460_s26 + $0x164] sm:$0xf] }
 0x6ed   : > { %4660 = vmatmul.msk.f32.gmra.mxu3 %vm2798_vm9, %v5846_v36  ;;  %v2758_v46 = vpop.f32.mrf.mxu0  ;;  %v4848_v13 = vor.u32 %v5283_v3, %v4845_v4  ;;  %v4909_v3 = vld [vmem:[%s7460_s26 + $0x1e8] sm:$0xf0] }
 0x6ee   : > { %v2776_v29 = vpop.f32.mrf.mxu1  ;;  %3216 = vmatpush.bf16.msrb.mxu3 %v4836_v27  ;;  %v2790_v6 = vadd.f32 %v2789_v25, %v2772_v0  ;;  %v4829_v25 = vld [vmem:[%s7460_s26 + $0x148] sm:$0xf0]  ;;  %v5288_v0 = vld [vmem:[%s7460_s26 + $0x184] sm:$0xf0] }
 0x6ef   : > { %v4860_v9 = vor.u32 %v5288_v0, %v4859_v52  ;;  %v4955_v52 = vld [vmem:[%s7461_s24 + $0x40] sm:$0xf]  ;;  %v5400_v0 = vld [vmem:[%s7461_s24 + $0x44] sm:$0xf0] }
 0x6f1   : > { %v2737_v35 = vpop.f32.mrf.mxu3 }
 0x6f2   : > { %v2791_v38 = vpop.f32.mrf.mxu2  ;;  %3217 = vmatpush.bf16.msrb.mxu3 %v4828_v58  ;;  %v2756_v45 = vadd.f32 %v2755_v15, %v2737_v35  ;;  %v4837_v15 = vld [vmem:[%s7460_s26 + $0x158] sm:$0xf0]  ;;  %v4883_v35 = vld [vmem:[%s7460_s26 + $0x1b0] sm:$0xf] }
 0x6f3   : > { %v4840_v21 = vor.u32 %v5281_v14, %v4837_v15  ;;  %v4821_v58 = vld [vmem:[%s7460_s26 + $0x138] sm:$0xf0]  ;;  %v5293_v14 = vld [vmem:[%s7460_s26 + $0x1b4] sm:$0xf] }
 0x6f4   : > { %v2774_v63 = vadd.f32 %v2773_v16, %v2756_v45  ;;  %v5273_v45 = vld [vmem:[%s7460_s26 + $0x114] sm:$0xf] }
 0x6f5   : > { %v2760_v42 = vpop.f32.mrf.mxu0  ;;  %4661 = vmatmul.msk.f32.gmra.mxu3 %vm2798_vm9, %v6794_v40 }
 0x6f6   : > { %v2778_v59 = vpop.f32.mrf.mxu1  ;;  %3218 = vmatpush.bf16.msrb.mxu3 %v4820_v39  ;;  %v2792_v57 = vadd.f32 %v2791_v38, %v2774_v63  ;;  %v5294_v38 = vld [vmem:[%s7460_s26 + $0x1b4] sm:$0xf0]  ;;  %v4797_v63 = vld [vmem:[%s7460_s26 + $0x108] sm:$0xf0] }
 0x6f7   : > { %v4884_v59 = vor.u32 %v5294_v38, %v4883_v35  ;;  %v4979_v35 = vld [vmem:[%s7461_s24 + $0x70] sm:$0xf] }
 0x6f9   : > { %v2740_v47 = vpop.f32.mrf.mxu3 }
 0x6fa   : > { %v2759_v50 = vadd.f32 %v2758_v46, %v2740_v47  ;;  %v2794_v51 = vpop.f32.mrf.mxu2  ;;  %3219 = vmatpush.bf16.msrb.mxu3 %v4812_v43  ;;  %v4832_v46 = vor.u32 %v5279_v23, %v4829_v25  ;;  %v4875_v43 = vld [vmem:[%s7460_s26 + $0x1a0] sm:$0xf]  ;;  %v4805_v47 = vld [vmem:[%s7460_s26 + $0x118] sm:$0xf0] }
 0x6fb   : > { %v4808_v60 = vor.u32 %v5273_v45, %v4805_v47  ;;  %v4869_v23 = vld [vmem:[%s7460_s26 + $0x198] sm:$0xf0]  ;;  %v4973_v45 = vld [vmem:[%s7461_s24 + $0x68] sm:$0xf0] }
 0x6fc   : > { %v2777_v41 = vadd.f32 %v2776_v29, %v2759_v50  ;;  %v5277_v29 = vld [vmem:[%s7460_s26 + $0x134] sm:$0xf]  ;;  %v4876_v50 = vor.u32 %v5292_v56, %v4875_v43  ;;  %v5403_v43 = vld [vmem:[%s7461_s24 + $0x64] sm:$0xf] }
 0x6fd   : > { %v4824_v39 = vor.u32 %v5277_v29, %v4821_v58  ;;  %v4976_v47 = vor.u32 %v5403_v43, %v4973_v45  ;;  %v5085_v43 = vld [vmem:[%s7462_s22 + $0x70] sm:$0xf] }
 0x6fe   : > { %v2795_v34 = vadd.f32 %v2794_v51, %v2777_v41  ;;  %v6823_v1 = vpop.f32.mrf.mxu1  ;;  %3220 = vmatpush.bf16.msrb.mxu3 %v4804_v53  ;;  %v4867_v51 = vld [vmem:[%s7460_s26 + $0x190] sm:$0xf]  ;;  %v5290_v53 = vld [vmem:[%s7460_s26 + $0x194] sm:$0xf0] }
 0x6ff   : > { %v4868_v48 = vor.u32 %v5290_v53, %v4867_v51  ;;  %v4963_v51 = vld [vmem:[%s7461_s24 + $0x50] sm:$0xf]  ;;  %v5402_v53 = vld [vmem:[%s7461_s24 + $0x54] sm:$0xf0] }
 0x700   : > { %2845 = vmatpush.msra.mxu0 %v2795_v34  ;;  %v4800_v34 = vor.u32 %v5271_v62, %v4797_v63  ;;  %v4964_v62 = vor.u32 %v5402_v53, %v4963_v51  ;;  %v4965_v63 = vld [vmem:[%s7461_s24 + $0x58] sm:$0xf0] }
 0x701   : > { %v2742_v5 = vpop.f32.mrf.mxu3 }
 0x702   : > { %v2796_v7 = vpop.f32.mrf.mxu2  ;;  %3221 = vmatpush.bf16.msrb.mxu3 %v4796_v20  ;;  %2846 = vmatpush.msra.mxu0 %v2792_v57  ;;  %v5301_v20 = vld [vmem:[%s7460_s26 + $0x1f4] sm:$0xf]  ;;  %v5299_v57 = vld [vmem:[%s7460_s26 + $0x1e4] sm:$0xf] }
 0x703   : > { %v4912_v5 = vor.u32 %v5299_v57, %v4909_v3  ;;  %v4901_v7 = vld [vmem:[%s7460_s26 + $0x1d8] sm:$0xf0]  ;;  %v4947_v57 = vld [vmem:[%s7461_s24 + $0x30] sm:$0xf]  ;;  %v5398_v3 = vld [vmem:[%s7461_s24 + $0x34] sm:$0xf0] }
 0x704   : > { %2847 = vmatpush.msra.mxu0 %v2790_v6  ;;  %v5297_v6 = vld [vmem:[%s7460_s26 + $0x1d4] sm:$0xf] }
 0x705   : > { %3222 = vmatmul.bf16.vlgmr.msrb.gmra.mxu3 %v6511_v37  ;;  %4662 = vmatmul.msk.f32.vlgmr.msra.gmra.mxu0 %vm2798_vm9, %v5680_v61 }
 0x706   : > { %3286 = vmatpush.bf16.msra.mxu3 %v4856_v55  ;;  %v6852_v16 = vpop.f32.mrf.mxu1  ;;  %3232 = vmatpush.bf16.msrb.mxu0 %v4916_v8  ;;  %v4920_v55 = vor.u32 %v5301_v20, %v4917_v2  ;;  %v4904_v8 = vor.u32 %v5297_v6, %v4901_v7  ;;  %v4956_v2 = vor.u32 %v5400_v0, %v4955_v52  ;;  %v5061_v0 = vld [vmem:[%s7462_s22 + $0x40] sm:$0xf] }
 0x70a   : > { %3287 = vmatpush.bf16.msra.mxu3 %v4848_v13  ;;  %v6866_v27 = vpop.f32.mrf.mxu2  ;;  %3233 = vmatpush.bf16.msrb.mxu0 %v4908_v17  ;;  %v4896_v13 = vor.u32 %v5295_v10, %v4893_v12  ;;  %v5291_v17 = vld [vmem:[%s7460_s26 + $0x1a4] sm:$0xf]  ;;  %v4949_v10 = vld [vmem:[%s7461_s24 + $0x38] sm:$0xf0] }
 0x70b   : > { %v4880_v19 = vor.u32 %v5291_v17, %v4877_v18  ;;  %v4941_v17 = vld [vmem:[%s7461_s24 + $0x28] sm:$0xf0] }
 0x70d   : > { %4663 = vmatmul.msk.f32.gmra.mxu0 %vm2798_vm9, %v5846_v36 }
 0x70e   : > { %3288 = vmatpush.bf16.msra.mxu3 %v4840_v21  ;;  %v6882_v32 = vpop.f32.mrf.mxu1  ;;  %3234 = vmatpush.bf16.msrb.mxu0 %v4900_v28  ;;  %v5289_v21 = vld [vmem:[%s7460_s26 + $0x194] sm:$0xf]  ;;  %v5287_v28 = vld [vmem:[%s7460_s26 + $0x184] sm:$0xf] }
 0x70f   : > { %v4872_v25 = vor.u32 %v5289_v21, %v4869_v23  ;;  %v4864_v31 = vor.u32 %v5287_v28, %v4861_v30  ;;  %v4931_v21 = vld [vmem:[%s7461_s24 + $0x10] sm:$0xf]  ;;  %v5394_v23 = vld [vmem:[%s7461_s24 + $0x14] sm:$0xf0] }
 0x710   : > { %v4932_v30 = vor.u32 %v5394_v23, %v4931_v21  ;;  %v5045_v21 = vld [vmem:[%s7462_s22 + $0x20] sm:$0xf]  ;;  %v5372_v23 = vld [vmem:[%s7462_s22 + $0x24] sm:$0xf0] }
 0x712   : > { %3289 = vmatpush.bf16.msra.mxu3 %v4832_v46  ;;  %v6896_v42 = vpop.f32.mrf.mxu2  ;;  %3235 = vmatpush.bf16.msrb.mxu0 %v4892_v33 }
 0x715   : > { %3227 = vmatmul.bf16.gmra.mxu3 %v6579_v11  ;;  %4664 = vmatmul.msk.f32.gmra.mxu0 %vm2798_vm9, %v6794_v40 }
 0x716   : > { %3290 = vmatpush.bf16.msra.mxu3 %v4824_v39  ;;  %v3194_v49 = vpop.f32.mrf.mxu1  ;;  %3236 = vmatpush.bf16.msrb.mxu0 %v4884_v59  ;;  %v4981_v39 = vld [vmem:[%s7461_s24 + $0x78] sm:$0xf0]  ;;  %v5404_v59 = vld [vmem:[%s7461_s24 + $0x64] sm:$0xf0] }
 0x71a   : > { %3291 = vmatpush.bf16.msra.mxu3 %v4816_v44  ;;  %v6925_v41 = vpop.f32.mrf.mxu2  ;;  %3237 = vmatpush.bf16.msrb.mxu0 %v4876_v50  ;;  %v4972_v44 = vor.u32 %v5404_v59, %v4971_v26 }
 0x71e   : > { %3292 = vmatpush.bf16.msra.mxu3 %v4808_v60  ;;  %3238 = vmatpush.bf16.msrb.mxu0 %v4868_v48  ;;  %v6987_v46 = vpop.f32.mrf.mxu1  ;;  %v5401_v60 = vld [vmem:[%s7461_s24 + $0x54] sm:$0xf] }
 0x71f   : > { %v4968_v48 = vor.u32 %v5401_v60, %v4965_v63  ;;  %v5077_v60 = vld [vmem:[%s7462_s22 + $0x60] sm:$0xf] }
 0x722   : > { %3293 = vmatpush.bf16.msra.mxu3 %v4800_v34  ;;  %v3212_v4 = vpop.f32.mrf.mxu2  ;;  %3239 = vmatpush.bf16.msrb.mxu0 %v4860_v9  ;;  %v5399_v34 = vld [vmem:[%s7461_s24 + $0x44] sm:$0xf]  ;;  %v4957_v9 = vld [vmem:[%s7461_s24 + $0x48] sm:$0xf0] }
 0x723   : > { %v5397_v4 = vld [vmem:[%s7461_s24 + $0x34] sm:$0xf] }
 0x724   : > { %v4952_v12 = vor.u32 %v5397_v4, %v4949_v10  ;;  %v5413_v4 = vld [vmem:[%s7461_s24 + $0xb4] sm:$0xf]  ;;  %v5374_v10 = vld [vmem:[%s7462_s22 + $0x34] sm:$0xf0] }
 0x725   : > { %3240 = vmatmul.bf16.vlgmr.msrb.gmra.mxu0 %v6543_v54  ;;  %3294 = vmatmul.bf16.vlgmr.msra.gmra.mxu3 %v6511_v37  ;;  %v4885_v37 = vld [vmem:[%s7460_s26 + $0x1b8] sm:$0xf0] }
 0x726   : > { %3304 = vmatpush.bf16.msra.mxu0 %v4920_v55  ;;  %v4888_v15 = vor.u32 %v5293_v14, %v4885_v37  ;;  %v6993_v58 = vpop.f32.mrf.mxu1  ;;  %v4960_v55 = vor.u32 %v5399_v34, %v4957_v9  ;;  %v5396_v14 = vld [vmem:[%s7461_s24 + $0x24] sm:$0xf0]  ;;  %v5395_v37 = vld [vmem:[%s7461_s24 + $0x24] sm:$0xf] }
 0x727   : > { %v4944_v18 = vor.u32 %v5395_v37, %v4941_v17  ;;  %v5376_v34 = vld [vmem:[%s7462_s22 + $0x44] sm:$0xf0]  ;;  %v5003_v37 = vld [vmem:[%s7461_s24 + $0xa0] sm:$0xf] }
 0x72a   : > { %3305 = vmatpush.bf16.msra.mxu0 %v4912_v5 }
 0x72e   : > { %3306 = vmatpush.bf16.msra.mxu0 %v4904_v8  ;;  %v7023_v49 = vpop.f32.mrf.mxu1  ;;  %v4948_v8 = vor.u32 %v5398_v3, %v4947_v57  ;;  %v5011_v57 = vld [vmem:[%s7461_s24 + $0xb0] sm:$0xf]  ;;  %v5414_v3 = vld [vmem:[%s7461_s24 + $0xb4] sm:$0xf0] }
 0x732   : > { %3307 = vmatpush.bf16.msra.mxu0 %v4896_v13  ;;  %v4939_v13 = vld [vmem:[%s7461_s24 + $0x20] sm:$0xf] }
 0x735   : > { %3245 = vmatmul.bf16.gmra.mxu0 %v6603_v24  ;;  %3299 = vmatmul.bf16.gmra.mxu3 %v6579_v11  ;;  %v6989_v11 = vpop.f32.mrf.mxu2 }
 0x736   : > { %3308 = vmatpush.bf16.msra.mxu0 %v4888_v15  ;;  %v3266_v5 = vpop.f32.mrf.mxu1  ;;  %v4940_v15 = vor.u32 %v5396_v14, %v4939_v13 }
 0x73a   : > { %3309 = vmatpush.bf16.msra.mxu0 %v4880_v19 }
 0x73d   : > { %v6995_v33 = vpop.f32.mrf.mxu2 }
 0x73e   : > { %3310 = vmatpush.bf16.msra.mxu0 %v4872_v25  ;;  %v5393_v25 = vld [vmem:[%s7461_s24 + $0x14] sm:$0xf] }
 0x742   : > { %3311 = vmatpush.bf16.msra.mxu0 %v4864_v31  ;;  %v4933_v31 = vld [vmem:[%s7461_s24 + $0x18] sm:$0xf0] }
 0x745   : > { %3312 = vmatmul.bf16.vlgmr.msra.gmra.mxu0 %v6543_v54  ;;  %v5406_v54 = vld [vmem:[%s7461_s24 + $0x74] sm:$0xf0]  ;;  %v7025_v50 = vpop.f32.mrf.mxu2 }
 0x746   : > { %v4980_v38 = vor.u32 %v5406_v54, %v4979_v35  ;;  %v4936_v54 = vor.u32 %v5393_v25, %v4933_v31  ;;  %v5046_v31 = vor.u32 %v5372_v23, %v5045_v21 }
 0x748   : > { %3518 = vmatpush.bf16.msra.mxu1 %v4980_v38  ;;  %v4923_v38 = vld [vmem:[%s7461_s24] sm:$0xf] }
 0x74c   : > { %3519 = vmatpush.bf16.msra.mxu1 %v4972_v44  ;;  %v5382_v44 = vld [vmem:[%s7462_s22 + $0x74] sm:$0xf0] }
 0x74d   : > { %v3284_v6 = vpop.f32.mrf.mxu2 }
 0x750   : > { %3520 = vmatpush.bf16.msra.mxu1 %v4964_v62  ;;  %v5380_v62 = vld [vmem:[%s7462_s22 + $0x64] sm:$0xf0] }
 0x751   : > { %v5078_v63 = vor.u32 %v5380_v62, %v5077_v60  ;;  %v5408_v60 = vld [vmem:[%s7461_s24 + $0x84] sm:$0xf0]  ;;  %v5407_v62 = vld [vmem:[%s7461_s24 + $0x84] sm:$0xf] }
 0x754   : > { %3521 = vmatpush.bf16.msra.mxu1 %v4956_v2  ;;  %v5062_v2 = vor.u32 %v5376_v34, %v5061_v0  ;;  %v5368_v0 = vld [vmem:[%s7462_s22 + $0x4] sm:$0xf0] }
 0x755   : > { %3317 = vmatmul.bf16.gmra.mxu0 %v6603_v24  ;;  %v5405_v24 = vld [vmem:[%s7461_s24 + $0x74] sm:$0xf] }
 0x756   : > { %v4984_v22 = vor.u32 %v5405_v24, %v4981_v39  ;;  %v5392_v39 = vld [vmem:[%s7461_s24 + $0x4] sm:$0xf0] }
 0x757   : > { %v4924_v26 = vor.u32 %v5392_v39, %v4923_v38  ;;  %v5410_v38 = vld [vmem:[%s7461_s24 + $0x94] sm:$0xf0]  ;;  %v5409_v39 = vld [vmem:[%s7461_s24 + $0x94] sm:$0xf] }
 0x758   : > { %3554 = vmatpush.bf16.msrb.mxu3 %v4984_v22  ;;  %3522 = vmatpush.bf16.msra.mxu1 %v4948_v8  ;;  %v5391_v22 = vld [vmem:[%s7461_s24 + $0x4] sm:$0xf]  ;;  %v5012_v8 = vor.u32 %v5414_v3, %v5011_v57 }
 0x75a   : > { %3540 = vmatpush.bf16.msrb.mxu2 %v5012_v8 }
 0x75c   : > { %3555 = vmatpush.bf16.msrb.mxu3 %v4976_v47  ;;  %3523 = vmatpush.bf16.msra.mxu1 %v4940_v15  ;;  %v5086_v47 = vor.u32 %v5382_v44, %v5085_v43  ;;  %v5412_v15 = vld [vmem:[%s7461_s24 + $0xa4] sm:$0xf0]  ;;  %v5370_v43 = vld [vmem:[%s7462_s22 + $0x14] sm:$0xf0] }
 0x760   : > { %3556 = vmatpush.bf16.msrb.mxu3 %v4968_v48  ;;  %3524 = vmatpush.bf16.msra.mxu1 %v4932_v30 }
 0x764   : > { %3557 = vmatpush.bf16.msrb.mxu3 %v4960_v55  ;;  %3525 = vmatpush.bf16.msra.mxu1 %v4924_v26 }
 0x768   : > { %v6991_v29 = vpop.f32.mrf.mxu3  ;;  %3558 = vmatpush.bf16.msrb.mxu3 %v4952_v12 }
 0x769   : > { %v3188_v9 = vadd.f32 %v6823_v1, %v6991_v29  ;;  %v5013_v1 = vld [vmem:[%s7461_s24 + $0xb8] sm:$0xf0]  ;;  %v5053_v29 = vld [vmem:[%s7462_s22 + $0x30] sm:$0xf] }
 0x76a   : > { %v5016_v13 = vor.u32 %v5413_v4, %v5013_v1  ;;  %v5054_v14 = vor.u32 %v5374_v10, %v5053_v29  ;;  %v5381_v4 = vld [vmem:[%s7462_s22 + $0x74] sm:$0xf]  ;;  %v5379_v29 = vld [vmem:[%s7462_s22 + $0x64] sm:$0xf]  ;;  %v5079_v10 = vld [vmem:[%s7462_s22 + $0x68] sm:$0xf0] }
 0x76b   : > { %v3206_v12 = vadd.f32 %v6866_v27, %v3188_v9  ;;  %v5411_v27 = vld [vmem:[%s7461_s24 + $0xa4] sm:$0xf] }
 0x76c   : > { %3559 = vmatpush.bf16.msrb.mxu3 %v4944_v18  ;;  %3576 = vmatpush.bf16.msrb.mxu0 %v5016_v13  ;;  %v5004_v18 = vor.u32 %v5412_v15, %v5003_v37  ;;  %v5071_v37 = vld [vmem:[%s7462_s22 + $0x58] sm:$0xf0]  ;;  %v5375_v15 = vld [vmem:[%s7462_s22 + $0x44] sm:$0xf] }
 0x76e   : > { %3541 = vmatpush.bf16.msrb.mxu2 %v5004_v18 }
 0x770   : > { %v7018_v56 = vpop.f32.mrf.mxu3  ;;  %3560 = vmatpush.bf16.msrb.mxu3 %v4936_v54  ;;  %v4995_v54 = vld [vmem:[%s7461_s24 + $0x90] sm:$0xf] }
 0x771   : > { %v3190_v5 = vadd.f32 %v6852_v16, %v7018_v56  ;;  %v7163_v16 = vld [vmem:[%s7463_s1] sm:$0x3]  ;;  %s899_s1 = scalar_lea.vmem %s7465_s12, %s5415_s25 }
 0x773   : > { %v3208_v17 = vadd.f32 %v6896_v42, %v3190_v5  ;;  %v5087_v5 = vld [vmem:[%s7462_s22 + $0x78] sm:$0xf0] }
 0x774   : > { %v5090_v8 = vor.u32 %v5381_v4, %v5087_v5 }
 0x778   : > { %v7048_v20 = vpop.f32.mrf.mxu3 }
 0x782   : > { %v7062_v7 = vpop.f32.mrf.mxu0 }
 0x783   : > { %v3260_v21 = vadd.f32 %v6987_v46, %v7062_v7  ;;  %v5371_v46 = vld [vmem:[%s7462_s22 + $0x24] sm:$0xf]  ;;  %v5047_v7 = vld [vmem:[%s7462_s22 + $0x28] sm:$0xf0] }
 0x788   : > { %v3223_v19 = vpop.f32.mrf.mxu3 }
 0x789   : > { %v3224_v56 = vadd.f32 %v3223_v19, %v3206_v12  ;;  %v5005_v19 = vld [vmem:[%s7461_s24 + $0xa8] sm:$0xf0]  ;;  %v5082_v12 = vor.u32 %v5379_v29, %v5079_v10 }
 0x78a   : > { %v2852_v28 = vpop.f32.mrf.mxu0  ;;  %v5008_v30 = vor.u32 %v5411_v27, %v5005_v19 }
 0x78b   : > { %v3262_v35 = vadd.f32 %v6993_v58, %v2852_v28  ;;  %v4925_v58 = vld [vmem:[%s7461_s24 + $0x8] sm:$0xf0]  ;;  %v3324_v28 = vperm.slane %v7163_v16, 0 }
 0x78c   : > { %v4928_v59 = vor.u32 %v5391_v22, %v4925_v58  ;;  %3577 = vmatpush.bf16.msrb.mxu0 %v5008_v30  ;;  %v3193_v22 = vadd.f32 %v6882_v32, %v7048_v20  ;;  %v4996_v58 = vor.u32 %v5410_v38, %v4995_v54  ;;  %v4987_v20 = vld [vmem:[%s7461_s24 + $0x80] sm:$0xf]  ;;  %v5373_v30 = vld [vmem:[%s7462_s22 + $0x34] sm:$0xf] }
 0x78d   : > { %v7093_v24 = vadd.f32 %v6995_v33, %v3262_v35 }
 0x78e   : > { %3561 = vmatpush.bf16.msrb.mxu3 %v4928_v59  ;;  %v4997_v59 = vld [vmem:[%s7461_s24 + $0x98] sm:$0xf0]  ;;  %3542 = vmatpush.bf16.msrb.mxu2 %v4996_v58  ;;  %v3325_v58 = vperm.slane %v7163_v16, 1 }
 0x790   : > { %v3225_v33 = vpop.f32.mrf.mxu3 }
 0x791   : > { %v3226_v42 = vadd.f32 %v3225_v33, %v3208_v17  ;;  %v5037_v33 = vld [vmem:[%s7462_s22 + $0x10] sm:$0xf]  ;;  %v5063_v17 = vld [vmem:[%s7462_s22 + $0x48] sm:$0xf0] }
 0x792   : > { %v2855_v45 = vpop.f32.mrf.mxu0  ;;  %3762 = vmatpush.bf16.msra.mxu3 %v5086_v47  ;;  %v5000_v47 = vor.u32 %v5409_v39, %v4997_v59  ;;  %v5066_v19 = vor.u32 %v5375_v15, %v5063_v17  ;;  %v5050_v39 = vor.u32 %v5371_v46, %v5047_v7  ;;  %v5111_v17 = vld [vmem:[%s7462_s22 + $0xa8] sm:$0xf0]  ;;  %v5109_v7 = vld [vmem:[%s7462_s22 + $0xa0] sm:$0xf] }
 0x793   : > { %v3265_v51 = vadd.f32 %v7023_v49, %v2855_v45  ;;  %v5069_v49 = vld [vmem:[%s7462_s22 + $0x50] sm:$0xf] }
 0x794   : > { %3578 = vmatpush.bf16.msrb.mxu0 %v5000_v47 }
 0x795   : > { %v7115_v53 = vadd.f32 %v7025_v50, %v3265_v51  ;;  %v5378_v50 = vld [vmem:[%s7462_s22 + $0x54] sm:$0xf0]  ;;  %v5038_v51 = vor.u32 %v5370_v43, %v5037_v33 }
 0x796   : > { %3763 = vmatpush.bf16.msra.mxu3 %v5078_v63  ;;  %v5070_v52 = vor.u32 %v5378_v50, %v5069_v49  ;;  %v3211_v63 = vadd.f32 %v6925_v41, %v3193_v22  ;;  %v4988_v49 = vor.u32 %v5408_v60, %v4987_v20  ;;  %v4989_v50 = vld [vmem:[%s7461_s24 + $0x88] sm:$0xf0]  ;;  %v5369_v22 = vld [vmem:[%s7462_s22 + $0x14] sm:$0xf] }
 0x797   : > { %v4992_v9 = vor.u32 %v5407_v62, %v4989_v50 }
 0x798   : > { %v7123_v48 = vpop.f32.mrf.mxu3  ;;  %3543 = vmatpush.bf16.msrb.mxu2 %v4988_v49 }
 0x799   : > { %3579 = vmatpush.bf16.msrb.mxu0 %v4992_v9 }
 0x79a   : > { %3764 = vmatpush.bf16.msra.mxu3 %v5070_v52  ;;  %v5029_v52 = vld [vmem:[%s7462_s22] sm:$0xf] }
 0x79d   : > { %3798 = vmatpush.bf16.msra.mxu0 %v5090_v8 }
 0x79e   : > { %3765 = vmatpush.bf16.msra.mxu3 %v5062_v2 }
 0x7a0   : > { %v3230_v55 = vpop.f32.mrf.mxu3 }
 0x7a1   : > { %v5030_v55 = vor.u32 %v5368_v0, %v5029_v52  ;;  %3799 = vmatpush.bf16.msra.mxu0 %v5082_v12 }
 0x7a2   : > { %v3241_v6 = vpop.f32.mrf.mxu0  ;;  %3766 = vmatpush.bf16.msra.mxu3 %v5054_v14 }
 0x7a3   : > { %v3242_v25 = vadd.f32 %v3241_v6, %v3224_v56  ;;  %v3229_v6 = vadd.f32 %v7123_v48, %v3211_v63  ;;  %v5377_v56 = vld [vmem:[%s7462_s22 + $0x54] sm:$0xf] }
 0x7a4   : > { %v5074_v27 = vor.u32 %v5377_v56, %v5071_v37 }
 0x7a5   : > { %v3328_v44 = vadd.f32 %v3324_v28, %v3242_v25 }
 0x7a6   : > { %3767 = vmatpush.bf16.msra.mxu3 %v5046_v31  ;;  %3800 = vmatpush.bf16.msra.mxu0 %v5074_v27  ;;  %v5055_v31 = vld [vmem:[%s7462_s22 + $0x38] sm:$0xf0]  ;;  %v5387_v27 = vld [vmem:[%s7462_s22 + $0xa4] sm:$0xf] }
 0x7a7   : > { %v3334_v34 = vmax.f32 %v3328_v44, 0.0  ;;  %v5058_v54 = vor.u32 %v5373_v30, %v5055_v31  ;;  %v5031_v44 = vld [vmem:[%s7462_s22 + $0x8] sm:$0xf0]  ;;  %v5114_v30 = vor.u32 %v5387_v27, %v5111_v17  ;;  %v5385_v31 = vld [vmem:[%s7462_s22 + $0x94] sm:$0xf] }
 0x7a8   : > { %v7185_v35 = vpop.f32.mrf.mxu3 }
 0x7aa   : > { %v3243_v26 = vpop.f32.mrf.mxu0  ;;  %3768 = vmatpush.bf16.msra.mxu3 %v5038_v51  ;;  %3801 = vmatpush.bf16.msra.mxu0 %v5066_v19 }
 0x7ab   : > { %v3244_v45 = vadd.f32 %v3243_v26, %v3226_v42  ;;  %v3278_v42 = vadd.f32 %v6989_v11, %v3260_v21  ;;  %v5039_v11 = vld [vmem:[%s7462_s22 + $0x18] sm:$0xf0] }
 0x7ac   : > { %v5042_v33 = vor.u32 %v5369_v22, %v5039_v11  ;;  %v5383_v11 = vld [vmem:[%s7462_s22 + $0x84] sm:$0xf] }
 0x7ad   : > { %v3330_v32 = vadd.f32 %v3324_v28, %v3244_v45  ;;  %v3296_v38 = vadd.f32 %v7185_v35, %v3278_v42  ;;  %v5367_v35 = vld [vmem:[%s7462_s22 + $0x4] sm:$0xf]  ;;  %v5103_v42 = vld [vmem:[%s7462_s22 + $0x98] sm:$0xf0] }
 0x7ae   : > { %3769 = vmatpush.bf16.msra.mxu3 %v5030_v55  ;;  %3802 = vmatpush.bf16.msra.mxu0 %v5058_v54 }
 0x7af   : > { %v3336_v2 = vmax.f32 %v3330_v32, 0.0  ;;  %v5034_v32 = vor.u32 %v5367_v35, %v5031_v44 }
 0x7b0   : > { %v3297_v57 = vpop.f32.mrf.mxu3 }
 0x7b1   : > { %v7226_v41 = vpack.c.bf16 %v3336_v2, %v3334_v34  ;;  %v3298_v59 = vadd.f32 %v3297_v57, %v7093_v24 }
 0x7b2   : > { %v3246_v3 = vpop.f32.mrf.mxu0  ;;  %3803 = vmatpush.bf16.msra.mxu0 %v5050_v39  ;;  %v5106_v39 = vor.u32 %v5385_v31, %v5103_v42 }
 0x7b3   : > { %3526 = vmatmul.bf16.vlgmr.msra.gmra.mxu1 %v7226_v41  ;;  %3562 = vmatmul.bf16.vlgmr.msrb.gmra.mxu3 %v7226_v41  ;;  %v3247_v1 = vadd.f32 %v3246_v3, %v3229_v6 }
 0x7b5   : > { %v3332_v14 = vadd.f32 %v3324_v28, %v3247_v1 }
 0x7b6   : > { %3804 = vmatpush.bf16.msra.mxu0 %v5042_v33 }
 0x7b7   : > { %v3338_v18 = vmax.f32 %v3332_v14, 0.0  ;;  %v5119_v14 = vld [vmem:[%s7462_s22 + $0xb8] sm:$0xf0] }
 0x7b8   : > { %v3300_v13 = vpop.f32.mrf.mxu3 }
 0x7b9   : > { %v3342_v25 = vpack.c.bf16 %v3338_v18, %v3338_v18  ;;  %v3301_v62 = vadd.f32 %v3300_v13, %v7115_v53 }
 0x7ba   : > { %v3248_v48 = vpop.f32.mrf.mxu0  ;;  %3805 = vmatpush.bf16.msra.mxu0 %v5034_v32 }
 0x7c0   : > { %v3302_v23 = vpop.f32.mrf.mxu3 }
 0x7c1   : > { %v5117_v23 = vld [vmem:[%s7462_s22 + $0xb0] sm:$0xf] }
 0x7c2   : > { %v3313_v28 = vpop.f32.mrf.mxu0 }
 0x7c3   : > { %3531 = vmatmul.bf16.gmra.mxu1 %v3342_v25  ;;  %3567 = vmatmul.bf16.gmra.mxu3 %v3342_v25  ;;  %v3314_v26 = vadd.f32 %v3313_v28, %v3296_v38  ;;  %v5388_v38 = vld [vmem:[%s7462_s22 + $0xa4] sm:$0xf0] }
 0x7c5   : > { %v3329_v45 = vadd.f32 %v3325_v58, %v3314_v26  ;;  %v5095_v26 = vld [vmem:[%s7462_s22 + $0x88] sm:$0xf0] }
 0x7c6   : > { %v5098_v35 = vor.u32 %v5383_v11, %v5095_v26 }
 0x7c7   : > { %v3335_v20 = vmax.f32 %v3329_v45, 0.0  ;;  %v5093_v45 = vld [vmem:[%s7462_s22 + $0x80] sm:$0xf] }
 0x7ca   : > { %v3315_v43 = vpop.f32.mrf.mxu0 }
 0x7cb   : > { %v3316_v47 = vadd.f32 %v3315_v43, %v3298_v59  ;;  %v5110_v59 = vor.u32 %v5388_v38, %v5109_v7  ;;  %v5101_v43 = vld [vmem:[%s7462_s22 + $0x90] sm:$0xf] }
 0x7cd   : > { %v3331_v51 = vadd.f32 %v3325_v58, %v3316_v47  ;;  %v5384_v47 = vld [vmem:[%s7462_s22 + $0x84] sm:$0xf0] }
 0x7cf   : > { %v3337_v16 = vmax.f32 %v3331_v51, 0.0  ;;  %v5094_v51 = vor.u32 %v5384_v47, %v5093_v45 }
 0x7d1   : > { %v7285_v60 = vpack.c.bf16 %v3337_v16, %v3335_v20 }
 0x7d2   : > { %v3318_v24 = vpop.f32.mrf.mxu0 }
 0x7d3   : > { %5017 = vmatmul.msk.bf16.vlgmr.msrb.gmra.mxu2 %vm1296_vm5, %v7285_v60  ;;  %5019 = vmatmul.msk.bf16.vlgmr.msrb.gmra.mxu0 %vm1296_vm5, %v7285_v60  ;;  %v3319_v63 = vadd.f32 %v3318_v24, %v3301_v62 }
 0x7d4   : > { %3770 = vmatmul.bf16.vlgmr.msra.gmra.mxu3 %v7226_v41 }
 0x7d5   : > { %v3333_v49 = vadd.f32 %v3325_v58, %v3319_v63 }
 0x7d7   : > { %v3339_v52 = vmax.f32 %v3333_v49, 0.0 }
 0x7d9   : > { %v7293_v0 = vpack.c.bf16 %v3339_v52, %v3339_v52 }
 0x7da   : > { %v3320_v50 = vpop.f32.mrf.mxu0 }
 0x7db   : > { %v3834_v50 = vld [vmem:[%s7464_s8] sm:$0x3] }
 0x7e3   : > { %5018 = vmatmul.msk.bf16.gmra.mxu2 %vm1296_vm5, %v7293_v0  ;;  %5020 = vmatmul.msk.bf16.gmra.mxu0 %vm1296_vm5, %v7293_v0 }
 0x7e4   : > { %3775 = vmatmul.bf16.gmra.mxu3 %v3342_v25 }
 0x7f3   : > { %3806 = vmatmul.bf16.vlgmr.msra.gmra.mxu0 %v7226_v41  ;;  %v5389_v41 = vld [vmem:[%s7462_s22 + $0xb4] sm:$0xf] }
 0x7f4   : > { %v5122_v37 = vor.u32 %v5389_v41, %v5119_v14 }
 0x803   : > { %3811 = vmatmul.bf16.gmra.mxu0 %v3342_v25  ;;  %v5390_v25 = vld [vmem:[%s7462_s22 + $0xb4] sm:$0xf0] }
 0x804   : > { %v5118_v46 = vor.u32 %v5390_v25, %v5117_v23 }
 0x830   : > { %v3527_v53 = vpop.f32.mrf.mxu1 }
 0x836   : > { %v3563_v34 = vpop.f32.mrf.mxu3 }
 0x838   : > { %v3529_v2 = vpop.f32.mrf.mxu1 }
 0x83e   : > { %v3565_v9 = vpop.f32.mrf.mxu3 }
 0x840   : > { %v3532_v55 = vpop.f32.mrf.mxu1 }
 0x846   : > { %v3568_v57 = vpop.f32.mrf.mxu3 }
 0x848   : > { %v3534_v3 = vpop.f32.mrf.mxu1 }
 0x84e   : > { %v3570_v4 = vpop.f32.mrf.mxu3 }
 0x850   : > { %v3581_v5 = vpop.f32.mrf.mxu0 }
 0x851   : > { %v3582_v56 = vadd.f32 %v3581_v5, %v3563_v34  ;;  %v3837_v34 = vperm.slane %v3834_v50, 1 }
 0x856   : > { %v3545_v6 = vpop.f32.mrf.mxu2 }
 0x857   : > { %v7300_v8 = vpop.f32.mrf.mxu3  ;;  %v3546_v54 = vadd.f32 %v3545_v6, %v3527_v53  ;;  %v3836_v53 = vperm.slane %v3834_v50, 0 }
 0x858   : > { %v3583_v1 = vpop.f32.mrf.mxu0 }
 0x859   : > { %v3584_v48 = vadd.f32 %v3583_v1, %v3565_v9 }
 0x85e   : > { %v3547_v29 = vpop.f32.mrf.mxu2 }
 0x85f   : > { %v7302_v10 = vpop.f32.mrf.mxu3  ;;  %v3548_v28 = vadd.f32 %v3547_v29, %v3529_v2 }
 0x860   : > { %v3586_v12 = vpop.f32.mrf.mxu0 }
 0x861   : > { %v3587_v13 = vadd.f32 %v3586_v12, %v3568_v57 }
 0x863   : > { %3629 = vmatpush.msra.mxu2 %v3587_v13 }
 0x865   : > { %3630 = vmatpush.msra.mxu2 %v3584_v48 }
 0x866   : > { %v3550_v15 = vpop.f32.mrf.mxu2 }
 0x867   : > { %v3551_v18 = vadd.f32 %v3550_v15, %v3532_v55  ;;  %v7316_v19 = vpop.f32.mrf.mxu3  ;;  %3631 = vmatpush.msra.mxu2 %v3582_v56 }
 0x868   : > { %v3588_v21 = vpop.f32.mrf.mxu0  ;;  %5024 = vmatmul.msk.f32.vlgmr.msra.gmra.mxu2 %vm2798_vm9, %v5680_v61 }
 0x869   : > { %3603 = vmatpush.msrb.mxu1 %v3551_v18  ;;  %3820 = vmatpush.bf16.msrb.mxu2 %v5122_v37 }
 0x86b   : > { %3604 = vmatpush.msrb.mxu1 %v3548_v28 }
 0x86d   : > { %3605 = vmatpush.msrb.mxu1 %v3546_v54  ;;  %3821 = vmatpush.bf16.msrb.mxu2 %v5114_v30 }
 0x86e   : > { %v3552_v22 = vpop.f32.mrf.mxu2  ;;  %5021 = vmatmul.msk.f32.vlgmr.msrb.gmra.mxu1 %vm2798_vm9, %v5680_v61  ;;  %v5386_v61 = vld [vmem:[%s7462_s22 + $0x94] sm:$0xf0] }
 0x86f   : > { %v3778_v58 = vpop.f32.mrf.mxu3  ;;  %3784 = vmatpush.bf16.msra.mxu1 %v5118_v46  ;;  %v5102_v44 = vor.u32 %v5386_v61, %v5101_v43 }
 0x870   : > { %5025 = vmatmul.msk.f32.gmra.mxu2 %vm2798_vm9, %v5846_v36  ;;  %v3807_v33 = vpop.f32.mrf.mxu0 }
 0x871   : > { %3822 = vmatpush.bf16.msrb.mxu2 %v5106_v39 }
 0x873   : > { %3785 = vmatpush.bf16.msra.mxu1 %v5110_v59 }
 0x875   : > { %3823 = vmatpush.bf16.msrb.mxu2 %v5098_v35 }
 0x876   : > { %5022 = vmatmul.msk.f32.gmra.mxu1 %vm2798_vm9, %v5846_v36 }
 0x877   : > { %3786 = vmatpush.bf16.msra.mxu1 %v5102_v44 }
 0x878   : > { %5026 = vmatmul.msk.f32.gmra.mxu2 %vm2798_vm9, %v6794_v40  ;;  %v3809_v32 = vpop.f32.mrf.mxu0 }
 0x87b   : > { %3787 = vmatpush.bf16.msra.mxu1 %v5094_v51 }
 0x87e   : > { %5023 = vmatmul.msk.f32.gmra.mxu1 %vm2798_vm9, %v6794_v40 }
 0x880   : > { %v3812_v20 = vpop.f32.mrf.mxu0  ;;  %5125 = vmatmul.msk.bf16.vlgmr.msrb.gmra.mxu2 %vm1296_vm5, %v7285_v60 }
 0x886   : > { %5123 = vmatmul.msk.bf16.vlgmr.msra.gmra.mxu1 %vm1296_vm5, %v7285_v60 }
 0x888   : > { %v3814_v16 = vpop.f32.mrf.mxu0 }
 0x890   : > { %5126 = vmatmul.msk.bf16.gmra.mxu2 %vm1296_vm5, %v7293_v0 }
 0x896   : > { %5124 = vmatmul.msk.bf16.gmra.mxu1 %vm1296_vm5, %v7293_v0 }
 0x8eb   : > { %v3607_v36 = vpop.f32.mrf.mxu1  ;;  %v3633_v24 = vpop.f32.mrf.mxu2 }
 0x8ec   : > { %v3772_v60 = vadd.f32 %v7300_v8, %v3607_v36  ;;  %v3808_v52 = vadd.f32 %v3807_v33, %v3633_v24 }
 0x8f3   : > { %v3610_v62 = vpop.f32.mrf.mxu1  ;;  %v3636_v63 = vpop.f32.mrf.mxu2 }
 0x8f4   : > { %v3774_v4 = vadd.f32 %v7302_v10, %v3610_v62  ;;  %v3810_v5 = vadd.f32 %v3809_v32, %v3636_v63 }
 0x8fb   : > { %v3613_v49 = vpop.f32.mrf.mxu1  ;;  %v3639_v40 = vpop.f32.mrf.mxu2 }
 0x8fc   : > { %v3777_v41 = vadd.f32 %v7316_v19, %v3613_v49  ;;  %v3813_v14 = vadd.f32 %v3812_v20, %v3639_v40 }
 0x903   : > { %v3789_v2 = vpop.f32.mrf.mxu1  ;;  %v3825_v9 = vpop.f32.mrf.mxu2 }
 0x904   : > { %v3790_v55 = vadd.f32 %v3789_v2, %v3772_v60  ;;  %v3826_v0 = vadd.f32 %v3825_v9, %v3808_v52 }
 0x906   : > { %v3840_v57 = vadd.f32 %v3836_v53, %v3790_v55  ;;  %v3841_v3 = vadd.f32 %v3837_v34, %v3826_v0 }
 0x908   : > { %3846 = vst [vmem:[%s899_s1] sm:$0xff] %v3840_v57 }
 0x909   : > { %3847 = vst [vmem:[%s899_s1 + $0x8] sm:$0xff] %v3841_v3 }
 0x90b   : > { %v3791_v6 = vpop.f32.mrf.mxu1  ;;  %v3827_v8 = vpop.f32.mrf.mxu2 }
 0x90c   : > { %v3792_v1 = vadd.f32 %v3791_v6, %v3774_v4  ;;  %v3828_v29 = vadd.f32 %v3827_v8, %v3810_v5 }
 0x90e   : > { %v3842_v12 = vadd.f32 %v3836_v53, %v3792_v1  ;;  %v3843_v13 = vadd.f32 %v3837_v34, %v3828_v29 }
 0x910   : > { %3848 = vst [vmem:[%s899_s1 + $0x10] sm:$0xff] %v3842_v12 }
 0x911   : > { %3849 = vst [vmem:[%s899_s1 + $0x18] sm:$0xff] %v3843_v13 }
 0x913   : > { %v3794_v48 = vpop.f32.mrf.mxu1  ;;  %v3830_v56 = vpop.f32.mrf.mxu2 }
 0x914   : > { %v3795_v37 = vadd.f32 %v3794_v48, %v3777_v41  ;;  %v3831_v15 = vadd.f32 %v3830_v56, %v3813_v14 }
 0x916   : > { %v3844_v27 = vadd.f32 %v3836_v53, %v3795_v37  ;;  %v3845_v17 = vadd.f32 %v3837_v34, %v3831_v15 }
 0x918   : > { %3850 = vst [vmem:[%s899_s1 + $0x20] sm:$0x3f] %v3844_v27 }
 0x919   : > { %3851 = vst [vmem:[%s899_s1 + $0x28] sm:$0x3f] %v3845_v17 }
 0x91b   : > { %v3796_v10 = vpop.f32.mrf.mxu1  ;;  %v3832_v18 = vpop.f32.mrf.mxu2 }
 0x91c PF: > { %s7466_s5 = sld [smem:[#allocation5_spill]] }
 0x922   : > { %s38_s8 = sadd.s32 1, %s7466_s5  }
 0x923   : > { %p35_p4 = scmp.ge.s32.totalorder %s38_s8, 4  }
 0x925   :  { %37 = sbr.rel (!%p35_p4) target bundleno = 20 (0x14), region = 171 }

</bundles_post_ra>
